<compile_context>
chip_gen: v5e
topology: v5e:2x2
jax: 0.10.0
libtpu: 0.0.40
codegen_flags: <defaults>
</compile_context>

<pallas_src>
import jax
import jax.numpy as jnp
import numpy as np
from jax import lax
from jax.experimental import pallas as pl
from jax.experimental.pallas import tpu as pltpu


# ------------------------------- kernel --------------------------------------

def make_kernel(use_bf16=True):
    cdt = jnp.bfloat16 if use_bf16 else jnp.float32

    def mm(a, b):
        return jnp.dot(a, b, preferred_element_type=jnp.float32)

    def kernel(sc_ref, q_ref, kT_ref, valrhs_ref, dirrhs_ref, pk_ref, pq_ref,
               WaradT_ref, WvradT_ref, o_ref):
        h = pl.program_id(1)
        r0sq = sc_ref[0, h]            # r0**2
        half_inv_r0 = sc_ref[1, h]     # 0.5 / r0

        # --- attention logits; kq_scale already folded into q on the host ---------
        raw = mm(q_ref[0, 0], kT_ref[0, 0])              # (TM, N)

        # --- geometry: d[m, n, v] = pos_k[m, v] - pos_q[n, v] (module convention) --
        d0 = pk_ref[0, 0] - pq_ref[0, 0]                 # (TM, 1) - (1, N) -> (TM, N)
        d1 = pk_ref[0, 1] - pq_ref[0, 1]
        d2 = pk_ref[0, 2] - pq_ref[0, 2]
        dist_sq = d0 * d0 + d1 * d1 + d2 * d2
        inv_rn = lax.rsqrt(r0sq + dist_sq)               # == sqrt(prox) / r0
        prox = r0sq * inv_rn * inv_rn                    # r0^2 / (r0^2 + |d|^2)

        # --- softmax over keys; log(prox) folded in, 1/sum normalization deferred --
        mx = jnp.max(raw, axis=-1, keepdims=True)
        ex = prox * jnp.exp(raw - mx)                    # == exp(dot - mx), always <= 1
        l = jnp.sum(ex, axis=-1, keepdims=True)          # softmax denominator

        ad = (ex * (d0 * inv_rn), ex * (d1 * inv_rn), ex * (d2 * inv_rn))
        exc = ex.astype(cdt)
        adc = tuple(a.astype(cdt) for a in ad)

        # --- merged value / direction matmuls: accumulate straight into (TM, d_out) -
        acc = mm(exc, valrhs_ref[0, 0])                  # [aans | vans_x | vans_y | vans_z]
        for v in range(3):
            acc = acc + mm(adc[v], dirrhs_ref[0, 0, v])  # RHS zero-padded to output layout

        # --- radial encodings: moments (TM, 16) reduced on the MXU, then one small
        #     (TM,16)x(16,dim) matmul per stream -----------------------------------
        n_keys = ex.shape[-1]
        ones_col = jnp.ones((n_keys, 1), cdt)            # hoisted; reused by every reduce

        def reduce_cols(p):                              # (TM, N) cdt -> (TM, 1) f32 (MXU)
            return mm(p, ones_col)

        rd_half = half_inv_r0 * jnp.sqrt(dist_sq)        # 0.5 * |d| / r0
        s1 = jnp.sin(rd_half)
        c1 = jnp.cos(rd_half)

        zero_col = jnp.zeros_like(l)
        streams = (exc, adc[0], adc[1], adc[2])
        sin_cols = [[zero_col] for _ in range(4)]                       # sin(0) == 0
        cos_cols = [[l], [reduce_cols(adc[0])],                         # cos(0) == 1
                    [reduce_cols(adc[1])], [reduce_cols(adc[2])]]

        s_r, c_r = s1, c1
        for r in range(1, 8):
            if r > 1:
                # angle-addition recurrence in f32 (RHS evaluated before binding).
                s_r, c_r = s_r * c1 + c_r * s1, c_r * c1 - s_r * s1
            s_rc = s_r.astype(cdt)
            c_rc = c_r.astype(cdt)
            for si, st in enumerate(streams):
                sin_cols[si].append(reduce_cols(st * s_rc))
                cos_cols[si].append(reduce_cols(st * c_rc))

        moms = [jnp.concatenate(sin_cols[si] + cos_cols[si], axis=-1)   # (TM, 16) each
                for si in range(4)]
        rad = jnp.concatenate([mm(moms[0], WaradT_ref[0]),
                               mm(moms[1], WvradT_ref[0]),
                               mm(moms[2], WvradT_ref[0]),
                               mm(moms[3], WvradT_ref[0])], axis=-1)    # (TM, d_out)

        # --- deferred softmax normalization + single combined output store ---------
        inv_l = pl.reciprocal(l, approx=True)
        o_ref[0, 0] = (acc + rad) * inv_l

    return kernel


# ------------------------------- wrapper --------------------------------------

def proximity_attention_v2(ax, vx, pos_k, pos_q, params, r0_list,
                           kq_scale=0.1, tile_m=None, use_bf16=None,
                           vmem_limit_bytes=None):
    B, N, achan = ax.shape
    vchan = vx.shape[2]
    H = len(r0_list)
    avaldim = achan // H
    vvaldim = vchan // H
    d_out = avaldim + 3 * vvaldim
    kq_adim = params['W_ak'].shape[1]
    kq_vdim = params['W_vk'].shape[1]
    KQT = kq_adim + 3 * kq_vdim

    # ---- per-generation knobs -----------------------------------------------------
    if use_bf16 is None:
        use_bf16 = True
        try:
            kind = jax.devices()[0].device_kind.lower()
            if "v5 lite" in kind or "v5e" in kind or "v5litepod" in kind:
                use_bf16 = False          # v5e VPU has no bf16 elementwise support
        except Exception:
            pass
    cdt = jnp.bfloat16 if use_bf16 else jnp.float32

    if vmem_limit_bytes is None:
        phys_vmem = 64 * 1024 * 1024
        try:
            phys_vmem = int(getattr(pltpu.get_tpu_info(), "vmem_capacity_bytes", phys_vmem))
        except Exception:
            pass
        # 3/4 of physical: ~96 MiB on v5e/v6e (128 MiB per TC), ~48 MiB on v7x (64 MiB).
        vmem_limit_bytes = min(phys_vmem * 3 // 4, 96 * 1024 * 1024)

    if tile_m is None:
        # ~24 live f32 (tile_m, N) slabs in the body; keep half the budget for the
        # (double-buffered) key-side input blocks.
        row_bytes = 24 * N * 4
        tm_cap = min(max(8, (vmem_limit_bytes // 2) // row_bytes), 512, N)
        if N <= tm_cap:
            tile_m = N
        else:
            tile_m, t = 8, 8
            while t <= tm_cap:
                if N % t == 0:
                    tile_m = t
                t += 8
    assert N % tile_m == 0, "query tile must divide the node count"
    assert tile_m == N or tile_m % 8 == 0, "query tile must be a multiple of 8"
    n_mt = N // tile_m

    # ---- hoisted (b, h)-only precompute: O(B*H*N*chan), negligible vs O(N^2) -------
    r0 = np.asarray(r0_list, np.float32)
    head_scalars = jnp.asarray(np.stack([r0 ** 2, 0.5 / r0], axis=0))       # (2, H) -> SMEM

    vx_v = jnp.transpose(vx, (0, 3, 1, 2))                                  # (B, 3, N, vchan)

    def aproj(w):   # (H, o, achan) . (B, N, achan)   -> (B, H, N, o)
        return jnp.einsum('hij,bnj->bhni', w, ax)

    def vproj(w):   # (H, o, vchan) . (B, 3, N, vchan) -> (B, H, 3, N, o)
        return jnp.einsum('hij,bvnj->bhvni', w, vx_v)

    # fused, pre-scaled query projections and transposed fused key projections
    aq, vq = aproj(params['W_aq']), vproj(params['W_vq'])
    q_big = kq_scale * jnp.concatenate(
        [aq, vq[:, :, 0], vq[:, :, 1], vq[:, :, 2]], axis=-1)               # (B, H, N, KQT)
    ak, vk = aproj(params['W_ak']), vproj(params['W_vk'])
    kT = jnp.transpose(jnp.concatenate(
        [ak, vk[:, :, 0], vk[:, :, 1], vk[:, :, 2]], axis=-1), (0, 1, 3, 2))  # (B, H, KQT, N)

    # merged value RHS: one (N, d_out) slab per (b, h)
    aval, vval = aproj(params['W_aval']), vproj(params['W_vval'])
    val_rhs = jnp.concatenate(
        [aval, vval[:, :, 0], vval[:, :, 1], vval[:, :, 2]], axis=-1).astype(cdt)

    # direction RHS per axis v, zero-padded into the output layout so the kernel
    # accumulates directly into the combined (TM, d_out) block (MXU width is free).
    v2a, a2v = vproj(params['W_v2aval']), aproj(params['W_a2vval'])
    zeros_v = jnp.zeros_like(a2v)
    dir_rhs = jnp.stack(
        [jnp.concatenate([v2a[:, :, v]] + [a2v if u == v else zeros_v for u in range(3)],
                         axis=-1) for v in range(3)], axis=2).astype(cdt)   # (B, H, 3, N, d_out)

    pk_c = jnp.transpose(pos_k, (0, 2, 1))[:, :, :, None]                   # (B, 3, N, 1)
    pq_r = jnp.transpose(pos_q, (0, 2, 1))[:, :, None, :]                   # (B, 3, 1, N)
    WaradT = jnp.transpose(params['W_aradenc'], (0, 2, 1))                  # (H, 16, avaldim)
    WvradT = jnp.transpose(params['W_vradenc'], (0, 2, 1))                  # (H, 16, vvaldim)

    in_specs = [
        pl.BlockSpec(memory_space=pltpu.MemorySpace.SMEM),                           # head scalars
        pl.BlockSpec((1, 1, tile_m, KQT), lambda b, h, mt: (b, h, mt, 0)),           # q (query tile)
        pl.BlockSpec((1, 1, KQT, N), lambda b, h, mt: (b, h, 0, 0)),                 # k^T (all keys)
        pl.BlockSpec((1, 1, N, d_out), lambda b, h, mt: (b, h, 0, 0)),               # merged value RHS
        pl.BlockSpec((1, 1, 3, N, d_out), lambda b, h, mt: (b, h, 0, 0, 0)),         # merged dir RHS
        pl.BlockSpec((1, 3, tile_m, 1), lambda b, h, mt: (b, 0, mt, 0)),             # pos_k (query tile)
        pl.BlockSpec((1, 3, 1, N), lambda b, h, mt: (b, 0, 0, 0)),                   # pos_q (all keys)
        pl.BlockSpec((1, 16, avaldim), lambda b, h, mt: (h, 0, 0)),                  # W_aradenc^T
        pl.BlockSpec((1, 16, vvaldim), lambda b, h, mt: (h, 0, 0)),                  # W_vradenc^T
    ]
    out_specs = pl.BlockSpec((1, 1, tile_m, d_out), lambda b, h, mt: (b, h, mt, 0))
    out_shape = jax.ShapeDtypeStruct((B, H, N, d_out), jnp.float32)

    out = pl.pallas_call(
        make_kernel(use_bf16),
        grid=(B, H, n_mt),
        in_specs=in_specs,
        out_specs=out_specs,
        out_shape=out_shape,
        compiler_params=pltpu.CompilerParams(
            dimension_semantics=("parallel", "parallel", "parallel"),
            vmem_limit_bytes=int(vmem_limit_bytes)),
    )(head_scalars, q_big, kT, val_rhs, dir_rhs, pk_c, pq_r, WaradT, WvradT)

    aans = jnp.transpose(out[..., :avaldim], (0, 2, 1, 3)).reshape(B, N, achan)
    vpart = out[..., avaldim:].reshape(B, H, N, 3, vvaldim)
    vans = jnp.transpose(vpart, (0, 2, 1, 4, 3)).reshape(B, N, vchan, 3)
    return aans, vans


# -------------------- deterministic parameter initialization ------------------

def init_params(key, H, kq_adim, kq_vdim, achan, vchan, kq_prescale=0.01):
    kq_ascale = (kq_prescale / kq_adim) ** 0.5
    kq_vscale = (kq_prescale / kq_vdim) ** 0.5
    avaldim, vvaldim = achan // H, vchan // H
    spec = {
        'W_ak': ((H, kq_adim, achan), kq_ascale),
        'W_vk': ((H, kq_vdim, vchan), kq_vscale),
        'W_aq': ((H, kq_adim, achan), kq_ascale),
        'W_vq': ((H, kq_vdim, vchan), kq_vscale),
        'W_aval': ((H, avaldim, achan), 1.0),
        'W_vval': ((H, vvaldim, vchan), 1.0),
        'W_a2vval': ((H, vvaldim, achan), 1.0),
        'W_v2aval': ((H, avaldim, vchan), 1.0),
        'W_aradenc': ((H, avaldim, 16), 1.0),
        'W_vradenc': ((H, vvaldim, 16), 1.0),
    }
    params = {}
    keys = jax.random.split(key, len(spec))
    for k, (name, (shape, scale)) in zip(keys, spec.items()):
        fan_in = shape[1]                       # matches module's self_init
        std = scale * fan_in ** (-0.5)
        params[name] = std * jax.random.normal(k, shape, jnp.float32)
    return params


# ----------------------------- pure-JAX reference -----------------------------

def reference(ax, vx, pos_k, pos_q, p, r0, kq_scale):
    ak = jnp.einsum('hij,bnj->bnhi', p['W_ak'], ax)
    vk = jnp.einsum('hij,bnjv->bnhiv', p['W_vk'], vx)
    aq = jnp.einsum('hij,bnj->bnhi', p['W_aq'], ax)
    vq = jnp.einsum('hij,bnjv->bnhiv', p['W_vq'], vx)
    akq = jnp.einsum('bnhi,bmhi->bnmh', ak, aq)
    vkq = jnp.einsum('bnhiv,bmhiv->bnmh', vk, vq)
    dot = kq_scale * (akq + vkq)
    separation = pos_k[:, None, :] - pos_q[:, :, None]
    dist_sq = (separation ** 2).sum(3)
    r0_sq = r0 ** 2
    proximity = r0_sq / (r0_sq + dist_sq[..., None])
    directions = separation[:, :, :, None] * jnp.sqrt(proximity / r0_sq)[..., None]
    dot = dot + jnp.log(proximity)
    attention = jax.nn.softmax(dot, axis=1)
    aans = jnp.einsum('bnmh,hij,bnj->bmhi', attention, p['W_aval'], ax)
    vans = jnp.einsum('bnmh,hij,bnjv->bmhiv', attention, p['W_vval'], vx)
    aans = aans + jnp.einsum('bnmh,hij,bnjv,bnmhv->bmhi',
                             attention, p['W_v2aval'], vx, directions)
    vans = vans + jnp.einsum('bnmh,hij,bnj,bnmhv->bmhiv',
                             attention, p['W_a2vval'], ax, directions)
    relative_dist = jnp.sqrt(dist_sq[..., None] / r0_sq)[..., None]
    omega = jnp.arange(8) * 0.5
    radenc = jnp.concatenate([jnp.sin(omega * relative_dist),
                              jnp.cos(omega * relative_dist)], axis=-1)
    aans = aans + jnp.einsum('bnmh,hir,bnmhr->bmhi',
                             attention, p['W_aradenc'], radenc)
    vans = vans + jnp.einsum('bnmh,hir,bnmhr,bnmhv->bmhiv',
                             attention, p['W_vradenc'], radenc, directions)
    B, N, achan = ax.shape
    vchan = vx.shape[2]
    return aans.reshape(B, N, achan), vans.reshape(B, N, vchan, 3)


# ----------------------------------- main --------------------------------------

if __name__ == "__main__":
    B, N, H = 2, 32, 2
    achan, vchan = 8, 8
    kq_adim, kq_vdim = 8, 8
    r0_list = [1.0, 1.5]
    kq_prescale, kq_scale = 0.01, 0.1

    key = jax.random.PRNGKey(0)
    kp, ka, kv, kk, kq = jax.random.split(key, 5)
    params = init_params(kp, H, kq_adim, kq_vdim, achan, vchan, kq_prescale)
    ax = jax.random.normal(ka, (B, N, achan), jnp.float32)
    vx = jax.random.normal(kv, (B, N, vchan, 3), jnp.float32)
    pos_k = jax.random.normal(kk, (B, N, 3), jnp.float32)
    pos_q = jax.random.normal(kq, (B, N, 3), jnp.float32)

    # tile_m < N so the query-tiled grid path (3rd grid axis) is actually exercised.
    aans, vans = proximity_attention_v2(ax, vx, pos_k, pos_q, params,
                                        r0_list, kq_scale, tile_m=16)
    jax.block_until_ready((aans, vans))

    aref, vref = reference(ax, vx, pos_k, pos_q, params,
                           jnp.asarray(r0_list, jnp.float32), kq_scale)
    assert aans.shape == (B, N, achan) and vans.shape == (B, N, vchan, 3)
    assert np.allclose(np.asarray(aans), np.asarray(aref), atol=5e-2, rtol=5e-2)
    assert np.allclose(np.asarray(vans), np.asarray(vref), atol=5e-2, rtol=5e-2)
    print("KERNEL_OK")
</pallas_src>

<mosaic_0001>
module attributes {stable_mosaic.version = 11 : i64} {
  func.func @kernel(%arg0: i32, %arg1: i32, %arg2: i32, %arg3: memref<2x2xf32, #tpu.memory_space<smem>>, %arg4: memref<1x1x16x32xf32, #tpu.memory_space<vmem>>, %arg5: memref<1x1x32x32xf32, #tpu.memory_space<vmem>>, %arg6: memref<1x1x32x16xbf16, #tpu.memory_space<vmem>>, %arg7: memref<1x1x3x32x16xbf16, #tpu.memory_space<vmem>>, %arg8: memref<1x3x16x1xf32, #tpu.memory_space<vmem>>, %arg9: memref<1x3x1x32xf32, #tpu.memory_space<vmem>>, %arg10: memref<1x16x4xf32, #tpu.memory_space<vmem>>, %arg11: memref<1x16x4xf32, #tpu.memory_space<vmem>>, %arg12: memref<1x1x16x16xf32, #tpu.memory_space<vmem>>) attributes {dimension_semantics = [#tpu.dimension_semantics<parallel>, #tpu.dimension_semantics<parallel>, #tpu.dimension_semantics<parallel>], iteration_bounds = array<i64: 2, 2, 2>, scalar_prefetch = 0 : i64, scratch_operands = 0 : i64, tpu.core_type = #tpu.core_type<tc>, window_params = [{transform_indices = @transform_0, window_bounds = array<i64: 2, 2>}, {transform_indices = @transform_1, window_bounds = array<i64: 1, 1, 16, 32>}, {transform_indices = @transform_2, window_bounds = array<i64: 1, 1, 32, 32>}, {transform_indices = @transform_3, window_bounds = array<i64: 1, 1, 32, 16>}, {transform_indices = @transform_4, window_bounds = array<i64: 1, 1, 3, 32, 16>}, {transform_indices = @transform_5, window_bounds = array<i64: 1, 3, 16, 1>}, {transform_indices = @transform_6, window_bounds = array<i64: 1, 3, 1, 32>}, {transform_indices = @transform_7, window_bounds = array<i64: 1, 16, 4>}, {transform_indices = @transform_8, window_bounds = array<i64: 1, 16, 4>}, {transform_indices = @transform_9, window_bounds = array<i64: 1, 1, 16, 16>}]} {
    %c0 = arith.constant 0 : index
    %0 = arith.index_cast %arg1 : i32 to index
    %1 = memref.load %arg3[%c0, %0] : memref<2x2xf32, #tpu.memory_space<smem>>
    %c1 = arith.constant 1 : index
    %2 = arith.index_cast %arg1 : i32 to index
    %3 = memref.load %arg3[%c1, %2] : memref<2x2xf32, #tpu.memory_space<smem>>
    %c0_0 = arith.constant 0 : index
    %c0_1 = arith.constant 0 : index
    %c0_2 = arith.constant 0 : index
    %c0_3 = arith.constant 0 : index
    %4 = vector.load %arg4[%c0_0, %c0_1, %c0_2, %c0_3] : memref<1x1x16x32xf32, #tpu.memory_space<vmem>>, vector<1x1x16x32xf32>
    %5 = vector.shape_cast %4 : vector<1x1x16x32xf32> to vector<16x32xf32>
    %c0_4 = arith.constant 0 : index
    %c0_5 = arith.constant 0 : index
    %c0_6 = arith.constant 0 : index
    %c0_7 = arith.constant 0 : index
    %6 = vector.load %arg5[%c0_4, %c0_5, %c0_6, %c0_7] : memref<1x1x32x32xf32, #tpu.memory_space<vmem>>, vector<1x1x32x32xf32>
    %7 = vector.shape_cast %6 : vector<1x1x32x32xf32> to vector<32x32xf32>
    %cst = arith.constant dense<0.000000e+00> : vector<16x32xf32>
    %8 = tpu.matmul %5, %7, %cst {dimension_numbers = #tpu.dot_dimension_numbers<[1], [0], [0], [1], [0, 0, 1, 1], [], []>} : vector<16x32xf32>, vector<32x32xf32>, vector<16x32xf32> -> vector<16x32xf32>
    %c0_8 = arith.constant 0 : index
    %c0_9 = arith.constant 0 : index
    %c0_10 = arith.constant 0 : index
    %c0_11 = arith.constant 0 : index
    %9 = vector.load %arg8[%c0_8, %c0_9, %c0_10, %c0_11] : memref<1x3x16x1xf32, #tpu.memory_space<vmem>>, vector<1x1x16x1xf32>
    %10 = vector.shape_cast %9 : vector<1x1x16x1xf32> to vector<16x1xf32>
    %c0_12 = arith.constant 0 : index
    %c0_13 = arith.constant 0 : index
    %c0_14 = arith.constant 0 : index
    %c0_15 = arith.constant 0 : index
    %11 = vector.load %arg9[%c0_12, %c0_13, %c0_14, %c0_15] : memref<1x3x1x32xf32, #tpu.memory_space<vmem>>, vector<1x1x1x32xf32>
    %12 = vector.shape_cast %11 : vector<1x1x1x32xf32> to vector<1x32xf32>
    %13 = vector.broadcast %10 : vector<16x1xf32> to vector<16x32xf32>
    %14 = vector.broadcast %12 : vector<1x32xf32> to vector<16x32xf32>
    %15 = arith.subf %13, %14 : vector<16x32xf32>
    %c0_16 = arith.constant 0 : index
    %c1_17 = arith.constant 1 : index
    %c0_18 = arith.constant 0 : index
    %c0_19 = arith.constant 0 : index
    %16 = vector.load %arg8[%c0_16, %c1_17, %c0_18, %c0_19] : memref<1x3x16x1xf32, #tpu.memory_space<vmem>>, vector<1x1x16x1xf32>
    %17 = vector.shape_cast %16 : vector<1x1x16x1xf32> to vector<16x1xf32>
    %c0_20 = arith.constant 0 : index
    %c1_21 = arith.constant 1 : index
    %c0_22 = arith.constant 0 : index
    %c0_23 = arith.constant 0 : index
    %18 = vector.load %arg9[%c0_20, %c1_21, %c0_22, %c0_23] : memref<1x3x1x32xf32, #tpu.memory_space<vmem>>, vector<1x1x1x32xf32>
    %19 = vector.shape_cast %18 : vector<1x1x1x32xf32> to vector<1x32xf32>
    %20 = vector.broadcast %17 : vector<16x1xf32> to vector<16x32xf32>
    %21 = vector.broadcast %19 : vector<1x32xf32> to vector<16x32xf32>
    %22 = arith.subf %20, %21 : vector<16x32xf32>
    %c0_24 = arith.constant 0 : index
    %c2 = arith.constant 2 : index
    %c0_25 = arith.constant 0 : index
    %c0_26 = arith.constant 0 : index
    %23 = vector.load %arg8[%c0_24, %c2, %c0_25, %c0_26] : memref<1x3x16x1xf32, #tpu.memory_space<vmem>>, vector<1x1x16x1xf32>
    %24 = vector.shape_cast %23 : vector<1x1x16x1xf32> to vector<16x1xf32>
    %c0_27 = arith.constant 0 : index
    %c2_28 = arith.constant 2 : index
    %c0_29 = arith.constant 0 : index
    %c0_30 = arith.constant 0 : index
    %25 = vector.load %arg9[%c0_27, %c2_28, %c0_29, %c0_30] : memref<1x3x1x32xf32, #tpu.memory_space<vmem>>, vector<1x1x1x32xf32>
    %26 = vector.shape_cast %25 : vector<1x1x1x32xf32> to vector<1x32xf32>
    %27 = vector.broadcast %24 : vector<16x1xf32> to vector<16x32xf32>
    %28 = vector.broadcast %26 : vector<1x32xf32> to vector<16x32xf32>
    %29 = arith.subf %27, %28 : vector<16x32xf32>
    %30 = arith.mulf %15, %15 : vector<16x32xf32>
    %31 = arith.mulf %22, %22 : vector<16x32xf32>
    %32 = arith.addf %30, %31 : vector<16x32xf32>
    %33 = arith.mulf %29, %29 : vector<16x32xf32>
    %34 = arith.addf %32, %33 : vector<16x32xf32>
    %35 = vector.broadcast %1 : f32 to vector<16x32xf32>
    %36 = arith.addf %35, %34 : vector<16x32xf32>
    %37 = math.rsqrt %36 : vector<16x32xf32>
    %38 = vector.broadcast %1 : f32 to vector<16x32xf32>
    %39 = arith.mulf %38, %37 : vector<16x32xf32>
    %40 = arith.mulf %39, %37 : vector<16x32xf32>
    %cst_31 = arith.constant dense<0xFF800000> : vector<16xf32>
    %41 = vector.multi_reduction <maximumf>, %8, %cst_31 [1] : vector<16x32xf32> to vector<16xf32>
    %42 = vector.shape_cast %41 : vector<16xf32> to vector<16x1xf32>
    %43 = vector.broadcast %42 : vector<16x1xf32> to vector<16x32xf32>
    %44 = arith.subf %8, %43 : vector<16x32xf32>
    %45 = math.exp %44 : vector<16x32xf32>
    %46 = arith.mulf %40, %45 : vector<16x32xf32>
    %cst_32 = arith.constant dense<0.000000e+00> : vector<16xf32>
    %47 = vector.multi_reduction <add>, %46, %cst_32 [1] : vector<16x32xf32> to vector<16xf32>
    %48 = vector.shape_cast %47 : vector<16xf32> to vector<16x1xf32>
    %49 = arith.mulf %15, %37 : vector<16x32xf32>
    %50 = arith.mulf %46, %49 : vector<16x32xf32>
    %51 = arith.mulf %22, %37 : vector<16x32xf32>
    %52 = arith.mulf %46, %51 : vector<16x32xf32>
    %53 = arith.mulf %29, %37 : vector<16x32xf32>
    %54 = arith.mulf %46, %53 : vector<16x32xf32>
    %55 = arith.truncf %46 : vector<16x32xf32> to vector<16x32xbf16>
    %56 = arith.truncf %50 : vector<16x32xf32> to vector<16x32xbf16>
    %57 = arith.truncf %52 : vector<16x32xf32> to vector<16x32xbf16>
    %58 = arith.truncf %54 : vector<16x32xf32> to vector<16x32xbf16>
    %c0_33 = arith.constant 0 : index
    %c0_34 = arith.constant 0 : index
    %c0_35 = arith.constant 0 : index
    %c0_36 = arith.constant 0 : index
    %59 = vector.load %arg6[%c0_33, %c0_34, %c0_35, %c0_36] : memref<1x1x32x16xbf16, #tpu.memory_space<vmem>>, vector<1x1x32x16xbf16>
    %60 = vector.shape_cast %59 : vector<1x1x32x16xbf16> to vector<32x16xbf16>
    %cst_37 = arith.constant dense<0.000000e+00> : vector<16x16xf32>
    %61 = tpu.matmul %55, %60, %cst_37 {dimension_numbers = #tpu.dot_dimension_numbers<[1], [0], [0], [1], [0, 0, 1, 1], [], []>} : vector<16x32xbf16>, vector<32x16xbf16>, vector<16x16xf32> -> vector<16x16xf32>
    %c0_38 = arith.constant 0 : index
    %c0_39 = arith.constant 0 : index
    %c0_40 = arith.constant 0 : index
    %c0_41 = arith.constant 0 : index
    %c0_42 = arith.constant 0 : index
    %62 = vector.load %arg7[%c0_38, %c0_39, %c0_40, %c0_41, %c0_42] : memref<1x1x3x32x16xbf16, #tpu.memory_space<vmem>>, vector<1x1x1x32x16xbf16>
    %63 = vector.shape_cast %62 : vector<1x1x1x32x16xbf16> to vector<32x16xbf16>
    %cst_43 = arith.constant dense<0.000000e+00> : vector<16x16xf32>
    %64 = tpu.matmul %56, %63, %cst_43 {dimension_numbers = #tpu.dot_dimension_numbers<[1], [0], [0], [1], [0, 0, 1, 1], [], []>} : vector<16x32xbf16>, vector<32x16xbf16>, vector<16x16xf32> -> vector<16x16xf32>
    %65 = arith.addf %61, %64 : vector<16x16xf32>
    %c0_44 = arith.constant 0 : index
    %c0_45 = arith.constant 0 : index
    %c1_46 = arith.constant 1 : index
    %c0_47 = arith.constant 0 : index
    %c0_48 = arith.constant 0 : index
    %66 = vector.load %arg7[%c0_44, %c0_45, %c1_46, %c0_47, %c0_48] : memref<1x1x3x32x16xbf16, #tpu.memory_space<vmem>>, vector<1x1x1x32x16xbf16>
    %67 = vector.shape_cast %66 : vector<1x1x1x32x16xbf16> to vector<32x16xbf16>
    %cst_49 = arith.constant dense<0.000000e+00> : vector<16x16xf32>
    %68 = tpu.matmul %57, %67, %cst_49 {dimension_numbers = #tpu.dot_dimension_numbers<[1], [0], [0], [1], [0, 0, 1, 1], [], []>} : vector<16x32xbf16>, vector<32x16xbf16>, vector<16x16xf32> -> vector<16x16xf32>
    %69 = arith.addf %65, %68 : vector<16x16xf32>
    %c0_50 = arith.constant 0 : index
    %c0_51 = arith.constant 0 : index
    %c2_52 = arith.constant 2 : index
    %c0_53 = arith.constant 0 : index
    %c0_54 = arith.constant 0 : index
    %70 = vector.load %arg7[%c0_50, %c0_51, %c2_52, %c0_53, %c0_54] : memref<1x1x3x32x16xbf16, #tpu.memory_space<vmem>>, vector<1x1x1x32x16xbf16>
    %71 = vector.shape_cast %70 : vector<1x1x1x32x16xbf16> to vector<32x16xbf16>
    %cst_55 = arith.constant dense<0.000000e+00> : vector<16x16xf32>
    %72 = tpu.matmul %58, %71, %cst_55 {dimension_numbers = #tpu.dot_dimension_numbers<[1], [0], [0], [1], [0, 0, 1, 1], [], []>} : vector<16x32xbf16>, vector<32x16xbf16>, vector<16x16xf32> -> vector<16x16xf32>
    %73 = arith.addf %69, %72 : vector<16x16xf32>
    %cst_56 = arith.constant 1.000000e+00 : bf16
    %74 = vector.broadcast %cst_56 : bf16 to vector<32x1xbf16>
    %75 = math.sqrt %34 : vector<16x32xf32>
    %76 = vector.broadcast %3 : f32 to vector<16x32xf32>
    %77 = arith.mulf %76, %75 : vector<16x32xf32>
    %78 = math.sin %77 : vector<16x32xf32>
    %79 = math.cos %77 : vector<16x32xf32>
    %cst_57 = arith.constant 0.000000e+00 : f32
    %80 = vector.broadcast %cst_57 : f32 to vector<16x1xf32>
    %cst_58 = arith.constant dense<0.000000e+00> : vector<16x1xf32>
    %81 = tpu.matmul %56, %74, %cst_58 {dimension_numbers = #tpu.dot_dimension_numbers<[1], [0], [0], [1], [0, 0, 1, 1], [], []>} : vector<16x32xbf16>, vector<32x1xbf16>, vector<16x1xf32> -> vector<16x1xf32>
    %cst_59 = arith.constant dense<0.000000e+00> : vector<16x1xf32>
    %82 = tpu.matmul %57, %74, %cst_59 {dimension_numbers = #tpu.dot_dimension_numbers<[1], [0], [0], [1], [0, 0, 1, 1], [], []>} : vector<16x32xbf16>, vector<32x1xbf16>, vector<16x1xf32> -> vector<16x1xf32>
    %cst_60 = arith.constant dense<0.000000e+00> : vector<16x1xf32>
    %83 = tpu.matmul %58, %74, %cst_60 {dimension_numbers = #tpu.dot_dimension_numbers<[1], [0], [0], [1], [0, 0, 1, 1], [], []>} : vector<16x32xbf16>, vector<32x1xbf16>, vector<16x1xf32> -> vector<16x1xf32>
    %84 = arith.truncf %78 : vector<16x32xf32> to vector<16x32xbf16>
    %85 = arith.truncf %79 : vector<16x32xf32> to vector<16x32xbf16>
    %86 = arith.mulf %55, %84 : vector<16x32xbf16>
    %cst_61 = arith.constant dense<0.000000e+00> : vector<16x1xf32>
    %87 = tpu.matmul %86, %74, %cst_61 {dimension_numbers = #tpu.dot_dimension_numbers<[1], [0], [0], [1], [0, 0, 1, 1], [], []>} : vector<16x32xbf16>, vector<32x1xbf16>, vector<16x1xf32> -> vector<16x1xf32>
    %88 = arith.mulf %55, %85 : vector<16x32xbf16>
    %cst_62 = arith.constant dense<0.000000e+00> : vector<16x1xf32>
    %89 = tpu.matmul %88, %74, %cst_62 {dimension_numbers = #tpu.dot_dimension_numbers<[1], [0], [0], [1], [0, 0, 1, 1], [], []>} : vector<16x32xbf16>, vector<32x1xbf16>, vector<16x1xf32> -> vector<16x1xf32>
    %90 = arith.mulf %56, %84 : vector<16x32xbf16>
    %cst_63 = arith.constant dense<0.000000e+00> : vector<16x1xf32>
    %91 = tpu.matmul %90, %74, %cst_63 {dimension_numbers = #tpu.dot_dimension_numbers<[1], [0], [0], [1], [0, 0, 1, 1], [], []>} : vector<16x32xbf16>, vector<32x1xbf16>, vector<16x1xf32> -> vector<16x1xf32>
    %92 = arith.mulf %56, %85 : vector<16x32xbf16>
    %cst_64 = arith.constant dense<0.000000e+00> : vector<16x1xf32>
    %93 = tpu.matmul %92, %74, %cst_64 {dimension_numbers = #tpu.dot_dimension_numbers<[1], [0], [0], [1], [0, 0, 1, 1], [], []>} : vector<16x32xbf16>, vector<32x1xbf16>, vector<16x1xf32> -> vector<16x1xf32>
    %94 = arith.mulf %57, %84 : vector<16x32xbf16>
    %cst_65 = arith.constant dense<0.000000e+00> : vector<16x1xf32>
    %95 = tpu.matmul %94, %74, %cst_65 {dimension_numbers = #tpu.dot_dimension_numbers<[1], [0], [0], [1], [0, 0, 1, 1], [], []>} : vector<16x32xbf16>, vector<32x1xbf16>, vector<16x1xf32> -> vector<16x1xf32>
    %96 = arith.mulf %57, %85 : vector<16x32xbf16>
    %cst_66 = arith.constant dense<0.000000e+00> : vector<16x1xf32>
    %97 = tpu.matmul %96, %74, %cst_66 {dimension_numbers = #tpu.dot_dimension_numbers<[1], [0], [0], [1], [0, 0, 1, 1], [], []>} : vector<16x32xbf16>, vector<32x1xbf16>, vector<16x1xf32> -> vector<16x1xf32>
    %98 = arith.mulf %58, %84 : vector<16x32xbf16>
    %cst_67 = arith.constant dense<0.000000e+00> : vector<16x1xf32>
    %99 = tpu.matmul %98, %74, %cst_67 {dimension_numbers = #tpu.dot_dimension_numbers<[1], [0], [0], [1], [0, 0, 1, 1], [], []>} : vector<16x32xbf16>, vector<32x1xbf16>, vector<16x1xf32> -> vector<16x1xf32>
    %100 = arith.mulf %58, %85 : vector<16x32xbf16>
    %cst_68 = arith.constant dense<0.000000e+00> : vector<16x1xf32>
    %101 = tpu.matmul %100, %74, %cst_68 {dimension_numbers = #tpu.dot_dimension_numbers<[1], [0], [0], [1], [0, 0, 1, 1], [], []>} : vector<16x32xbf16>, vector<32x1xbf16>, vector<16x1xf32> -> vector<16x1xf32>
    %102 = arith.mulf %78, %79 : vector<16x32xf32>
    %103 = arith.mulf %79, %78 : vector<16x32xf32>
    %104 = arith.addf %102, %103 : vector<16x32xf32>
    %105 = arith.mulf %79, %79 : vector<16x32xf32>
    %106 = arith.mulf %78, %78 : vector<16x32xf32>
    %107 = arith.subf %105, %106 : vector<16x32xf32>
    %108 = arith.truncf %104 : vector<16x32xf32> to vector<16x32xbf16>
    %109 = arith.truncf %107 : vector<16x32xf32> to vector<16x32xbf16>
    %110 = arith.mulf %55, %108 : vector<16x32xbf16>
    %cst_69 = arith.constant dense<0.000000e+00> : vector<16x1xf32>
    %111 = tpu.matmul %110, %74, %cst_69 {dimension_numbers = #tpu.dot_dimension_numbers<[1], [0], [0], [1], [0, 0, 1, 1], [], []>} : vector<16x32xbf16>, vector<32x1xbf16>, vector<16x1xf32> -> vector<16x1xf32>
    %112 = arith.mulf %55, %109 : vector<16x32xbf16>
    %cst_70 = arith.constant dense<0.000000e+00> : vector<16x1xf32>
    %113 = tpu.matmul %112, %74, %cst_70 {dimension_numbers = #tpu.dot_dimension_numbers<[1], [0], [0], [1], [0, 0, 1, 1], [], []>} : vector<16x32xbf16>, vector<32x1xbf16>, vector<16x1xf32> -> vector<16x1xf32>
    %114 = arith.mulf %56, %108 : vector<16x32xbf16>
    %cst_71 = arith.constant dense<0.000000e+00> : vector<16x1xf32>
    %115 = tpu.matmul %114, %74, %cst_71 {dimension_numbers = #tpu.dot_dimension_numbers<[1], [0], [0], [1], [0, 0, 1, 1], [], []>} : vector<16x32xbf16>, vector<32x1xbf16>, vector<16x1xf32> -> vector<16x1xf32>
    %116 = arith.mulf %56, %109 : vector<16x32xbf16>
    %cst_72 = arith.constant dense<0.000000e+00> : vector<16x1xf32>
    %117 = tpu.matmul %116, %74, %cst_72 {dimension_numbers = #tpu.dot_dimension_numbers<[1], [0], [0], [1], [0, 0, 1, 1], [], []>} : vector<16x32xbf16>, vector<32x1xbf16>, vector<16x1xf32> -> vector<16x1xf32>
    %118 = arith.mulf %57, %108 : vector<16x32xbf16>
    %cst_73 = arith.constant dense<0.000000e+00> : vector<16x1xf32>
    %119 = tpu.matmul %118, %74, %cst_73 {dimension_numbers = #tpu.dot_dimension_numbers<[1], [0], [0], [1], [0, 0, 1, 1], [], []>} : vector<16x32xbf16>, vector<32x1xbf16>, vector<16x1xf32> -> vector<16x1xf32>
    %120 = arith.mulf %57, %109 : vector<16x32xbf16>
    %cst_74 = arith.constant dense<0.000000e+00> : vector<16x1xf32>
    %121 = tpu.matmul %120, %74, %cst_74 {dimension_numbers = #tpu.dot_dimension_numbers<[1], [0], [0], [1], [0, 0, 1, 1], [], []>} : vector<16x32xbf16>, vector<32x1xbf16>, vector<16x1xf32> -> vector<16x1xf32>
    %122 = arith.mulf %58, %108 : vector<16x32xbf16>
    %cst_75 = arith.constant dense<0.000000e+00> : vector<16x1xf32>
    %123 = tpu.matmul %122, %74, %cst_75 {dimension_numbers = #tpu.dot_dimension_numbers<[1], [0], [0], [1], [0, 0, 1, 1], [], []>} : vector<16x32xbf16>, vector<32x1xbf16>, vector<16x1xf32> -> vector<16x1xf32>
    %124 = arith.mulf %58, %109 : vector<16x32xbf16>
    %cst_76 = arith.constant dense<0.000000e+00> : vector<16x1xf32>
    %125 = tpu.matmul %124, %74, %cst_76 {dimension_numbers = #tpu.dot_dimension_numbers<[1], [0], [0], [1], [0, 0, 1, 1], [], []>} : vector<16x32xbf16>, vector<32x1xbf16>, vector<16x1xf32> -> vector<16x1xf32>
    %126 = arith.mulf %104, %79 : vector<16x32xf32>
    %127 = arith.mulf %107, %78 : vector<16x32xf32>
    %128 = arith.addf %126, %127 : vector<16x32xf32>
    %129 = arith.mulf %107, %79 : vector<16x32xf32>
    %130 = arith.mulf %104, %78 : vector<16x32xf32>
    %131 = arith.subf %129, %130 : vector<16x32xf32>
    %132 = arith.truncf %128 : vector<16x32xf32> to vector<16x32xbf16>
    %133 = arith.truncf %131 : vector<16x32xf32> to vector<16x32xbf16>
    %134 = arith.mulf %55, %132 : vector<16x32xbf16>
    %cst_77 = arith.constant dense<0.000000e+00> : vector<16x1xf32>
    %135 = tpu.matmul %134, %74, %cst_77 {dimension_numbers = #tpu.dot_dimension_numbers<[1], [0], [0], [1], [0, 0, 1, 1], [], []>} : vector<16x32xbf16>, vector<32x1xbf16>, vector<16x1xf32> -> vector<16x1xf32>
    %136 = arith.mulf %55, %133 : vector<16x32xbf16>
    %cst_78 = arith.constant dense<0.000000e+00> : vector<16x1xf32>
    %137 = tpu.matmul %136, %74, %cst_78 {dimension_numbers = #tpu.dot_dimension_numbers<[1], [0], [0], [1], [0, 0, 1, 1], [], []>} : vector<16x32xbf16>, vector<32x1xbf16>, vector<16x1xf32> -> vector<16x1xf32>
    %138 = arith.mulf %56, %132 : vector<16x32xbf16>
    %cst_79 = arith.constant dense<0.000000e+00> : vector<16x1xf32>
    %139 = tpu.matmul %138, %74, %cst_79 {dimension_numbers = #tpu.dot_dimension_numbers<[1], [0], [0], [1], [0, 0, 1, 1], [], []>} : vector<16x32xbf16>, vector<32x1xbf16>, vector<16x1xf32> -> vector<16x1xf32>
    %140 = arith.mulf %56, %133 : vector<16x32xbf16>
    %cst_80 = arith.constant dense<0.000000e+00> : vector<16x1xf32>
    %141 = tpu.matmul %140, %74, %cst_80 {dimension_numbers = #tpu.dot_dimension_numbers<[1], [0], [0], [1], [0, 0, 1, 1], [], []>} : vector<16x32xbf16>, vector<32x1xbf16>, vector<16x1xf32> -> vector<16x1xf32>
    %142 = arith.mulf %57, %132 : vector<16x32xbf16>
    %cst_81 = arith.constant dense<0.000000e+00> : vector<16x1xf32>
    %143 = tpu.matmul %142, %74, %cst_81 {dimension_numbers = #tpu.dot_dimension_numbers<[1], [0], [0], [1], [0, 0, 1, 1], [], []>} : vector<16x32xbf16>, vector<32x1xbf16>, vector<16x1xf32> -> vector<16x1xf32>
    %144 = arith.mulf %57, %133 : vector<16x32xbf16>
    %cst_82 = arith.constant dense<0.000000e+00> : vector<16x1xf32>
    %145 = tpu.matmul %144, %74, %cst_82 {dimension_numbers = #tpu.dot_dimension_numbers<[1], [0], [0], [1], [0, 0, 1, 1], [], []>} : vector<16x32xbf16>, vector<32x1xbf16>, vector<16x1xf32> -> vector<16x1xf32>
    %146 = arith.mulf %58, %132 : vector<16x32xbf16>
    %cst_83 = arith.constant dense<0.000000e+00> : vector<16x1xf32>
    %147 = tpu.matmul %146, %74, %cst_83 {dimension_numbers = #tpu.dot_dimension_numbers<[1], [0], [0], [1], [0, 0, 1, 1], [], []>} : vector<16x32xbf16>, vector<32x1xbf16>, vector<16x1xf32> -> vector<16x1xf32>
    %148 = arith.mulf %58, %133 : vector<16x32xbf16>
    %cst_84 = arith.constant dense<0.000000e+00> : vector<16x1xf32>
    %149 = tpu.matmul %148, %74, %cst_84 {dimension_numbers = #tpu.dot_dimension_numbers<[1], [0], [0], [1], [0, 0, 1, 1], [], []>} : vector<16x32xbf16>, vector<32x1xbf16>, vector<16x1xf32> -> vector<16x1xf32>
    %150 = arith.mulf %128, %79 : vector<16x32xf32>
    %151 = arith.mulf %131, %78 : vector<16x32xf32>
    %152 = arith.addf %150, %151 : vector<16x32xf32>
    %153 = arith.mulf %131, %79 : vector<16x32xf32>
    %154 = arith.mulf %128, %78 : vector<16x32xf32>
    %155 = arith.subf %153, %154 : vector<16x32xf32>
    %156 = arith.truncf %152 : vector<16x32xf32> to vector<16x32xbf16>
    %157 = arith.truncf %155 : vector<16x32xf32> to vector<16x32xbf16>
    %158 = arith.mulf %55, %156 : vector<16x32xbf16>
    %cst_85 = arith.constant dense<0.000000e+00> : vector<16x1xf32>
    %159 = tpu.matmul %158, %74, %cst_85 {dimension_numbers = #tpu.dot_dimension_numbers<[1], [0], [0], [1], [0, 0, 1, 1], [], []>} : vector<16x32xbf16>, vector<32x1xbf16>, vector<16x1xf32> -> vector<16x1xf32>
    %160 = arith.mulf %55, %157 : vector<16x32xbf16>
    %cst_86 = arith.constant dense<0.000000e+00> : vector<16x1xf32>
    %161 = tpu.matmul %160, %74, %cst_86 {dimension_numbers = #tpu.dot_dimension_numbers<[1], [0], [0], [1], [0, 0, 1, 1], [], []>} : vector<16x32xbf16>, vector<32x1xbf16>, vector<16x1xf32> -> vector<16x1xf32>
    %162 = arith.mulf %56, %156 : vector<16x32xbf16>
    %cst_87 = arith.constant dense<0.000000e+00> : vector<16x1xf32>
    %163 = tpu.matmul %162, %74, %cst_87 {dimension_numbers = #tpu.dot_dimension_numbers<[1], [0], [0], [1], [0, 0, 1, 1], [], []>} : vector<16x32xbf16>, vector<32x1xbf16>, vector<16x1xf32> -> vector<16x1xf32>
    %164 = arith.mulf %56, %157 : vector<16x32xbf16>
    %cst_88 = arith.constant dense<0.000000e+00> : vector<16x1xf32>
    %165 = tpu.matmul %164, %74, %cst_88 {dimension_numbers = #tpu.dot_dimension_numbers<[1], [0], [0], [1], [0, 0, 1, 1], [], []>} : vector<16x32xbf16>, vector<32x1xbf16>, vector<16x1xf32> -> vector<16x1xf32>
    %166 = arith.mulf %57, %156 : vector<16x32xbf16>
    %cst_89 = arith.constant dense<0.000000e+00> : vector<16x1xf32>
    %167 = tpu.matmul %166, %74, %cst_89 {dimension_numbers = #tpu.dot_dimension_numbers<[1], [0], [0], [1], [0, 0, 1, 1], [], []>} : vector<16x32xbf16>, vector<32x1xbf16>, vector<16x1xf32> -> vector<16x1xf32>
    %168 = arith.mulf %57, %157 : vector<16x32xbf16>
    %cst_90 = arith.constant dense<0.000000e+00> : vector<16x1xf32>
    %169 = tpu.matmul %168, %74, %cst_90 {dimension_numbers = #tpu.dot_dimension_numbers<[1], [0], [0], [1], [0, 0, 1, 1], [], []>} : vector<16x32xbf16>, vector<32x1xbf16>, vector<16x1xf32> -> vector<16x1xf32>
    %170 = arith.mulf %58, %156 : vector<16x32xbf16>
    %cst_91 = arith.constant dense<0.000000e+00> : vector<16x1xf32>
    %171 = tpu.matmul %170, %74, %cst_91 {dimension_numbers = #tpu.dot_dimension_numbers<[1], [0], [0], [1], [0, 0, 1, 1], [], []>} : vector<16x32xbf16>, vector<32x1xbf16>, vector<16x1xf32> -> vector<16x1xf32>
    %172 = arith.mulf %58, %157 : vector<16x32xbf16>
    %cst_92 = arith.constant dense<0.000000e+00> : vector<16x1xf32>
    %173 = tpu.matmul %172, %74, %cst_92 {dimension_numbers = #tpu.dot_dimension_numbers<[1], [0], [0], [1], [0, 0, 1, 1], [], []>} : vector<16x32xbf16>, vector<32x1xbf16>, vector<16x1xf32> -> vector<16x1xf32>
    %174 = arith.mulf %152, %79 : vector<16x32xf32>
    %175 = arith.mulf %155, %78 : vector<16x32xf32>
    %176 = arith.addf %174, %175 : vector<16x32xf32>
    %177 = arith.mulf %155, %79 : vector<16x32xf32>
    %178 = arith.mulf %152, %78 : vector<16x32xf32>
    %179 = arith.subf %177, %178 : vector<16x32xf32>
    %180 = arith.truncf %176 : vector<16x32xf32> to vector<16x32xbf16>
    %181 = arith.truncf %179 : vector<16x32xf32> to vector<16x32xbf16>
    %182 = arith.mulf %55, %180 : vector<16x32xbf16>
    %cst_93 = arith.constant dense<0.000000e+00> : vector<16x1xf32>
    %183 = tpu.matmul %182, %74, %cst_93 {dimension_numbers = #tpu.dot_dimension_numbers<[1], [0], [0], [1], [0, 0, 1, 1], [], []>} : vector<16x32xbf16>, vector<32x1xbf16>, vector<16x1xf32> -> vector<16x1xf32>
    %184 = arith.mulf %55, %181 : vector<16x32xbf16>
    %cst_94 = arith.constant dense<0.000000e+00> : vector<16x1xf32>
    %185 = tpu.matmul %184, %74, %cst_94 {dimension_numbers = #tpu.dot_dimension_numbers<[1], [0], [0], [1], [0, 0, 1, 1], [], []>} : vector<16x32xbf16>, vector<32x1xbf16>, vector<16x1xf32> -> vector<16x1xf32>
    %186 = arith.mulf %56, %180 : vector<16x32xbf16>
    %cst_95 = arith.constant dense<0.000000e+00> : vector<16x1xf32>
    %187 = tpu.matmul %186, %74, %cst_95 {dimension_numbers = #tpu.dot_dimension_numbers<[1], [0], [0], [1], [0, 0, 1, 1], [], []>} : vector<16x32xbf16>, vector<32x1xbf16>, vector<16x1xf32> -> vector<16x1xf32>
    %188 = arith.mulf %56, %181 : vector<16x32xbf16>
    %cst_96 = arith.constant dense<0.000000e+00> : vector<16x1xf32>
    %189 = tpu.matmul %188, %74, %cst_96 {dimension_numbers = #tpu.dot_dimension_numbers<[1], [0], [0], [1], [0, 0, 1, 1], [], []>} : vector<16x32xbf16>, vector<32x1xbf16>, vector<16x1xf32> -> vector<16x1xf32>
    %190 = arith.mulf %57, %180 : vector<16x32xbf16>
    %cst_97 = arith.constant dense<0.000000e+00> : vector<16x1xf32>
    %191 = tpu.matmul %190, %74, %cst_97 {dimension_numbers = #tpu.dot_dimension_numbers<[1], [0], [0], [1], [0, 0, 1, 1], [], []>} : vector<16x32xbf16>, vector<32x1xbf16>, vector<16x1xf32> -> vector<16x1xf32>
    %192 = arith.mulf %57, %181 : vector<16x32xbf16>
    %cst_98 = arith.constant dense<0.000000e+00> : vector<16x1xf32>
    %193 = tpu.matmul %192, %74, %cst_98 {dimension_numbers = #tpu.dot_dimension_numbers<[1], [0], [0], [1], [0, 0, 1, 1], [], []>} : vector<16x32xbf16>, vector<32x1xbf16>, vector<16x1xf32> -> vector<16x1xf32>
    %194 = arith.mulf %58, %180 : vector<16x32xbf16>
    %cst_99 = arith.constant dense<0.000000e+00> : vector<16x1xf32>
    %195 = tpu.matmul %194, %74, %cst_99 {dimension_numbers = #tpu.dot_dimension_numbers<[1], [0], [0], [1], [0, 0, 1, 1], [], []>} : vector<16x32xbf16>, vector<32x1xbf16>, vector<16x1xf32> -> vector<16x1xf32>
    %196 = arith.mulf %58, %181 : vector<16x32xbf16>
    %cst_100 = arith.constant dense<0.000000e+00> : vector<16x1xf32>
    %197 = tpu.matmul %196, %74, %cst_100 {dimension_numbers = #tpu.dot_dimension_numbers<[1], [0], [0], [1], [0, 0, 1, 1], [], []>} : vector<16x32xbf16>, vector<32x1xbf16>, vector<16x1xf32> -> vector<16x1xf32>
    %198 = arith.mulf %176, %79 : vector<16x32xf32>
    %199 = arith.mulf %179, %78 : vector<16x32xf32>
    %200 = arith.addf %198, %199 : vector<16x32xf32>
    %201 = arith.mulf %179, %79 : vector<16x32xf32>
    %202 = arith.mulf %176, %78 : vector<16x32xf32>
    %203 = arith.subf %201, %202 : vector<16x32xf32>
    %204 = arith.truncf %200 : vector<16x32xf32> to vector<16x32xbf16>
    %205 = arith.truncf %203 : vector<16x32xf32> to vector<16x32xbf16>
    %206 = arith.mulf %55, %204 : vector<16x32xbf16>
    %cst_101 = arith.constant dense<0.000000e+00> : vector<16x1xf32>
    %207 = tpu.matmul %206, %74, %cst_101 {dimension_numbers = #tpu.dot_dimension_numbers<[1], [0], [0], [1], [0, 0, 1, 1], [], []>} : vector<16x32xbf16>, vector<32x1xbf16>, vector<16x1xf32> -> vector<16x1xf32>
    %208 = arith.mulf %55, %205 : vector<16x32xbf16>
    %cst_102 = arith.constant dense<0.000000e+00> : vector<16x1xf32>
    %209 = tpu.matmul %208, %74, %cst_102 {dimension_numbers = #tpu.dot_dimension_numbers<[1], [0], [0], [1], [0, 0, 1, 1], [], []>} : vector<16x32xbf16>, vector<32x1xbf16>, vector<16x1xf32> -> vector<16x1xf32>
    %210 = arith.mulf %56, %204 : vector<16x32xbf16>
    %cst_103 = arith.constant dense<0.000000e+00> : vector<16x1xf32>
    %211 = tpu.matmul %210, %74, %cst_103 {dimension_numbers = #tpu.dot_dimension_numbers<[1], [0], [0], [1], [0, 0, 1, 1], [], []>} : vector<16x32xbf16>, vector<32x1xbf16>, vector<16x1xf32> -> vector<16x1xf32>
    %212 = arith.mulf %56, %205 : vector<16x32xbf16>
    %cst_104 = arith.constant dense<0.000000e+00> : vector<16x1xf32>
    %213 = tpu.matmul %212, %74, %cst_104 {dimension_numbers = #tpu.dot_dimension_numbers<[1], [0], [0], [1], [0, 0, 1, 1], [], []>} : vector<16x32xbf16>, vector<32x1xbf16>, vector<16x1xf32> -> vector<16x1xf32>
    %214 = arith.mulf %57, %204 : vector<16x32xbf16>
    %cst_105 = arith.constant dense<0.000000e+00> : vector<16x1xf32>
    %215 = tpu.matmul %214, %74, %cst_105 {dimension_numbers = #tpu.dot_dimension_numbers<[1], [0], [0], [1], [0, 0, 1, 1], [], []>} : vector<16x32xbf16>, vector<32x1xbf16>, vector<16x1xf32> -> vector<16x1xf32>
    %216 = arith.mulf %57, %205 : vector<16x32xbf16>
    %cst_106 = arith.constant dense<0.000000e+00> : vector<16x1xf32>
    %217 = tpu.matmul %216, %74, %cst_106 {dimension_numbers = #tpu.dot_dimension_numbers<[1], [0], [0], [1], [0, 0, 1, 1], [], []>} : vector<16x32xbf16>, vector<32x1xbf16>, vector<16x1xf32> -> vector<16x1xf32>
    %218 = arith.mulf %58, %204 : vector<16x32xbf16>
    %cst_107 = arith.constant dense<0.000000e+00> : vector<16x1xf32>
    %219 = tpu.matmul %218, %74, %cst_107 {dimension_numbers = #tpu.dot_dimension_numbers<[1], [0], [0], [1], [0, 0, 1, 1], [], []>} : vector<16x32xbf16>, vector<32x1xbf16>, vector<16x1xf32> -> vector<16x1xf32>
    %220 = arith.mulf %58, %205 : vector<16x32xbf16>
    %cst_108 = arith.constant dense<0.000000e+00> : vector<16x1xf32>
    %221 = tpu.matmul %220, %74, %cst_108 {dimension_numbers = #tpu.dot_dimension_numbers<[1], [0], [0], [1], [0, 0, 1, 1], [], []>} : vector<16x32xbf16>, vector<32x1xbf16>, vector<16x1xf32> -> vector<16x1xf32>
    %222 = arith.mulf %200, %79 : vector<16x32xf32>
    %223 = arith.mulf %203, %78 : vector<16x32xf32>
    %224 = arith.addf %222, %223 : vector<16x32xf32>
    %225 = arith.mulf %203, %79 : vector<16x32xf32>
    %226 = arith.mulf %200, %78 : vector<16x32xf32>
    %227 = arith.subf %225, %226 : vector<16x32xf32>
    %228 = arith.truncf %224 : vector<16x32xf32> to vector<16x32xbf16>
    %229 = arith.truncf %227 : vector<16x32xf32> to vector<16x32xbf16>
    %230 = arith.mulf %55, %228 : vector<16x32xbf16>
    %cst_109 = arith.constant dense<0.000000e+00> : vector<16x1xf32>
    %231 = tpu.matmul %230, %74, %cst_109 {dimension_numbers = #tpu.dot_dimension_numbers<[1], [0], [0], [1], [0, 0, 1, 1], [], []>} : vector<16x32xbf16>, vector<32x1xbf16>, vector<16x1xf32> -> vector<16x1xf32>
    %232 = arith.mulf %55, %229 : vector<16x32xbf16>
    %cst_110 = arith.constant dense<0.000000e+00> : vector<16x1xf32>
    %233 = tpu.matmul %232, %74, %cst_110 {dimension_numbers = #tpu.dot_dimension_numbers<[1], [0], [0], [1], [0, 0, 1, 1], [], []>} : vector<16x32xbf16>, vector<32x1xbf16>, vector<16x1xf32> -> vector<16x1xf32>
    %234 = arith.mulf %56, %228 : vector<16x32xbf16>
    %cst_111 = arith.constant dense<0.000000e+00> : vector<16x1xf32>
    %235 = tpu.matmul %234, %74, %cst_111 {dimension_numbers = #tpu.dot_dimension_numbers<[1], [0], [0], [1], [0, 0, 1, 1], [], []>} : vector<16x32xbf16>, vector<32x1xbf16>, vector<16x1xf32> -> vector<16x1xf32>
    %236 = arith.mulf %56, %229 : vector<16x32xbf16>
    %cst_112 = arith.constant dense<0.000000e+00> : vector<16x1xf32>
    %237 = tpu.matmul %236, %74, %cst_112 {dimension_numbers = #tpu.dot_dimension_numbers<[1], [0], [0], [1], [0, 0, 1, 1], [], []>} : vector<16x32xbf16>, vector<32x1xbf16>, vector<16x1xf32> -> vector<16x1xf32>
    %238 = arith.mulf %57, %228 : vector<16x32xbf16>
    %cst_113 = arith.constant dense<0.000000e+00> : vector<16x1xf32>
    %239 = tpu.matmul %238, %74, %cst_113 {dimension_numbers = #tpu.dot_dimension_numbers<[1], [0], [0], [1], [0, 0, 1, 1], [], []>} : vector<16x32xbf16>, vector<32x1xbf16>, vector<16x1xf32> -> vector<16x1xf32>
    %240 = arith.mulf %57, %229 : vector<16x32xbf16>
    %cst_114 = arith.constant dense<0.000000e+00> : vector<16x1xf32>
    %241 = tpu.matmul %240, %74, %cst_114 {dimension_numbers = #tpu.dot_dimension_numbers<[1], [0], [0], [1], [0, 0, 1, 1], [], []>} : vector<16x32xbf16>, vector<32x1xbf16>, vector<16x1xf32> -> vector<16x1xf32>
    %242 = arith.mulf %58, %228 : vector<16x32xbf16>
    %cst_115 = arith.constant dense<0.000000e+00> : vector<16x1xf32>
    %243 = tpu.matmul %242, %74, %cst_115 {dimension_numbers = #tpu.dot_dimension_numbers<[1], [0], [0], [1], [0, 0, 1, 1], [], []>} : vector<16x32xbf16>, vector<32x1xbf16>, vector<16x1xf32> -> vector<16x1xf32>
    %244 = arith.mulf %58, %229 : vector<16x32xbf16>
    %cst_116 = arith.constant dense<0.000000e+00> : vector<16x1xf32>
    %245 = tpu.matmul %244, %74, %cst_116 {dimension_numbers = #tpu.dot_dimension_numbers<[1], [0], [0], [1], [0, 0, 1, 1], [], []>} : vector<16x32xbf16>, vector<32x1xbf16>, vector<16x1xf32> -> vector<16x1xf32>
    %246 = tpu.concatenate %80, %87, %111, %135, %159, %183, %207, %231, %48, %89, %113, %137, %161, %185, %209, %233 in 1 : vector<16x1xf32>, vector<16x1xf32>, vector<16x1xf32>, vector<16x1xf32>, vector<16x1xf32>, vector<16x1xf32>, vector<16x1xf32>, vector<16x1xf32>, vector<16x1xf32>, vector<16x1xf32>, vector<16x1xf32>, vector<16x1xf32>, vector<16x1xf32>, vector<16x1xf32>, vector<16x1xf32>, vector<16x1xf32> -> vector<16x16xf32>
    %247 = tpu.concatenate %80, %91, %115, %139, %163, %187, %211, %235, %81, %93, %117, %141, %165, %189, %213, %237 in 1 : vector<16x1xf32>, vector<16x1xf32>, vector<16x1xf32>, vector<16x1xf32>, vector<16x1xf32>, vector<16x1xf32>, vector<16x1xf32>, vector<16x1xf32>, vector<16x1xf32>, vector<16x1xf32>, vector<16x1xf32>, vector<16x1xf32>, vector<16x1xf32>, vector<16x1xf32>, vector<16x1xf32>, vector<16x1xf32> -> vector<16x16xf32>
    %248 = tpu.concatenate %80, %95, %119, %143, %167, %191, %215, %239, %82, %97, %121, %145, %169, %193, %217, %241 in 1 : vector<16x1xf32>, vector<16x1xf32>, vector<16x1xf32>, vector<16x1xf32>, vector<16x1xf32>, vector<16x1xf32>, vector<16x1xf32>, vector<16x1xf32>, vector<16x1xf32>, vector<16x1xf32>, vector<16x1xf32>, vector<16x1xf32>, vector<16x1xf32>, vector<16x1xf32>, vector<16x1xf32>, vector<16x1xf32> -> vector<16x16xf32>
    %249 = tpu.concatenate %80, %99, %123, %147, %171, %195, %219, %243, %83, %101, %125, %149, %173, %197, %221, %245 in 1 : vector<16x1xf32>, vector<16x1xf32>, vector<16x1xf32>, vector<16x1xf32>, vector<16x1xf32>, vector<16x1xf32>, vector<16x1xf32>, vector<16x1xf32>, vector<16x1xf32>, vector<16x1xf32>, vector<16x1xf32>, vector<16x1xf32>, vector<16x1xf32>, vector<16x1xf32>, vector<16x1xf32>, vector<16x1xf32> -> vector<16x16xf32>
    %c0_117 = arith.constant 0 : index
    %c0_118 = arith.constant 0 : index
    %c0_119 = arith.constant 0 : index
    %250 = vector.load %arg10[%c0_117, %c0_118, %c0_119] : memref<1x16x4xf32, #tpu.memory_space<vmem>>, vector<1x16x4xf32>
    %251 = vector.shape_cast %250 : vector<1x16x4xf32> to vector<16x4xf32>
    %cst_120 = arith.constant dense<0.000000e+00> : vector<16x4xf32>
    %252 = tpu.matmul %246, %251, %cst_120 {dimension_numbers = #tpu.dot_dimension_numbers<[1], [0], [0], [1], [0, 0, 1, 1], [], []>} : vector<16x16xf32>, vector<16x4xf32>, vector<16x4xf32> -> vector<16x4xf32>
    %c0_121 = arith.constant 0 : index
    %c0_122 = arith.constant 0 : index
    %c0_123 = arith.constant 0 : index
    %253 = vector.load %arg11[%c0_121, %c0_122, %c0_123] : memref<1x16x4xf32, #tpu.memory_space<vmem>>, vector<1x16x4xf32>
    %254 = vector.shape_cast %253 : vector<1x16x4xf32> to vector<16x4xf32>
    %cst_124 = arith.constant dense<0.000000e+00> : vector<16x4xf32>
    %255 = tpu.matmul %247, %254, %cst_124 {dimension_numbers = #tpu.dot_dimension_numbers<[1], [0], [0], [1], [0, 0, 1, 1], [], []>} : vector<16x16xf32>, vector<16x4xf32>, vector<16x4xf32> -> vector<16x4xf32>
    %c0_125 = arith.constant 0 : index
    %c0_126 = arith.constant 0 : index
    %c0_127 = arith.constant 0 : index
    %256 = vector.load %arg11[%c0_125, %c0_126, %c0_127] : memref<1x16x4xf32, #tpu.memory_space<vmem>>, vector<1x16x4xf32>
    %257 = vector.shape_cast %256 : vector<1x16x4xf32> to vector<16x4xf32>
    %cst_128 = arith.constant dense<0.000000e+00> : vector<16x4xf32>
    %258 = tpu.matmul %248, %257, %cst_128 {dimension_numbers = #tpu.dot_dimension_numbers<[1], [0], [0], [1], [0, 0, 1, 1], [], []>} : vector<16x16xf32>, vector<16x4xf32>, vector<16x4xf32> -> vector<16x4xf32>
    %c0_129 = arith.constant 0 : index
    %c0_130 = arith.constant 0 : index
    %c0_131 = arith.constant 0 : index
    %259 = vector.load %arg11[%c0_129, %c0_130, %c0_131] : memref<1x16x4xf32, #tpu.memory_space<vmem>>, vector<1x16x4xf32>
    %260 = vector.shape_cast %259 : vector<1x16x4xf32> to vector<16x4xf32>
    %cst_132 = arith.constant dense<0.000000e+00> : vector<16x4xf32>
    %261 = tpu.matmul %249, %260, %cst_132 {dimension_numbers = #tpu.dot_dimension_numbers<[1], [0], [0], [1], [0, 0, 1, 1], [], []>} : vector<16x16xf32>, vector<16x4xf32>, vector<16x4xf32> -> vector<16x4xf32>
    %262 = tpu.concatenate %252, %255, %258, %261 in 1 : vector<16x4xf32>, vector<16x4xf32>, vector<16x4xf32>, vector<16x4xf32> -> vector<16x16xf32>
    %263 = tpu.reciprocal %48 {approx = true} : vector<16x1xf32> -> vector<16x1xf32>
    %264 = arith.addf %73, %262 : vector<16x16xf32>
    %265 = vector.broadcast %263 : vector<16x1xf32> to vector<16x16xf32>
    %266 = arith.mulf %264, %265 : vector<16x16xf32>
    %c0_133 = arith.constant 0 : index
    %c0_134 = arith.constant 0 : index
    %c0_135 = arith.constant 0 : index
    %c0_136 = arith.constant 0 : index
    %267 = vector.load %arg12[%c0_133, %c0_134, %c0_135, %c0_136] : memref<1x1x16x16xf32, #tpu.memory_space<vmem>>, vector<1x1x16x16xf32>
    %268 = vector.shape_cast %267 : vector<1x1x16x16xf32> to vector<16x16xf32>
    %269 = vector.shape_cast %266 : vector<16x16xf32> to vector<1x1x16x16xf32>
    tpu.vector_store %arg12[%c0_133, %c0_134, %c0_135, %c0_136], %269 {strides = array<i32>} : memref<1x1x16x16xf32, #tpu.memory_space<vmem>>, vector<1x1x16x16xf32>,
    return
  }
  func.func @transform_0(%arg0: i32, %arg1: i32, %arg2: i32) -> (i32, i32) {
    %c0_i32 = arith.constant 0 : i32
    %c0_i32_0 = arith.constant 0 : i32
    %c0_i32_1 = arith.constant 0 : i32
    return %c0_i32, %c0_i32_0 : i32, i32
  }
  func.func @transform_1(%arg0: i32, %arg1: i32, %arg2: i32) -> (i32, i32, i32, i32) {
    %c0_i32 = arith.constant 0 : i32
    %c0_i32_0 = arith.constant 0 : i32
    return %arg0, %arg1, %arg2, %c0_i32 : i32, i32, i32, i32
  }
  func.func @transform_2(%arg0: i32, %arg1: i32, %arg2: i32) -> (i32, i32, i32, i32) {
    %c0_i32 = arith.constant 0 : i32
    %c0_i32_0 = arith.constant 0 : i32
    %c0_i32_1 = arith.constant 0 : i32
    return %arg0, %arg1, %c0_i32, %c0_i32_0 : i32, i32, i32, i32
  }
  func.func @transform_3(%arg0: i32, %arg1: i32, %arg2: i32) -> (i32, i32, i32, i32) {
    %c0_i32 = arith.constant 0 : i32
    %c0_i32_0 = arith.constant 0 : i32
    %c0_i32_1 = arith.constant 0 : i32
    return %arg0, %arg1, %c0_i32, %c0_i32_0 : i32, i32, i32, i32
  }
  func.func @transform_4(%arg0: i32, %arg1: i32, %arg2: i32) -> (i32, i32, i32, i32, i32) {
    %c0_i32 = arith.constant 0 : i32
    %c0_i32_0 = arith.constant 0 : i32
    %c0_i32_1 = arith.constant 0 : i32
    %c0_i32_2 = arith.constant 0 : i32
    return %arg0, %arg1, %c0_i32, %c0_i32_0, %c0_i32_1 : i32, i32, i32, i32, i32
  }
  func.func @transform_5(%arg0: i32, %arg1: i32, %arg2: i32) -> (i32, i32, i32, i32) {
    %c0_i32 = arith.constant 0 : i32
    %c0_i32_0 = arith.constant 0 : i32
    %c0_i32_1 = arith.constant 0 : i32
    return %arg0, %c0_i32, %arg2, %c0_i32_0 : i32, i32, i32, i32
  }
  func.func @transform_6(%arg0: i32, %arg1: i32, %arg2: i32) -> (i32, i32, i32, i32) {
    %c0_i32 = arith.constant 0 : i32
    %c0_i32_0 = arith.constant 0 : i32
    %c0_i32_1 = arith.constant 0 : i32
    %c0_i32_2 = arith.constant 0 : i32
    return %arg0, %c0_i32, %c0_i32_0, %c0_i32_1 : i32, i32, i32, i32
  }
  func.func @transform_7(%arg0: i32, %arg1: i32, %arg2: i32) -> (i32, i32, i32) {
    %c0_i32 = arith.constant 0 : i32
    %c0_i32_0 = arith.constant 0 : i32
    %c0_i32_1 = arith.constant 0 : i32
    return %arg1, %c0_i32, %c0_i32_0 : i32, i32, i32
  }
  func.func @transform_8(%arg0: i32, %arg1: i32, %arg2: i32) -> (i32, i32, i32) {
    %c0_i32 = arith.constant 0 : i32
    %c0_i32_0 = arith.constant 0 : i32
    %c0_i32_1 = arith.constant 0 : i32
    return %arg1, %c0_i32, %c0_i32_0 : i32, i32, i32
  }
  func.func @transform_9(%arg0: i32, %arg1: i32, %arg2: i32) -> (i32, i32, i32, i32) {
    %c0_i32 = arith.constant 0 : i32
    %c0_i32_0 = arith.constant 0 : i32
    return %arg0, %arg1, %arg2, %c0_i32 : i32, i32, i32, i32
  }
}

</mosaic_0001>

<bundles_post_ra>
// kernel: tpu_custom_call.1
= control target key start
LH: loop header
LB: loop body
LE: loop exit
PB: predicated region body
PF: predicated region fallthrough
CT: control target
= control target key end

     0   :  { %s6283_s0 = inlined_call_operand.vmem [shape: f32[2,2], index: 0, kind: input, shape index: {}]   ;;  %s6284_s1 = inlined_call_operand.vmem [shape: f32[2,2,32,32], index: 1, kind: input, shape index: {}]   ;;  %s6285_s2 = inlined_call_operand.vmem [shape: f32[2,2,32,32], index: 2, kind: input, shape index: {}]   ;;  %s6286_s3 = inlined_call_operand.vmem [shape: bf16[2,2,32,16], index: 3, kind: input, shape index: {}]   ;;  %s6287_s4 = inlined_call_operand.vmem [shape: bf16[2,2,3,32,16], index: 4, kind: input, shape index: {}]   ;;  %s6288_s5 = inlined_call_operand.vmem [shape: f32[2,3,32,1], index: 5, kind: input, shape index: {}]   ;;  %s6289_s6 = inlined_call_operand.vmem [shape: f32[2,3,1,32], index: 6, kind: input, shape index: {}]   ;;  %s6290_s7 = inlined_call_operand.vmem [shape: f32[2,16,4], index: 7, kind: input, shape index: {}]   ;;  %s6291_s8 = inlined_call_operand.vmem [shape: f32[2,16,4], index: 8, kind: input, shape index: {}]   ;;  %s6292_s9 = inlined_call_operand.vmem [shape: f32[2,2,32,16], index: 9, kind: output, shape index: {}]  }
   0x1   :  { %6331 = sst [smem:[#allocation37_spill]] %s6283_s0 }
   0x2   :  { %6332 = sst [smem:[#allocation38_spill]] %s6292_s9 }
   0x3   :  { %14 = vsyncpa [#allocation3], 0  ;;  %s4427_s30 = smov 0   ;;  %s4429_s10 = smov 0  }
   0x4   :  { %s4431_s11 = smov 0   ;;  %s4433_s12 = smov 0  }
   0x5   :  { %s4435_s13 = smov 0   ;;  %s4437_s14 = smov 0  }
   0x6   :  { %s4439_s15 = smov 0   ;;  %s4441_s16 = smov 0  }
   0x7   :  { %s4443_s17 = smov 0  }
   0x8 LB: > { %6333 = sst [smem:[#allocation6_spill]] %s4343_s15  ;;  %s3954_s18 = sadd.s32 4294967295, %s4351_s17   ;;  %s4351_s17 = sphi %s4443_s17, %s20_s17   ;;  %s4347_s16 = sphi %s4441_s16, %s6451_s16   ;;  %s4343_s15 = sphi %s4439_s15, %s6444_s15   ;;  %s4339_s14 = sphi %s4437_s14, %s6450_s14   ;;  %s4335_s13 = sphi %s4435_s13, %s6449_s13   ;;  %s4331_s12 = sphi %s4433_s12, %s6442_s12   ;;  %s4327_s11 = sphi %s4431_s11, %s6448_s11   ;;  %s4323_s10 = sphi %s4429_s10, %s6447_s10   ;;  %s4319_s30 = sphi %s4427_s30, %s6446_s30  }
   0x9   : > { %s32_s19 = sadd.s32 1, %s4339_s14  ;;  %s35_s20 = sadd.s32 1, %s4343_s15 }
   0xa   : > { %p33_p0 = scmp.ge.s32.totalorder %s32_s19, 2  ;;  %s39_s21 = sadd.s32 1, %s4347_s16 }
   0xb   : > { %s183_s22 = sadd.s32 1, %s4323_s10  ;;  %p190_p1 = scmp.ne.s32.totalorder %s4323_s10, %s4319_s30 }
   0xc   : > { %s6453_s19 = smov (%p33_p0, %s32_s19), 0  ;;  %s6455_s20 = smov (!%p33_p0, %s35_s20), %s4343_s15 }
   0xd   : > { %6334 = sst [smem:[#allocation7_spill]] %s6453_s19  ;;  %s179_s23 = ssub.s32 %s4339_s14, %s6453_s19 }
   0xe   : > { %p37_p2 = scmp.ge.s32.totalorder %s6455_s20, 2  ;;  %p191_p3 = scmp.eq.s32.totalorder %s4351_s17, 0 }
   0xf   : > { %p3956_p4 = scmp.ge.s32.totalorder %s4351_s17, 1  ;;  %p315_p5 = scmp.lt.s32.totalorder %s4351_s17, 9 }
  0x10   : > { %s6457_s20 = smov (%p37_p2, %s6455_s20), 0  ;;  %s6459_s21 = smov (!%p37_p2, %s39_s21), %s4347_s16 }
  0x11   : > { %6335 = sst [smem:[#allocation8_spill]] %s6457_s20  ;;  %p4490_p6 = por %p191_p3, %p190_p1 }
  0x12   : > { %p4494_p7 = pnand %p3956_p4, %p315_p5  ;;  %p41_p8 = scmp.ge.s32.totalorder %s6459_s21, 2 }
  0x13   : > { %p4500_p10 = scmp.eq.s32.totalorder %s3954_s18, 0  ;;  %s6340_s0 = sld [smem:[#allocation37_spill]] }
  0x14   : > { %p4138_p9 = pneg %p4494_p7  ;;  %s6461_s21 = smov (%p41_p8, %s6459_s21), 0 }
  0x15   : > { %6339 = sst [smem:[#allocation9_spill]] %s6461_s21  ;;  %s178_s20 = ssub.s32 %s4347_s16, %s6461_s21 }
  0x16   : > { %p4139_p11 = pnand %p4500_p10, %p4138_p9  ;;  %s180_s19 = sor.u32 %s179_s23, %s178_s20 }
  0x17   : > { %p181_p12 = scmp.eq.s32.totalorder %s180_s19, 0  ;;  %s4353_s15 = smov [#allocation2]  }
  0x18   : > { %p3958_p13 = scmp.ge.s32.totalorder %s4351_s17, 8 }
  0x19   : > { %s327_s29 = sshll.u32 %s6340_s0, 4  ;;  %s328_s29 = int_to_ptr.vmem [resolvable:$true] %s327_s29 }
  0x1a   : > { %4141 = dma.vmem_to_smem (!%p4139_p11), %s328_s29, 32, %s4353_s15, [#allocation3]  }
  0x1b   : > { %s4514_s18 = scalar_select %p181_p12, %s4323_s10, %s183_s22  }
  0x1c   : > { %334 = sbr.rel (%p3958_p13) target bundleno = 47 (0x2f), region = 20 }
  0x21   : > { %390 = sbr.rel (!%p4490_p6) target bundleno = 47 (0x2f), region = 40  ;;  %s392_s27 = sand.u32 (%p4490_p6), 1, %s4323_s10  }
  0x22   : > { %s4128_s28 = smul.u32 (%p4490_p6), 48, %s392_s27  ;;  %s3959_s0 = sshll.u32 (%p4490_p6), %s4339_s14, 1 }
  0x23   : > { %s4129_s21 = smul.u32 (%p4490_p6), 12, %s4347_s16 }
  0x24   : > { %s394_s22 = scalar_lea.vmem (%p4490_p6), [#allocation4], %s4128_s28 }
  0x25   : > { %s397_s9 = sadd.s32 (%p4490_p6), %s4129_s21, %s3959_s0 }
  0x26   : > { %s3960_s20 = sshll.u32 %s397_s9, 3 }
  0x27   : > { %s399_s15 = scalar_lea.vmem %s6288_s5, %s3960_s20 }
  0x28   : > { %v438_v0 = vld [vmem:[%s399_s15] sm:$0xff]  ;;  %v440_v1 = vld [vmem:[%s399_s15 + $0x8] sm:$0xff] }
  0x29   : > { %v442_v2 = vld [vmem:[%s399_s15 + $0x20] sm:$0xff]  ;;  %439 = vst [vmem:[%s394_s22] sm:$0xff] %v438_v0  ;;  %v444_v3 = vld [vmem:[%s399_s15 + $0x28] sm:$0xff] }
  0x2a   : > { %441 = vst [vmem:[%s394_s22 + $0x8] sm:$0xff] %v440_v1  ;;  %v446_v4 = vld [vmem:[%s399_s15 + $0x40] sm:$0xff]  ;;  %v448_v5 = vld [vmem:[%s399_s15 + $0x48] sm:$0xff] }
  0x2b   : > { %443 = vst [vmem:[%s394_s22 + $0x10] sm:$0xff] %v442_v2 }
  0x2c   : > { %445 = vst [vmem:[%s394_s22 + $0x18] sm:$0xff] %v444_v3 }
  0x2d   : > { %447 = vst [vmem:[%s394_s22 + $0x20] sm:$0xff] %v446_v4 }
  0x2e   : > { %449 = vst [vmem:[%s394_s22 + $0x28] sm:$0xff] %v448_v5 }
  0x2f PF: > { %481 = sbr.rel (%p4494_p7) target bundleno = 1174 (0x496), region = 90 }
  0x34   : > { %4314 = dma.done.wait (%p4500_p10), [#allocation3], 32  }
  0x35   : > { %4316 = vsyncadd (%p4500_p10), [#allocation3], 4294967264  ;;  %s489_s0 = sand.u32 1, %s4319_s30  }
  0x36   : > { %s4130_s9 = smul.u32 48, %s489_s0 }
  0x38   : > { %s491_s21 = scalar_lea.vmem [#allocation4], %s4130_s9 }
  0x39   : > { %495 = sfence }
  0x3a   : > { %v3985_v6 = vld [vmem:[%s491_s21 + $0x10] sm:$0xff]  ;;  %v704_v7 = vld [vmem:[%s491_s21] sm:$0xff]  ;;  %p588_p0 = scmp.lt.s32.totalorder %s4335_s13, 1  ;;  %p590_p1 = scmp.lt.s32.totalorder %s4331_s12, 1  ;;  %v4354_v8 = vmov 0   ;;  %v3986_v10 = vld [vmem:[%s491_s21 + $0x18] sm:$0xff] }
  0x3b   : > { %4241 = vset.pattern.permute.xlu1 %v4354_v8  ;;  %4240 = vset.pattern.permute.xlu0 %v4354_v8  ;;  %s3963_s24 = sshll.u32 %s4327_s11, 1  ;;  %v3988_v9 = vld [vmem:[%s491_s21 + $0x20] sm:$0xff]  ;;  %v705_v11 = vld [vmem:[%s491_s21 + $0x8] sm:$0xff]  ;;  %vm674_vm0 = vcmask 261120   ;;  %s4371_s27 = smov 5  }
  0x3c   : > { %729 = vperm.xlu1 %4241, %v3985_v6   ;;  %709 = vperm.xlu0 %4240, %v704_v7   ;;  %s6463_s13 = smov (!%p588_p0, %s4335_s13), 1  ;;  %p592_p2 = scmp.lt.s32.totalorder %s3963_s24, 3  ;;  %v3989_v14 = vld [vmem:[%s491_s21 + $0x28] sm:$0xff] }
  0x3d   : > { %s4541_s30 = scalar_select %p590_p1, %s4331_s12, 1  ;;  %4242 = vset.pattern.permute.xlu2 %v4354_v8 }
  0x3e   : > { %s3965_s25 = sshll.u32 %s6463_s13, 3  ;;  %749 = vperm.xlu2 %4242, %v3988_v9   ;;  %s4133_s19 = smul.u32 3, %s6463_s13 }
  0x3f   : > { %s3964_s26 = sshll.u32 %s4541_s30, 2  ;;  %s6465_s24 = smov (!%p592_p2, %s3963_s24), 3 }
  0x40   : > { %s4546_s29 = sadd.s32 %s3965_s25, %s3964_s26  ;;  %s632_s22 = scalar_lea.vmem %s6289_s6, %s4133_s19 }
  0x41   : > { %s3969_s11 = sshll.u32 %s4546_s29, 3  ;;  %s595_s0 = sadd.s32 %s3964_s26, %s6465_s24  ;;  %v4245_v20 = vld [vmem:[%s632_s22 + $0x2] ss:$0 sm:$0xff]  ;;  %v4243_v21 = vld [vmem:[%s632_s22 + $0x1] ss:$0 sm:$0xff] }
  0x42   : > { %s609_s20 = scalar_lea.vmem %s6285_s2, %s3969_s11  ;;  %s4556_s9 = sadd.s32 %s3965_s25, %s595_s0  ;;  %v4244_v22 = vld [vmem:[%s632_s22] ss:$0 sm:$0xff] }
  0x43   : > { %v673_v12 = vld [vmem:[%s609_s20 + $0x18] sm:$0xff]  ;;  %v672_v13 = vld [vmem:[%s609_s20 + $0x10] sm:$0xff]  ;;  %v671_v15 = vld [vmem:[%s609_s20 + $0x8] sm:$0xff]  ;;  %s3966_s21 = sshll.u32 %s4556_s9, 3  ;;  %s659_s24 = sld [smem:[#allocation2 + %s4331_s12]] }
  0x44   : > { %693 = vmatpush.msra.mxu0 %v673_v12  ;;  %734 = vperm.xlu1 %4241, %v3986_v10   ;;  %v670_v16 = vld [vmem:[%s609_s20] sm:$0xff]  ;;  %s599_s28 = scalar_lea.vmem %s6284_s1, %s3966_s21  ;;  %s660_s25 = sshra.s32 %s4331_s12, 7 }
  0x45   : > { %714 = vperm.xlu0 %4240, %v705_v11   ;;  %v668_v17 = vld [vmem:[%s599_s28] sm:$0xff]  ;;  %v669_v18 = vld [vmem:[%s599_s28 + $0x8] sm:$0xff]  ;;  %s4118_s26 = sshll.u32 %s660_s25, 7  ;;  %s665_s19 = sand.u32 127, %s4331_s12 }
  0x46   : > { %694 = vmatpush.msra.mxu0 %v672_v13  ;;  %754 = vperm.xlu2 %4242, %v3989_v14   ;;  %s4119_s20 = sadd.s32 128, %s4118_s26  ;;  %s4132_s12 = smul.u32 24, %s6463_s13 }
  0x47   : > { %s666_s23 = sadd.s32 %s4119_s20, %s665_s19  ;;  %s4131_s22 = smul.u32 12, %s4541_s30 }
  0x48   : > { %695 = vmatpush.msra.mxu0 %v671_v15  ;;  %s4600_s15 = sld [smem:[#allocation2 + %s666_s23]]  ;;  %s3972_s11 = sshll.u32 %s4546_s29, 2 }
  0x49   : > { %v4579_v33 = vstv %s659_s24  ;;  %s625_s0 = sadd.s32 %s4132_s12, %s4131_s22  ;;  %s618_s20 = scalar_lea.vmem %s6286_s3, %s3972_s11 }
  0x4a   : > { %696 = vmatpush.msra.mxu0 %v670_v16  ;;  %s3973_s13 = sshll.u32 %s625_s0, 2  ;;  %s4362_s29 = smov 8  }
  0x4b   : > { %3983 = vmatmul.msk.f32.vlgmr.msra.gmra.mxu0 %vm674_vm0, %v668_v17  ;;  %s627_s24 = scalar_lea.vmem %s6287_s4, %s3973_s13  ;;  %s4363_s19 = smov 1  }
  0x4c   : > { %s4364_s23 = smov 9   ;;  %s4366_s12 = smov 10  }
  0x4d   : > { %s4367_s22 = smov 3   ;;  %s4368_s0 = smov 11  }
  0x4e   : > { %v1021_v1 = vstv %s4600_s15  ;;  %s4365_s15 = smov 2   ;;  %s4369_s13 = smov 12  }
  0x4f   : > { %s4370_s11 = smov 4   ;;  %s4372_s28 = smov 13  }
  0x50   : > { %s4374_s25 = smov 14   ;;  %s4375_s26 = smov 7  }
  0x53   : > { %3984 = vmatmul.msk.f32.gmra.mxu0 %vm674_vm0, %v669_v18 }
  0x98   : > { %v750_v19 = vpop.permute.xlu2 %749 }
  0x99   : > { %v4567_v23 = vsub.f32 %v750_v19, %v4245_v20 }
  0x9b   : > { %v768_v30 = vmul.f32 %v4567_v23, %v4567_v23 }
  0xa0   : > { %v755_v32 = vpop.permute.xlu2 %754 }
  0xa1   : > { %v4582_v36 = vsub.f32 %v755_v32, %v4245_v20 }
  0xa3   : > { %v769_v43 = vmul.f32 %v4582_v36, %v4582_v36 }
  0xae   : > { %v730_v24 = vpop.permute.xlu1 %729  ;;  %v710_v25 = vpop.permute.xlu0 %709 }
  0xaf   : > { %v4569_v26 = vsub.f32 %v730_v24, %v4243_v21  ;;  %v4571_v27 = vsub.f32 %v710_v25, %v4244_v22 }
  0xb1   : > { %v764_v28 = vmul.f32 %v4569_v26, %v4569_v26  ;;  %v762_v29 = vmul.f32 %v4571_v27, %v4571_v27 }
  0xb3   : > { %v766_v31 = vadd.f32 %v764_v28, %v762_v29 }
  0xb5   : > { %v770_v34 = vadd.f32 %v768_v30, %v766_v31 }
  0xb6   : > { %v735_v35 = vpop.permute.xlu1 %734 }
  0xb7   : > { %v773_v37 = vadd.f32 %v4579_v33, %v770_v34  ;;  %4246 = vrsqrt.f32 %v770_v34  ;;  %v715_v38 = vpop.permute.xlu0 %714  ;;  %v4585_v39 = vsub.f32 %v735_v35, %v4243_v21  ;;  %vm1004_vm4 = vcmp.eq.f32.partialorder %v770_v34, inf }
  0xb8   : > { %v4587_v40 = vsub.f32 %v715_v38, %v4244_v22  ;;  %v1007_v59 = vand.u32 2147483648, %v770_v34  ;;  %vm1006_vm5 = vcmp.eq.f32.partialorder %v770_v34, 0.0 }
  0xb9   : > { %4248 = vrsqrt.f32 %v773_v37  ;;  %v765_v41 = vmul.f32 %v4585_v39, %v4585_v39  ;;  %vm781_vm1 = vweird.f32 %v773_v37 }
  0xba   : > { %v763_v42 = vmul.f32 %v4587_v40, %v4587_v40 }
  0xbc   : > { %v767_v44 = vadd.f32 %v765_v41, %v763_v42 }
  0xbd   : > { %v4247_v45 = vpop.eup %4246 }
  0xbe   : > { %v998_v46 = vmul.f32 %v4247_v45, %v770_v34  ;;  %v4596_v47 = vadd.f32 %v769_v43, %v767_v44 }
  0xbf   : > { %v4249_v48 = vpop.eup %4248 }
  0xc0   : > { %v776_v49 = vmul.f32 %v4249_v48, %v773_v37  ;;  %v999_v50 = vmul.f32 %v4247_v45, %v998_v46  ;;  %v774_v51 = vadd.f32 %v4579_v33, %v4596_v47  ;;  %4250 = vrsqrt.f32 %v4596_v47 }
  0xc1   : > { %vm782_vm2 = vweird.f32 %v4249_v48  ;;  %vm1016_vm9 = vcmp.eq.f32.partialorder %v4596_v47, inf  ;;  %v1019_v28 = vand.u32 2147483648, %v4596_v47  ;;  %vm1018_vm10 = vcmp.eq.f32.partialorder %v4596_v47, 0.0 }
  0xc2   : > { %v777_v52 = vmul.f32 %v4249_v48, %v776_v49  ;;  %v1000_v53 = vmul.f32 0.5, %v999_v50  ;;  %4252 = vrsqrt.f32 %v774_v51  ;;  %vm783_vm3 = vmor %vm781_vm1, %vm782_vm2  ;;  %vm791_vm6 = vweird.f32 %v774_v51 }
  0xc3   : > { %v4355_v46 = vmov 683565275   ;;  %v4356_v49 = vmov 2475754826   ;;  %v4357_v50 = vmov 2131351028  }
  0xc4   : > { %v778_v54 = vmul.f32 0.5, %v777_v52  ;;  %v1001_v55 = vsub.f32 1.5, %v1000_v53  ;;  %v4359_v53 = vmov 920167782  }
  0xc6   : > { %v779_v56 = vsub.f32 1.5, %v778_v54  ;;  %v1002_v57 = vmul.f32 %v4247_v45, %v1001_v55  ;;  %v4251_v58 = vpop.eup %4250 }
  0xc7   : > { %v1010_v63 = vmul.f32 %v4251_v58, %v4596_v47 }
  0xc8   : > { %v4253_v60 = vpop.eup %4252  ;;  %v780_v61 = vmul.f32 %v4249_v48, %v779_v56  ;;  %v1003_v62 = vmul.f32 %v1002_v57, %v770_v34  ;;  %v4604_v0 = vpop.f32.mrf.mxu0 }
  0xc9   : > { %v786_v2 = vmul.f32 %v4253_v60, %v774_v51  ;;  %v799_v3 = vsel %vm674_vm0, %v4604_v0, -inf  ;;  %v1011_v6 = vmul.f32 %v4251_v58, %v1010_v63  ;;  %vm792_vm7 = vweird.f32 %v4253_v60 }
  0xca   : > { %v4609_v4 = vsel %vm783_vm3, %v4249_v48, %v780_v61  ;;  %v1005_v5 = vsel %vm1004_vm4, %v770_v34, %v1003_v62  ;;  %800 = vmax.xlane.f32.xlu0 %v799_v3  ;;  %vm793_vm8 = vmor %vm791_vm6, %vm792_vm7  ;;  %v4360_v62 = vmov 1326507024  }
  0xcb   : > { %v4613_v7 = vmul.f32 %v4609_v4, %v4567_v23  ;;  %v1008_v9 = vsel %vm1006_vm5, %v1007_v59, %v1005_v5  ;;  %v787_v10 = vmul.f32 %v4253_v60, %v786_v2  ;;  %v1012_v12 = vmul.f32 0.5, %v1011_v6 }
  0xcc   : > { %v4615_v11 = vmul.f32 %v1021_v1, %v1008_v9 }
  0xcd   : > { %v788_v13 = vmul.f32 0.5, %v787_v10  ;;  %v1013_v17 = vsub.f32 1.5, %v1012_v12 }
  0xce   : > { %v1024_v14 = vand.u32 2147483647, %v4615_v11  ;;  %v1027_v15 = vand.u32 2139095040, %v4615_v11 }
  0xcf   : > { %v789_v16 = vsub.f32 1.5, %v788_v13  ;;  %v1014_v22 = vmul.f32 %v4251_v58, %v1013_v17 }
  0xd0   : > { %v1028_v18 = vshrl.u32 %v1027_v15, 23  ;;  %v1031_v19 = vand.u32 8388607, %v1024_v14  ;;  %v4621_v20 = vpop.f32.mrf.mxu0 }
  0xd1   : > { %v790_v21 = vmul.f32 %v4253_v60, %v789_v16  ;;  %v802_v23 = vsel %vm674_vm0, %v4621_v20, -inf  ;;  %v1015_v30 = vmul.f32 %v1014_v22, %v4596_v47 }
  0xd2   : > { %v4035_v24 = vadd.s32 4294967169, %v1028_v18  ;;  %v1032_v25 = vor.u32 8388608, %v1031_v19  ;;  %803 = vmax.xlane.f32.xlu1 %v802_v23 }
  0xd3   : > { %v4627_v29 = vsel %vm793_vm8, %v4253_v60, %v790_v21  ;;  %v1017_v35 = vsel %vm1016_vm9, %v4596_v47, %v1015_v30  ;;  %v4358_v47 = vmov 2102212464  }
  0xd4   : > { %v1034_v31 = vadd.s32 1, %v4035_v24  ;;  %v4633_v32 = vmul.f32 %v4627_v29, %v4582_v36  ;;  %v4635_v34 = vshll.u32 %v1032_v25, 8  ;;  %v1020_v37 = vsel %vm1018_vm10, %v1019_v28, %v1017_v35 }
  0xd5   : > { %v4638_v41 = vmul.f32 %v1021_v1, %v1020_v37 }
  0xd6   : > { %vm1035_vm11 = vcmp.gt.s32.totalorder %v1034_v31, 0  ;;  %v1073_v44 = vand.u32 65535, %v4635_v34  ;;  %v1074_v18 = vshrl.u32 %v4635_v34, 16 }
  0xd7   : > { %v1036_v38 = vsel %vm1035_vm11, %v1034_v31, 0  ;;  %v1179_v55 = vand.u32 2147483647, %v4638_v41  ;;  %v1182_v56 = vand.u32 2139095040, %v4638_v41 }
  0xd8   : > { %v1037_v42 = vshrl.u32 %v1036_v38, 5  ;;  %v1038_v43 = vand.u32 31, %v1036_v38 }
  0xd9   : > { %v1183_v9 = vshrl.u32 %v1182_v56, 23  ;;  %v1186_v10 = vand.u32 8388607, %v1179_v55 }
  0xda   : > { %v1039_v45 = vsub.s32 32, %v1038_v43  ;;  %v1041_v48 = vshll.u32 %v4355_v46, %v1038_v43  ;;  %v1044_v36 = vshll.u32 %v4356_v49, %v1038_v43  ;;  %v1047_v51 = vshll.u32 %v4357_v50, %v1038_v43 }
  0xdb   : > { %v1050_v52 = vshll.u32 %v4358_v47, %v1038_v43  ;;  %v1053_v54 = vshll.u32 %v4359_v53, %v1038_v43  ;;  %vm1056_vm12 = vcmp.lt.s32.totalorder %v1037_v42, 1  ;;  %vm1058_vm13 = vcmp.lt.s32.totalorder %v1037_v42, 3 }
  0xdc   : > { %v1042_v57 = vshrl.u32 %v4356_v49, %v1039_v45  ;;  %v1045_v58 = vshrl.u32 %v4357_v50, %v1039_v45  ;;  %v1048_v59 = vshrl.u32 %v4358_v47, %v1039_v45  ;;  %v1040_v60 = vshrl.u32 %v4355_v46, %v1039_v45 }
  0xdd   : > { %v1051_v61 = vshrl.u32 %v4359_v53, %v1039_v45  ;;  %v1054_v63 = vshrl.u32 %v4360_v62, %v1039_v45  ;;  %vm1059_vm14 = vcmp.lt.s32.totalorder %v1037_v42, 4  ;;  %vm1057_vm15 = vcmp.lt.s32.totalorder %v1037_v42, 2 }
  0xde   : > { %v1043_v1 = vor.u32 %v1042_v57, %v1041_v48  ;;  %v1046_v2 = vor.u32 %v1045_v58, %v1044_v36  ;;  %v1049_v3 = vor.u32 %v1048_v59, %v1047_v51  ;;  %v4038_v19 = vadd.s32 4294967169, %v1183_v9 }
  0xdf   : > { %v1052_v5 = vor.u32 %v1051_v61, %v1050_v52  ;;  %v1055_v6 = vor.u32 %v1054_v63, %v1053_v54  ;;  %v1187_v30 = vor.u32 8388608, %v1186_v10 }
  0xe0   : > { %v1061_v12 = vsel %vm1059_vm14, %v1049_v3, 2102212464  ;;  %v1064_v13 = vsel %vm1056_vm12, %v1043_v1, %v1046_v2  ;;  %v1068_v15 = vsel %vm1056_vm12, %v1046_v2, %v1049_v3  ;;  %v1060_v21 = vsel %vm1056_vm12, %v1040_v60, %v1043_v1 }
  0xe1   : > { %v1065_v16 = vsel %vm1059_vm14, %v1052_v5, 920167782  ;;  %v1069_v17 = vsel %vm1059_vm14, %v1055_v6, 1326507024  ;;  %v1062_v22 = vsel %vm1058_vm13, %v1046_v2, %v1061_v12  ;;  %v1189_v31 = vadd.s32 1, %v4038_v19 }
  0xe2   : > { %v1066_v23 = vsel %vm1058_vm13, %v1049_v3, %v1065_v16  ;;  %v1070_v24 = vsel %vm1058_vm13, %v1052_v5, %v1069_v17  ;;  %v4666_v45 = vsel %vm1057_vm15, %v1060_v21, %v1062_v22  ;;  %v4668_v57 = vshll.u32 %v1187_v30, 8 }
  0xe3   : > { %v1067_v25 = vsel %vm1057_vm15, %v1064_v13, %v1066_v23  ;;  %v1071_v28 = vsel %vm1057_vm15, %v1068_v15, %v1070_v24  ;;  %vm1190_vm1 = vcmp.gt.s32.totalorder %v1189_v31, 0 }
  0xe4   : > { %v1075_v35 = vand.u32 65535, %v1071_v28  ;;  %v1076_v37 = vshrl.u32 %v1071_v28, 16  ;;  %v1097_v38 = vand.u32 65535, %v1067_v25  ;;  %v1098_v43 = vshrl.u32 %v1067_v25, 16 }
  0xe5   : > { %v1191_v6 = vsel %vm1190_vm1, %v1189_v31, 0 }
  0xe6   : > { %v1077_v48 = vmul.u32 %v1075_v35, %v1073_v44  ;;  %v1078_v36 = vmul.u32 %v1076_v37, %v1073_v44  ;;  %v1079_v51 = vmul.u32 %v1075_v35, %v1074_v18  ;;  %v1099_v52 = vmul.u32 %v1097_v38, %v1073_v44 }
  0xe7   : > { %v1100_v54 = vmul.u32 %v1098_v43, %v1073_v44  ;;  %v1101_v56 = vmul.u32 %v1097_v38, %v1074_v18  ;;  %v1080_v58 = vmul.u32 %v1076_v37, %v1074_v18  ;;  %v1102_v61 = vmul.u32 %v1098_v43, %v1074_v18 }
  0xe8   : > { %v1081_v59 = vshll.u32 %v1078_v36, 16  ;;  %v1083_v60 = vshll.u32 %v1079_v51, 16  ;;  %v1082_v63 = vshrl.u32 %v1078_v36, 16  ;;  %v1084_v1 = vshrl.u32 %v1079_v51, 16 }
  0xe9   : > { %v1103_v2 = vshll.u32 %v1100_v54, 16  ;;  %v1105_v3 = vshll.u32 %v1101_v56, 16  ;;  %v1104_v5 = vshrl.u32 %v1100_v54, 16  ;;  %v1106_v10 = vshrl.u32 %v1101_v56, 16 }
  0xea   : > { %vm1085_vm2 = vc.u32 %v1077_v48, %v1081_v59  ;;  %v1087_v42 = vadd.s32 %v1081_v59, %v1077_v48  ;;  %v1193_v15 = vand.u32 31, %v1191_v6  ;;  %v4674_v18 = vshrl.u32 %v1191_v6, 5 }
  0xeb   : > { %v1086_v9 = vsel %vm1085_vm2, 1, %v4354_v8  ;;  %vm1107_vm3 = vc.u32 %v1099_v52, %v1103_v2  ;;  %v1109_v44 = vadd.s32 %v1103_v2, %v1099_v52 }
  0xec   : > { %v1088_v12 = vadd.s32 %v1086_v9, %v1080_v58  ;;  %vm1089_vm4 = vc.u32 %v1087_v42, %v1083_v60  ;;  %v1108_v13 = vsel %vm1107_vm3, 1, %v4354_v8  ;;  %v4677_v22 = vsub.s32 32, %v1193_v15 }
  0xed   : > { %v1090_v16 = vsel %vm1089_vm4, 1, %v4354_v8  ;;  %v1110_v17 = vadd.s32 %v1108_v13, %v1102_v61  ;;  %vm1111_vm5 = vc.u32 %v1109_v44, %v1105_v3  ;;  %v1196_v23 = vshll.u32 %v4355_v46, %v1193_v15 }
  0xee   : > { %v1092_v19 = vadd.s32 %v1090_v16, %v1088_v12  ;;  %v1112_v21 = vsel %vm1111_vm5, 1, %v4354_v8  ;;  %v1199_v25 = vshll.u32 %v4356_v49, %v1193_v15  ;;  %v1202_v28 = vshll.u32 %v4357_v50, %v1193_v15 }
  0xef   : > { %v1114_v24 = vadd.s32 %v1112_v21, %v1110_v17  ;;  %v1205_v30 = vshll.u32 %v4358_v47, %v1193_v15  ;;  %v4683_v35 = vadd.s32 %v1109_v44, %v1105_v3  ;;  %v1197_v37 = vshrl.u32 %v4356_v49, %v4677_v22 }
  0xf0   : > { %v1093_v31 = vadd.s32 %v1092_v19, %v1082_v63  ;;  %v1200_v38 = vshrl.u32 %v4357_v50, %v4677_v22  ;;  %v1203_v48 = vshrl.u32 %v4358_v47, %v4677_v22  ;;  %v1206_v36 = vshrl.u32 %v4359_v53, %v4677_v22 }
  0xf1   : > { %v1115_v43 = vadd.s32 %v1114_v24, %v1104_v5  ;;  %v1208_v51 = vshll.u32 %v4359_v53, %v1193_v15  ;;  %v4696_v54 = vor.u32 %v1197_v37, %v1196_v23  ;;  %v1209_v49 = vshrl.u32 %v4360_v62, %v4677_v22 }
  0xf2   : > { %v4694_v52 = vadd.s32 %v1093_v31, %v1084_v1  ;;  %v4698_v56 = vor.u32 %v1200_v38, %v1199_v25  ;;  %v1204_v50 = vor.u32 %v1203_v48, %v1202_v28  ;;  %v1207_v59 = vor.u32 %v1206_v36, %v1205_v30 }
  0xf3   : > { %v1116_v58 = vadd.s32 %v1115_v43, %v1106_v10  ;;  %vm1211_vm6 = vcmp.lt.s32.totalorder %v4674_v18, 1  ;;  %v1210_v47 = vor.u32 %v1209_v49, %v1208_v51  ;;  %vm1212_vm8 = vcmp.lt.s32.totalorder %v4674_v18, 2 }
  0xf4   : > { %vm1119_vm7 = vc.u32 %v4694_v52, %v4683_v35  ;;  %vm1213_vm9 = vcmp.lt.s32.totalorder %v4674_v18, 3  ;;  %vm1214_vm10 = vcmp.lt.s32.totalorder %v4674_v18, 4  ;;  %v1117_v53 = vmul.u32 %v4635_v34, %v4666_v45 }
  0xf5   : > { %v1120_v60 = vadd.s32 1, %v1116_v58  ;;  %v1219_v62 = vsel %vm1211_vm6, %v4696_v54, %v4698_v56  ;;  %v1220_v61 = vsel %vm1214_vm10, %v1207_v59, 920167782  ;;  %v1223_v63 = vsel %vm1211_vm6, %v4698_v56, %v1204_v50 }
  0xf6   : > { %v1221_v2 = vsel %vm1213_vm9, %v1204_v50, %v1220_v61  ;;  %v1224_v3 = vsel %vm1214_vm10, %v1210_v47, 1326507024  ;;  %v1228_v34 = vand.u32 65535, %v4668_v57  ;;  %v1229_v9 = vshrl.u32 %v4668_v57, 16 }
  0xf7   : > { %v1121_v1 = vsel %vm1119_vm7, %v1120_v60, %v1116_v58  ;;  %v1222_v42 = vsel %vm1212_vm8, %v1219_v62, %v1221_v2  ;;  %v1225_v5 = vsel %vm1213_vm9, %v1207_v59, %v1224_v3  ;;  %v1195_v61 = vshrl.u32 %v4355_v46, %v4677_v22 }
  0xf8   : > { %v1122_v45 = vadd.s32 %v1121_v1, %v1117_v53  ;;  %v1226_v6 = vsel %vm1212_vm8, %v1223_v63, %v1225_v5  ;;  %v1252_v10 = vand.u32 65535, %v1222_v42  ;;  %v1253_v44 = vshrl.u32 %v1222_v42, 16 }
  0xf9   : > { %v1230_v13 = vand.u32 65535, %v1226_v6  ;;  %v1231_v15 = vshrl.u32 %v1226_v6, 16  ;;  %v1216_v1 = vsel %vm1214_vm10, %v1204_v50, 2102212464  ;;  %vm1026_vm3 = vcmp.lt.s32.totalorder %v4615_v11, 0 }
  0xfa   : > { %v1123_v12 = vadd.s32 536870912, %v1122_v45  ;;  %v1254_v16 = vmul.u32 %v1252_v10, %v1228_v34  ;;  %v1255_v17 = vmul.u32 %v1253_v44, %v1228_v34  ;;  %v1256_v19 = vmul.u32 %v1252_v10, %v1229_v9 }
  0xfb   : > { %v1232_v23 = vmul.u32 %v1230_v13, %v1228_v34  ;;  %v1233_v24 = vmul.u32 %v1231_v15, %v1228_v34  ;;  %v1234_v25 = vmul.u32 %v1230_v13, %v1229_v9  ;;  %v1257_v37 = vmul.u32 %v1253_v44, %v1229_v9 }
  0xfc   : > { %v4731_v21 = vshrl.u32 %v1123_v12, 30  ;;  %v1258_v28 = vshll.u32 %v1255_v17, 16  ;;  %v1235_v38 = vmul.u32 %v1231_v15, %v1229_v9  ;;  %v1260_v48 = vshll.u32 %v1256_v19, 16 }
  0xfd   : > { %v1236_v31 = vshll.u32 %v1233_v24, 16  ;;  %v1238_v43 = vshll.u32 %v1234_v25, 16  ;;  %v1237_v34 = vshrl.u32 %v1233_v24, 16  ;;  %v1259_v5 = vshrl.u32 %v1255_v17, 16 }
  0xfe   : > { %v1125_v30 = vshll.u32 %v4731_v21, 30  ;;  %vm1262_vm11 = vc.u32 %v1254_v16, %v1258_v28  ;;  %v1264_v59 = vadd.s32 %v1258_v28, %v1254_v16  ;;  %v1215_v9 = vsel %vm1211_vm6, %v1195_v61, %v4696_v54 }
  0xff   : > { %vm1240_vm12 = vc.u32 %v1232_v23, %v1236_v31  ;;  %v1242_v51 = vadd.s32 %v1236_v31, %v1232_v23  ;;  %v1263_v58 = vsel %vm1262_vm11, 1, %v4354_v8  ;;  %v1217_v46 = vsel %vm1213_vm9, %v4698_v56, %v1216_v1 }
 0x100   : > { %v1126_v36 = vsub.s32 %v1122_v45, %v1125_v30  ;;  %v1241_v49 = vsel %vm1240_vm12, 1, %v4354_v8  ;;  %v1265_v53 = vadd.s32 %v1263_v58, %v1257_v37  ;;  %vm1266_vm15 = vc.u32 %v1264_v59, %v1260_v48 }
 0x101   : > { %v1243_v60 = vadd.s32 %v1241_v49, %v1235_v38  ;;  %vm1244_vm14 = vc.u32 %v1242_v51, %v1238_v43  ;;  %v1267_v3 = vsel %vm1266_vm15, 1, %v4354_v8  ;;  %v1239_v22 = vshrl.u32 %v1234_v25, 16 }
 0x102   : > { %vm1127_vm13 = vcmp.lt.s32.totalorder %v1126_v36, 0  ;;  %v1128_v47 = vsub.s32 0, %v1126_v36  ;;  %v1245_v2 = vsel %vm1244_vm14, 1, %v4354_v8  ;;  %v1269_v6 = vadd.s32 %v1267_v3, %v1265_v53 }
 0x103   : > { %v1247_v45 = vadd.s32 %v1245_v2, %v1243_v60  ;;  %v1261_v50 = vshrl.u32 %v1256_v19, 16  ;;  %v1118_v8 = vadd.s32 %v4683_v35, %v4694_v52  ;;  %v1268_v15 = vadd.s32 %v1264_v59, %v1260_v48 }
 0x104   : > { %v1129_v62 = vsel %vm1127_vm13, %v1128_v47, %v1126_v36  ;;  %v1270_v44 = vadd.s32 %v1269_v6, %v1259_v5  ;;  %v1218_v54 = vsel %vm1212_vm8, %v1215_v9, %v1217_v46  ;;  %vm4759_vm4 = vcmp.le.f32.partialorder %v1024_v14, 0.7853982 }
 0x105   : > { %v1130_v63 = vclz %v1129_v62  ;;  %v1248_v10 = vadd.s32 %v1247_v45, %v1237_v34  ;;  %v1272_v19 = vmul.u32 %v4668_v57, %v1218_v54  ;;  %v1148_v9 = vsub.s32 4, %v4731_v21 }
 0x106   : > { %v1271_v23 = vadd.s32 %v1270_v44, %v1261_v50  ;;  %vm1181_vm7 = vcmp.lt.s32.totalorder %v4638_v41, 0  ;;  %vm4787_vm8 = vcmp.le.f32.partialorder %v1179_v55, 0.7853982  ;;  %v4120_v55 = vld [vmem:[%s618_s20] sm:$0xff]  ;;  %vm1167_vm15 = vweird.f32 %v4615_v11 }
 0x107   : > { %v4036_v42 = vadd.s32 4294967294, %v1130_v63  ;;  %v1249_v13 = vadd.s32 %v1248_v10, %v1239_v22 }
 0x108   : > { %v1275_v28 = vadd.s32 1, %v1271_v23 }
 0x109   : > { %vm4037_vm1 = vcmp.lt.s32.totalorder %v4036_v42, 0  ;;  %vm1274_vm2 = vc.u32 %v1249_v13, %v1268_v15  ;;  %v1273_v5 = vadd.s32 %v1268_v15, %v1249_v13 }
 0x10a   : > { %v1133_v12 = vsel %vm4037_vm1, 0, %v4036_v42  ;;  %v1276_v37 = vsel %vm1274_vm2, %v1275_v28, %v1271_v23 }
 0x10b   : > { %v1134_v16 = vsub.s32 32, %v1133_v12  ;;  %v1138_v17 = vsub.s32 4294967266, %v1133_v12  ;;  %v1135_v24 = vshll.u32 %v1126_v36, %v1133_v12  ;;  %v1277_v35 = vadd.s32 %v1276_v37, %v1272_v19 }
 0x10c   : > { %v1149_v12 = vsel %vm1026_vm3, %v1148_v9, %v4731_v21 }
 0x10d   : > { %v1136_v56 = vshrl.u32 %v1118_v8, %v1134_v16  ;;  %v1139_v25 = vadd.s32 127, %v1138_v17  ;;  %v1278_v38 = vadd.s32 536870912, %v1277_v35  ;;  %v1151_v15 = vsel %vm4759_vm4, 0, %v1149_v12 }
 0x10e   : > { %v1168_v28 = vadd.s32 3, %v1151_v15  ;;  %v6297_v12 = vmov 1065369472  }
 0x10f   : > { %v1137_v30 = vor.u32 %v1136_v56, %v1135_v24  ;;  %v1140_v31 = vshll.u32 %v1139_v25, 23  ;;  %v4753_v51 = vshrl.u32 %v1278_v38, 30 }
 0x110   : > { %v1169_v38 = vand.u32 3, %v1168_v28 }
 0x111   : > { %v1141_v52 = vor.u32 4788187, %v1140_v31  ;;  %v1144_v48 = vcvt.s32.f32 %v1137_v30  ;;  %v1280_v49 = vshll.u32 %v4753_v51, 30  ;;  %v1303_v37 = vsub.s32 4, %v4753_v51 }
 0x112   : > { %vm1171_vm9 = vcmp.eq.s32.totalorder %v1169_v38, 0  ;;  %vm1174_vm10 = vcmp.eq.s32.totalorder %v1169_v38, 2  ;;  %vm1170_vm12 = vcmp.lt.s32.totalorder %v1169_v38, 2 }
 0x113   : > { %v1142_v43 = vand.u32 2147483647, %v1141_v52  ;;  %v1281_v36 = vsub.s32 %v1277_v35, %v1280_v49  ;;  %v4127_v35 = vld [vmem:[%s627_s24 + $0x28] sm:$0xff]  ;;  %v4125_v49 = vld [vmem:[%s627_s24 + $0x18] sm:$0xff] }
 0x114   : > { %v4121_v52 = vld [vmem:[%s618_s20 + $0x8] sm:$0xff]  ;;  %987 = vmatpush.bf16.msrb.mxu0 %v4127_v35  ;;  %946 = vmatpush.bf16.msra.mxu3 %v4125_v49  ;;  %s4376_s20 = smov 15  }
 0x115   : > { %v1145_v18 = vmul.f32 %v1144_v48, %v1142_v43  ;;  %vm1282_vm5 = vcmp.lt.s32.totalorder %v1281_v36, 0  ;;  %v1283_v60 = vsub.s32 0, %v1281_v36  ;;  %907 = vmatpush.bf16.msra.mxu2 %v4121_v52 }
 0x117   : > { %v1146_v58 = vxor.u32 2147483648, %v1145_v18  ;;  %v1284_v62 = vsel %vm1282_vm5, %v1283_v60, %v1281_v36  ;;  %v4122_v60 = vld [vmem:[%s627_s24] sm:$0xff] }
 0x118   : > { %v1285_v1 = vclz %v1284_v62 }
 0x119   : > { %v1147_v59 = vsel %vm1026_vm3, %v1146_v58, %v1145_v18  ;;  %v4123_v18 = vld [vmem:[%s627_s24 + $0x8] sm:$0xff]  ;;  %908 = vmatpush.bf16.msra.mxu2 %v4120_v55 }
 0x11a   : > { %v1150_v47 = vsel %vm4759_vm4, %v4615_v11, %v1147_v59  ;;  %v4039_v2 = vadd.s32 4294967294, %v1285_v1  ;;  %v4126_v59 = vld [vmem:[%s627_s24 + $0x20] sm:$0xff]  ;;  %873 = vmatpush.bf16.msra.mxu1 %v4123_v18 }
 0x11b   : > { %v1152_v53 = vmul.f32 %v1150_v47, %v1150_v47  ;;  %988 = vmatpush.bf16.msrb.mxu0 %v4126_v59 }
 0x11c   : > { %vm4040_vm6 = vcmp.lt.s32.totalorder %v4039_v2, 0 }
 0x11d   : > { %v1153_v61 = vmul.f32 -0.001358992, %v1152_v53  ;;  %v1160_v63 = vmul.f32 -0.00019511016, %v1152_v53  ;;  %v1288_v45 = vsel %vm4040_vm6, 0, %v4039_v2  ;;  %1662 = vmatpush.bf16.msrb.mxu2 %v6297_v12 }
 0x11e   : > { %v1289_v6 = vsub.s32 32, %v1288_v45  ;;  %v1293_v46 = vsub.s32 4294967266, %v1288_v45  ;;  %v1290_v50 = vshll.u32 %v1281_v36, %v1288_v45  ;;  %v1478_v36 = vand.u32 3, %v1151_v15  ;;  %874 = vmatpush.bf16.msra.mxu1 %v4122_v60 }
 0x11f   : > { %v1161_v14 = vadd.f32 0.008332121, %v1160_v63  ;;  %v1154_v3 = vadd.f32 0.041655596, %v1153_v61  ;;  %v1304_v61 = vsel %vm1181_vm7, %v1303_v37, %v4753_v51  ;;  %1704 = vmatpush.bf16.msra.mxu0 %v6297_v12 }
 0x120   : > { %v1291_v10 = vshrl.u32 %v1273_v5, %v1289_v6  ;;  %v1294_v44 = vadd.s32 127, %v1293_v46  ;;  %vm1480_vm11 = vcmp.eq.s32.totalorder %v1478_v36, 0  ;;  %vm1479_vm13 = vcmp.lt.s32.totalorder %v1478_v36, 2 }
 0x121   : > { %v1162_v34 = vmul.f32 %v1161_v14, %v1152_v53  ;;  %v1155_v22 = vmul.f32 %v1154_v3, %v1152_v53  ;;  %v1306_v3 = vsel %vm4787_vm8, 0, %v1304_v61  ;;  %vm1483_vm14 = vcmp.eq.s32.totalorder %v1478_v36, 2  ;;  %1663 = vmatpush.bf16.msrb.mxu2 %v6297_v12 }
 0x122   : > { %v1292_v16 = vor.u32 %v1291_v10, %v1290_v50  ;;  %v1295_v17 = vshll.u32 %v1294_v44, 23  ;;  %1648 = vmatpush.bf16.msrb.mxu1 %v6297_v12  ;;  %v1632_v15 = vand.u32 3, %v1306_v3  ;;  %v796_v61 = vmul.f32 %v4627_v29, %v4579_v33 }
 0x123   : > { %v1163_v42 = vadd.f32 -0.16666654, %v1162_v34  ;;  %v1156_v54 = vadd.f32 -0.4999988, %v1155_v22  ;;  %v1323_v22 = vadd.s32 3, %v1306_v3  ;;  %1705 = vmatpush.bf16.msra.mxu0 %v6297_v12 }
 0x124   : > { %v1296_v13 = vor.u32 4788187, %v1295_v17  ;;  %v1299_v56 = vcvt.s32.f32 %v1292_v16  ;;  %vm1633_vm2 = vcmp.lt.s32.totalorder %v1632_v15, 2  ;;  %vm1634_vm5 = vcmp.eq.s32.totalorder %v1632_v15, 0 }
 0x125   : > { %v1164_v8 = vmul.f32 %v1163_v42, %v1152_v53  ;;  %v1157_v25 = vmul.f32 %v1156_v54, %v1152_v53  ;;  %v4124_v53 = vld [vmem:[%s627_s24 + $0x10] sm:$0xff]  ;;  %v1324_v11 = vand.u32 3, %v1323_v22  ;;  %vm1637_vm6 = vcmp.eq.s32.totalorder %v1632_v15, 2  ;;  %s4373_s24 = smov 6  }
 0x126   : > { %v1297_v24 = vand.u32 2147483647, %v1296_v13  ;;  %947 = vmatpush.bf16.msra.mxu3 %v4124_v53  ;;  %1649 = vmatpush.bf16.msrb.mxu1 %v6297_v12 }
 0x127   : > { %v1165_v23 = vadd.f32 1.0, %v1164_v8  ;;  %v1158_v31 = vadd.f32 1.0, %v1157_v25  ;;  %vm1325_vm1 = vcmp.lt.s32.totalorder %v1324_v11, 2  ;;  %vm1326_vm3 = vcmp.eq.s32.totalorder %v1324_v11, 0 }
 0x128   : > { %v1300_v19 = vmul.f32 %v1299_v56, %v1297_v24  ;;  %vm1329_vm4 = vcmp.eq.s32.totalorder %v1324_v11, 2 }
 0x129   : > { %v1166_v21 = vmul.f32 %v1165_v23, %v1150_v47  ;;  %v1175_v62 = vxor.u32 2147483648, %v1158_v31 }
 0x12a   : > { %v1301_v30 = vxor.u32 2147483648, %v1300_v19  ;;  %1676 = vmatpush.bf16.msrb.mxu3 %v6297_v12 }
 0x12b   : > { %v1172_v58 = vxor.u32 2147483648, %v1166_v21  ;;  %v1176_v42 = vsel %vm1174_vm10, %v1175_v62, %v1166_v21  ;;  %v1485_v5 = vsel %vm1483_vm14, %v1175_v62, %v1166_v21  ;;  %vm3059_vm10 = vcmask 31744  }
 0x12c   : > { %v1302_v48 = vsel %vm1181_vm7, %v1301_v30, %v1300_v19  ;;  %v795_v30 = vmul.f32 %v4609_v4, %v4579_v33  ;;  %vm1322_vm7 = vweird.f32 %v4638_v41  ;;  %vm3071_vm14 = vcmask 64512  }
 0x12d   : > { %v1305_v57 = vsel %vm4787_vm8, %v4638_v41, %v1302_v48  ;;  %v1173_v14 = vsel %vm1171_vm9, %v1158_v31, %v1172_v58  ;;  %v1482_v2 = vsel %vm1480_vm11, %v1158_v31, %v1172_v58  ;;  %v819_v41 = vmul.f32 %v4609_v4, %v4571_v27 }
 0x12e   : > { %v1307_v47 = vmul.f32 %v1305_v57, %v1305_v57  ;;  %v1177_v51 = vsel %vm1170_vm12, %v1173_v14, %v1176_v42  ;;  %v1486_v46 = vsel %vm1479_vm13, %v1482_v2, %v1485_v5  ;;  %1677 = vmatpush.bf16.msrb.mxu3 %v6297_v12  ;;  %v824_v5 = vmul.f32 %v4627_v29, %v4585_v39 }
 0x12f   : > { %v4802_v44 = vsel %vm1167_vm15, nan, %v1177_v51  ;;  %v4806_v16 = vsel %vm1167_vm15, nan, %v1486_v46  ;;  %v820_v51 = vmul.f32 %v4627_v29, %v4587_v40  ;;  %vm3050_vm8 = vcmask 7168  }
 0x130   : > { %v1308_v63 = vmul.f32 -0.001358992, %v1307_v47  ;;  %v1315_v1 = vmul.f32 -0.00019511016, %v1307_v47  ;;  %v1860_v25 = vmul.f32 %v4806_v16, %v4802_v44  ;;  %v1864_v28 = vmul.f32 %v4806_v16, %v4806_v16 }
 0x131   : > { %v1684_v2 = vpack.c.bf16 %v4802_v44, %v4802_v44  ;;  %v1686_v46 = vpack.c.bf16 %v4806_v16, %v4806_v16  ;;  %vm3056_vm9 = vcmask 23552   ;;  %vm3062_vm11 = vcmask 39936  }
 0x132   : > { %v1309_v34 = vadd.f32 0.041655596, %v1308_v63  ;;  %v1316_v45 = vadd.f32 0.008332121, %v1315_v1  ;;  %v4823_v52 = vadd.f32 %v1860_v25, %v1860_v25  ;;  %v823_v1 = vmul.f32 %v4609_v4, %v4569_v26 }
 0x133   : > { %vm3065_vm12 = vcmask 48128   ;;  %vm3068_vm13 = vcmask 56320   ;;  %vm3074_vm15 = vcmask 72704  }
 0x134   : > { %v1310_v6 = vmul.f32 %v1309_v34, %v1307_v47  ;;  %v1317_v9 = vmul.f32 %v1316_v45, %v1307_v47  ;;  %v2038_v60 = vmul.f32 %v4823_v52, %v4806_v16  ;;  %v2046_v45 = vmul.f32 %v4823_v52, %v4802_v44 }
 0x135   : > { %v1870_v22 = vpack.c.bf16 %v4823_v52, %v4823_v52 }
 0x136   : > { %v1311_v10 = vadd.f32 -0.4999988, %v1310_v6  ;;  %v1318_v50 = vadd.f32 -0.16666654, %v1317_v9  ;;  %v4867_v9 = vunpack.c.l.bf16 %v1684_v2 }
 0x138   : > { %v1312_v17 = vmul.f32 %v1311_v10, %v1307_v47  ;;  %v1319_v54 = vmul.f32 %v1318_v50, %v1307_v47 }
 0x13a   : > { %v1313_v23 = vadd.f32 1.0, %v1312_v17  ;;  %v1320_v24 = vadd.f32 1.0, %v1319_v54 }
 0x13c   : > { %v1321_v19 = vmul.f32 %v1320_v24, %v1305_v57  ;;  %v1330_v21 = vxor.u32 2147483648, %v1313_v23  ;;  %v797_v57 = vmul.f32 %v795_v30, %v4609_v4 }
 0x13d   : > { %v801_v8 = vpop.xlane.xlu0 %800 }
 0x13e   : > { %v805_v13 = vsub.f32 %v4604_v0, %v801_v8  ;;  %v1866_v0 = vmul.f32 %v4802_v44, %v4802_v44  ;;  %v1327_v31 = vxor.u32 2147483648, %v1321_v19  ;;  %v1331_v37 = vsel %vm1329_vm4, %v1330_v21, %v1321_v19 }
 0x13f   : > { %v1639_v18 = vsel %vm1637_vm6, %v1330_v21, %v1321_v19  ;;  %vm3086_vm4 = vcmask 105472   ;;  %vm3092_vm6 = vcmask 121856  }
 0x140   : > { %v807_v56 = vmul.f32 1.442695, %v805_v13  ;;  %v4825_v38 = vsub.f32 %v1864_v28, %v1866_v0  ;;  %v1328_v43 = vsel %vm1326_vm3, %v1313_v23, %v1327_v31  ;;  %v1636_v48 = vsel %vm1634_vm5, %v1313_v23, %v1327_v31 }
 0x141   : > { %v1332_v58 = vsel %vm1325_vm1, %v1328_v43, %v1331_v37  ;;  %v1640_v36 = vsel %vm1633_vm2, %v1636_v48, %v1639_v18  ;;  %vm3077_vm1 = vcmask 80896   ;;  %vm3080_vm2 = vcmask 89088  }
 0x142   : > { %4254 = vpow2.f32 %v807_v56  ;;  %v2040_v53 = vmul.f32 %v4825_v38, %v4802_v44  ;;  %v4836_v62 = vsel %vm1322_vm7, nan, %v1332_v58  ;;  %v2044_v33 = vmul.f32 %v4825_v38, %v4806_v16 }
 0x143   : > { %v1867_v4 = vmul.f32 %v4836_v62, %v4836_v62  ;;  %v1872_v10 = vpack.c.bf16 %v4825_v38, %v4825_v38  ;;  %v1685_v28 = vpack.c.bf16 %v4836_v62, %v4836_v62  ;;  %vm3083_vm3 = vcmask 97280  }
 0x144   : > { %v4852_v34 = vadd.f32 %v2040_v53, %v2038_v60  ;;  %v4877_v17 = vsub.f32 %v2044_v33, %v2046_v45  ;;  %vm3089_vm5 = vcmask 113664  }
 0x145   : > { %v804_v35 = vpop.xlane.xlu1 %803 }
 0x146   : > { %v806_v49 = vsub.f32 %v4621_v20, %v804_v35  ;;  %v4838_v20 = vsel %vm1322_vm7, nan, %v1640_v36  ;;  %v2050_v40 = vpack.c.bf16 %v4852_v34, %v4852_v34  ;;  %v2218_v0 = vmul.f32 %v4852_v34, %v4806_v16 }
 0x147   : > { %v1861_v3 = vmul.f32 %v4838_v20, %v4836_v62  ;;  %v1865_v26 = vmul.f32 %v4838_v20, %v4838_v20  ;;  %vm3547_vm7 = vcmask 130048  }
 0x148   : > { %v4255_v59 = vpop.eup %4254  ;;  %v809_v47 = vmul.f32 1.442695, %v806_v49 }
 0x149   : > { %v811_v55 = vmul.f32 %v4255_v59, %v797_v57  ;;  %v4881_v54 = vadd.f32 %v1861_v3, %v1861_v3  ;;  %v4883_v13 = vsub.f32 %v1865_v26, %v1867_v4  ;;  %v2224_v26 = vmul.f32 %v4877_v17, %v4806_v16 }
 0x14a   : > { %4256 = vpow2.f32 %v809_v47 }
 0x14b   : > { %v813_v63 = vsel %vm674_vm0, %v811_v55, 0.0  ;;  %v829_v14 = vmul.f32 %v4613_v7, %v811_v55  ;;  %v821_v27 = vmul.f32 %v819_v41, %v811_v55  ;;  %v825_v42 = vmul.f32 %v823_v1, %v811_v55 }
 0x14c   : > { %814 = vadd.xlane.f32.xlu2 %v813_v63  ;;  %v798_v7 = vmul.f32 %v796_v61, %v4627_v29  ;;  %v831_v8 = vpack.c.bf16 %v811_v55, %v811_v55  ;;  %v2039_v48 = vmul.f32 %v4881_v54, %v4838_v20  ;;  %v2041_v58 = vmul.f32 %v4883_v13, %v4836_v62 }
 0x14d   : > { %v4879_v39 = vpack.c.bf16 %v821_v27, %v821_v27  ;;  %v835_v29 = vpack.c.bf16 %v825_v42, %v825_v42  ;;  %v837_v25 = vpack.c.bf16 %v829_v14, %v829_v14  ;;  %v4914_v41 = vunpack.c.l.bf16 %v1685_v28 }
 0x14e   : > { %v883_v19 = vunpack.c.l.b16 %v831_v8  ;;  %v2052_v1 = vpack.c.bf16 %v4877_v17, %v4877_v17  ;;  %v2220_v14 = vmul.f32 %v4877_v17, %v4802_v44  ;;  %v4927_v3 = vadd.f32 %v2041_v58, %v2039_v48 }
 0x14f   : > { %v849_v37 = vunpack.c.l.b16 %v4879_v39  ;;  %v922_v35 = vunpack.c.l.b16 %v835_v29  ;;  %v4899_v36 = vunpack.c.l.bf16 %v835_v29  ;;  %v963_v59 = vunpack.c.l.b16 %v837_v25 }
 0x150   : > { %v4257_v6 = vpop.eup %4256  ;;  %v4908_v53 = vunpack.c.l.bf16 %v837_v25  ;;  %v2045_v33 = vmul.f32 %v4883_v13, %v4838_v20  ;;  %v2047_v45 = vmul.f32 %v4881_v54, %v4836_v62  ;;  %v4946_v4 = vunpack.c.l.bf16 %v831_v8 }
 0x151   : > { %v812_v50 = vmul.f32 %v4257_v6, %v798_v7  ;;  %v4938_v27 = vmul.f32 %v4899_v36, %v4867_v9  ;;  %v1687_v6 = vpack.c.bf16 %v4838_v20, %v4838_v20  ;;  %v1871_v8 = vpack.c.bf16 %v4881_v54, %v4881_v54 }
 0x152   : > { %v4952_v7 = vmul.f32 %v4908_v53, %v4867_v9  ;;  %v1873_v17 = vpack.c.bf16 %v4883_v13, %v4883_v13  ;;  %v4981_v54 = vunpack.c.l.bf16 %v1686_v46  ;;  %v4986_v13 = vunpack.c.l.bf16 %v1870_v22 }
 0x153   : > { %v816_v11 = vsel %vm674_vm0, %v812_v50, 0.0  ;;  %v832_v15 = vpack.c.bf16 %v812_v50, %v812_v50  ;;  %v822_v23 = vmul.f32 %v820_v51, %v812_v50  ;;  %v826_v24 = vmul.f32 %v824_v5, %v812_v50 }
 0x154   : > { %817 = vadd.xlane.f32.xlu2 %v816_v11  ;;  %v830_v56 = vmul.f32 %v4633_v32, %v812_v50  ;;  %v2226_v5 = vmul.f32 %v4852_v34, %v4802_v44  ;;  %v5000_v46 = vunpack.c.l.bf16 %v2050_v40  ;;  %v5002_v52 = vunpack.c.l.bf16 %v2052_v1 }
 0x155   : > { %v884_v21 = vunpack.c.l.b16 %v832_v15  ;;  %v4891_v30 = vpack.c.bf16 %v822_v23, %v822_v23  ;;  %v836_v31 = vpack.c.bf16 %v826_v24, %v826_v24  ;;  %v4921_v2 = vunpack.c.l.bf16 %v832_v15 }
 0x156   : > { %v838_v43 = vpack.c.bf16 %v830_v56, %v830_v56  ;;  %v2051_v15 = vpack.c.bf16 %v4927_v3, %v4927_v3  ;;  %v4975_v23 = vsub.f32 %v2045_v33, %v2047_v45  ;;  %v4991_v24 = vunpack.c.l.bf16 %v1872_v10 }
 0x157   : > { %v885_v32 = vpack.c.b16 %v884_v21, %v883_v19  ;;  %v850_v18 = vunpack.c.l.b16 %v4891_v30  ;;  %v923_v49 = vunpack.c.l.b16 %v836_v31  ;;  %v4901_v57 = vunpack.c.l.bf16 %v836_v31 }
 0x158   : > { %v964_v47 = vunpack.c.l.b16 %v838_v43  ;;  %v4910_v61 = vunpack.c.l.bf16 %v838_v43  ;;  %v1693_v29 = vmul.f32 %v4914_v41, %v4921_v2  ;;  %v1692_v56 = vmul.f32 %v4867_v9, %v4946_v4 }
 0x159   : > { %4008 = vmatmul.msk.bf16.vlgmr.msra.gmra.mxu2 %vm674_vm0, %v885_v32  ;;  %v4904_v55 = vpack.c.b16 %v850_v18, %v849_v37  ;;  %v4906_v60 = vpack.c.b16 %v923_v49, %v922_v35  ;;  %v4942_v42 = vmul.f32 %v4901_v57, %v4914_v41  ;;  %v5004_v22 = vadd.f32 %v2220_v14, %v2218_v0 }
 0x15a   : > { %v4912_v63 = vpack.c.b16 %v964_v47, %v963_v59  ;;  %1748 = vmatpush.bf16.msra.mxu2 %v6297_v12  ;;  %v4956_v51 = vmul.f32 %v4910_v61, %v4914_v41  ;;  %v5006_v25 = vunpack.c.l.bf16 %v1687_v6  ;;  %v5008_v38 = vunpack.c.l.bf16 %v1871_v8 }
 0x15b   : > { %3999 = vmatmul.msk.bf16.vlgmr.msra.gmra.mxu1 %vm674_vm0, %v4904_v55  ;;  %4021 = vmatmul.msk.bf16.vlgmr.msra.gmra.mxu3 %vm674_vm0, %v4906_v60  ;;  %v5010_v10 = vunpack.c.l.bf16 %v1873_v17  ;;  %v5012_v28 = vsub.f32 %v2224_v26, %v2226_v5  ;;  %v1694_v19 = vpack.c.bf16 %v1693_v29, %v1692_v56  ;;  %v5014_v21 = vunpack.c.l.bf16 %v2051_v15 }
 0x15c   : > { %4034 = vmatmul.msk.bf16.vlgmr.msrb.gmra.mxu0 %vm674_vm0, %v4912_v63  ;;  %1726 = vmatpush.bf16.msra.mxu1 %v6297_v12  ;;  %v2053_v34 = vpack.c.bf16 %v4975_v23, %v4975_v23  ;;  %v2219_v40 = vmul.f32 %v4927_v3, %v4838_v20  ;;  %v5022_v0 = vmul.f32 %v4899_v36, %v4981_v54  ;;  %v5120_v14 = vunpack.c.l.bf16 %v4879_v39 }
 0x15d   : > { %1768 = vmatpush.bf16.msra.mxu3 %v6297_v12  ;;  %1790 = vmatpush.bf16.msrb.mxu0 %v6297_v12  ;;  %v5026_v31 = vmul.f32 %v4901_v57, %v5006_v25  ;;  %v5030_v37 = vmul.f32 %v4908_v53, %v4981_v54  ;;  %v5034_v35 = vmul.f32 %v4910_v61, %v5006_v25  ;;  %v5133_v11 = vunpack.c.l.bf16 %v4891_v30 }
 0x15e   : > { %1749 = vmatpush.bf16.msra.mxu2 %v6297_v12  ;;  %v5038_v43 = vmul.f32 %v4986_v13, %v4899_v36  ;;  %v5042_v48 = vmul.f32 %v5008_v38, %v4901_v57  ;;  %v5046_v32 = vmul.f32 %v4986_v13, %v4908_v53  ;;  %v5050_v18 = vmul.f32 %v5008_v38, %v4910_v61 }
 0x15f   : > { %v5058_v59 = vmul.f32 %v4991_v24, %v4899_v36  ;;  %v5062_v47 = vmul.f32 %v5010_v10, %v4901_v57  ;;  %v5070_v33 = vmul.f32 %v4991_v24, %v4908_v53  ;;  %v5074_v45 = vmul.f32 %v5010_v10, %v4910_v61 }
 0x160   : > { %1727 = vmatpush.bf16.msra.mxu1 %v6297_v12  ;;  %v5078_v5 = vunpack.c.l.bf16 %v2053_v34  ;;  %v5082_v6 = vmul.f32 %v5000_v46, %v4899_v36  ;;  %v5086_v8 = vmul.f32 %v5000_v46, %v4908_v53  ;;  %v5094_v29 = vmul.f32 %v5014_v21, %v4901_v57 }
 0x161   : > { %1769 = vmatpush.bf16.msra.mxu3 %v6297_v12  ;;  %1791 = vmatpush.bf16.msrb.mxu0 %v6297_v12  ;;  %v5098_v15 = vmul.f32 %v5014_v21, %v4910_v61  ;;  %v5102_v56 = vmul.f32 %v5002_v52, %v4899_v36  ;;  %v5111_v34 = vmul.f32 %v5002_v52, %v4908_v53 }
 0x162   : > { %6345 = vst [vmem:[#allocation10_spill] sm:$0xff] %v5082_v6  ;;  %v5115_v17 = vmul.f32 %v5078_v5, %v4910_v61  ;;  %v2221_v26 = vmul.f32 %v4975_v23, %v4836_v62  ;;  %v2230_v49 = vpack.c.bf16 %v5004_v22, %v5004_v22  ;;  %v2225_v58 = vmul.f32 %v4975_v23, %v4838_v20 }
 0x163   : > { %6346 = vst [vmem:[#allocation11_spill] sm:$0xff] %v5086_v8  ;;  %v2232_v39 = vpack.c.bf16 %v5012_v28, %v5012_v28  ;;  %v2398_v50 = vmul.f32 %v5004_v22, %v4806_v16 }
 0x164   : > { %6347 = vst [vmem:[#allocation12_spill] sm:$0xff] %v5098_v15  ;;  %v2406_v15 = vmul.f32 %v5004_v22, %v4802_v44  ;;  %v6360_v22 = vmov 1065369472  }
 0x165   : > { %6348 = vst [vmem:[#allocation13_spill] sm:$0xff] %v5102_v56  ;;  %v1715_v56 = vmul.f32 %v5006_v25, %v4921_v2 }
 0x166   : > { %6350 = vst [vmem:[#allocation15_spill] sm:$0xff] %v5111_v34  ;;  %v5168_v34 = vunpack.c.l.bf16 %v2232_v39 }
 0x167   : > { %6351 = vst [vmem:[#allocation16_spill] sm:$0xff] %v5115_v17 }
 0x168   : > { %6354 = vst [vmem:[#allocation19_spill] sm:$0xff] %v5168_v34 }
 0x169   : > { %4048 = vmatmul.msk.bf16.vlgmr.msrb.gmra.mxu2 %vm674_vm0, %v4906_v60  ;;  %v5107_v60 = vmul.f32 %v5078_v5, %v4901_v57 }
 0x16a   : > { %1832 = vmatpush.bf16.msrb.mxu2 %v6297_v12 }
 0x16b   : > { %6349 = vst [vmem:[#allocation14_spill] sm:$0xff] %v5107_v60  ;;  %4047 = vmatmul.msk.bf16.vlgmr.msrb.gmra.mxu1 %vm674_vm0, %v4904_v55  ;;  %4049 = vmatmul.msk.bf16.vlgmr.msrb.gmra.mxu3 %vm674_vm0, %v4912_v63  ;;  %v2223_v63 = vadd.f32 %v2221_v26, %v2219_v40  ;;  %v1736_v55 = vmul.f32 %v5120_v14, %v4867_v9  ;;  %v5152_v40 = vunpack.c.l.bf16 %v2230_v49 }
 0x16c   : > { %4050 = vmatmul.msk.bf16.vlgmr.msra.gmra.mxu0 %vm674_vm0, %v1694_v19  ;;  %1810 = vmatpush.bf16.msrb.mxu1 %v6297_v12  ;;  %v2227_v19 = vmul.f32 %v4927_v3, %v4836_v62  ;;  %v1737_v26 = vmul.f32 %v5133_v11, %v4914_v41  ;;  %v1714_v3 = vmul.f32 %v4981_v54, %v4946_v4 }
 0x16d   : > { %1852 = vmatpush.bf16.msrb.mxu3 %v6297_v12  ;;  %1888 = vmatpush.bf16.msra.mxu0 %v6297_v12  ;;  %v2231_v30 = vpack.c.bf16 %v2223_v63, %v2223_v63  ;;  %6352 = vst [vmem:[#allocation17_spill] sm:$0xff] %v5152_v40  ;;  %v2399_v9 = vmul.f32 %v2223_v63, %v4838_v20 }
 0x16e   : > { %1833 = vmatpush.bf16.msrb.mxu2 %v6297_v12  ;;  %v2229_v1 = vsub.f32 %v2225_v58, %v2227_v19  ;;  %v2400_v41 = vmul.f32 %v5012_v28, %v4802_v44  ;;  %v5172_v58 = vmul.f32 %v5152_v40, %v4899_v36  ;;  %v5180_v19 = vmul.f32 %v5152_v40, %v4908_v53 }
 0x16f   : > { %v5157_v23 = vunpack.c.l.bf16 %v2231_v30  ;;  %v1757_v60 = vmul.f32 %v5133_v11, %v5006_v25  ;;  %v2404_v40 = vmul.f32 %v5012_v28, %v4806_v16  ;;  %v1716_v28 = vpack.c.bf16 %v1715_v56, %v1714_v3 }
 0x170   : > { %1811 = vmatpush.bf16.msrb.mxu1 %v6297_v12  ;;  %v2233_v49 = vpack.c.bf16 %v2229_v1, %v2229_v1  ;;  %6355 = vst [vmem:[#allocation20_spill] sm:$0xff] %v5172_v58  ;;  %v2401_v17 = vmul.f32 %v2229_v1, %v4836_v62  ;;  %v2402_v39 = vadd.f32 %v2400_v41, %v2398_v50 }
 0x171   : > { %6353 = vst [vmem:[#allocation18_spill] sm:$0xff] %v5157_v23  ;;  %1853 = vmatpush.bf16.msrb.mxu3 %v6297_v12  ;;  %1889 = vmatpush.bf16.msra.mxu0 %v6297_v12  ;;  %v5176_v30 = vmul.f32 %v5157_v23, %v4901_v57  ;;  %v5184_v12 = vmul.f32 %v5157_v23, %v4910_v61 }
 0x172   : > { %6357 = vst [vmem:[#allocation22_spill] sm:$0xff] %v5180_v19  ;;  %v5191_v8 = vunpack.c.l.bf16 %v2233_v49  ;;  %v5199_v23 = vmul.f32 %v5168_v34, %v4899_v36  ;;  %v5203_v50 = vmul.f32 %v5168_v34, %v4908_v53  ;;  %v2403_v41 = vadd.f32 %v2401_v17, %v2399_v9 }
 0x173   : > { %6356 = vst [vmem:[#allocation21_spill] sm:$0xff] %v5176_v30  ;;  %v1738_v19 = vpack.c.bf16 %v1737_v26, %v1736_v55  ;;  %v2410_v58 = vpack.c.bf16 %v2402_v39, %v2402_v39  ;;  %v2405_v34 = vmul.f32 %v2229_v1, %v4838_v20  ;;  %v2408_v55 = vsub.f32 %v2404_v40, %v2406_v15 }
 0x174   : > { %6358 = vst [vmem:[#allocation23_spill] sm:$0xff] %v5184_v12  ;;  %v5207_v25 = vmul.f32 %v5191_v8, %v4901_v57  ;;  %v5211_v49 = vmul.f32 %v5191_v8, %v4910_v61  ;;  %v1756_v12 = vmul.f32 %v5120_v14, %v4981_v54  ;;  %v2411_v17 = vpack.c.bf16 %v2403_v41, %v2403_v41 }
 0x175   : > { %6359 = vst [vmem:[#allocation24_spill] sm:$0xff] %v5191_v8  ;;  %v2407_v54 = vmul.f32 %v2223_v63, %v4836_v62  ;;  %v5231_v26 = vunpack.c.l.bf16 %v2410_v58  ;;  %v2578_v30 = vmul.f32 %v2402_v39, %v4806_v16  ;;  %v2586_v1 = vmul.f32 %v2402_v39, %v4802_v44 }
 0x176   : > { %v1758_v8 = vpack.c.bf16 %v1757_v60, %v1756_v12  ;;  %v5225_v6 = vunpack.c.l.bf16 %v2411_v17  ;;  %v6362_v56 = vpack.c.bf16 %v4942_v42, %v4938_v27  ;;  %v2412_v60 = vpack.c.bf16 %v2408_v55, %v2408_v55 }
 0x177   : > { %v2409_v15 = vsub.f32 %v2405_v34, %v2407_v54  ;;  %v2579_v63 = vmul.f32 %v2403_v41, %v4838_v20  ;;  %v2584_v40 = vmul.f32 %v2408_v55, %v4806_v16  ;;  %v5251_v3 = vmul.f32 %v5231_v26, %v4899_v36 }
 0x178   : > { %v5237_v12 = vmul.f32 %v5225_v6, %v4901_v57  ;;  %v2587_v27 = vmul.f32 %v2403_v41, %v4836_v62  ;;  %v5258_v58 = vmul.f32 %v5231_v26, %v4908_v53  ;;  %v5265_v17 = vmul.f32 %v5225_v6, %v4910_v61 }
 0x179   : > { %4052 = vmatmul.msk.bf16.vlgmr.msra.gmra.mxu2 %vm674_vm0, %v1738_v19  ;;  %6363 = vst [vmem:[#allocation26_spill] sm:$0xff] %v5251_v3  ;;  %v2413_v42 = vpack.c.bf16 %v2409_v15, %v2409_v15  ;;  %v2581_v34 = vmul.f32 %v2409_v15, %v4836_v62  ;;  %v2585_v19 = vmul.f32 %v2409_v15, %v4838_v20  ;;  %v5268_v41 = vunpack.c.l.bf16 %v2412_v60 }
 0x17a   : > { %1930 = vmatpush.bf16.msra.mxu2 %v6360_v22  ;;  %6361 = vst [vmem:[#allocation25_spill] sm:$0xff] %v5237_v12 }
 0x17b   : > { %4051 = vmatmul.msk.bf16.vlgmr.msra.gmra.mxu1 %vm674_vm0, %v1716_v28  ;;  %4053 = vmatmul.msk.bf16.vlgmr.msra.gmra.mxu3 %vm674_vm0, %v1758_v8  ;;  %v2580_v8 = vmul.f32 %v2408_v55, %v4802_v44  ;;  %6364 = vst [vmem:[#allocation27_spill] sm:$0xff] %v5258_v58  ;;  %v5270_v54 = vunpack.c.l.bf16 %v2413_v42  ;;  %v2588_v55 = vsub.f32 %v2584_v40, %v2586_v1 }
 0x17c   : > { %4054 = vmatmul.msk.bf16.vlgmr.msrb.gmra.mxu0 %vm674_vm0, %v6362_v56  ;;  %1910 = vmatpush.bf16.msra.mxu1 %v6360_v22  ;;  %6365 = vst [vmem:[#allocation28_spill] sm:$0xff] %v5265_v17  ;;  %v2583_v15 = vadd.f32 %v2581_v34, %v2579_v63  ;;  %v5278_v39 = vmul.f32 %v5268_v41, %v4899_v36 }
 0x17d   : > { %1950 = vmatpush.bf16.msra.mxu3 %v6360_v22  ;;  %1970 = vmatpush.bf16.msrb.mxu0 %v6360_v22  ;;  %v2582_v28 = vadd.f32 %v2580_v8, %v2578_v30  ;;  %6366 = vst [vmem:[#allocation29_spill] sm:$0xff] %v5268_v41  ;;  %v5282_v30 = vmul.f32 %v5270_v54, %v4901_v57 }
 0x17e   : > { %1931 = vmatpush.bf16.msra.mxu2 %v6360_v22  ;;  %6367 = vst [vmem:[#allocation30_spill] sm:$0xff] %v5278_v39  ;;  %v5286_v60 = vmul.f32 %v5268_v41, %v4908_v53  ;;  %v5290_v1 = vmul.f32 %v5270_v54, %v4910_v61  ;;  %v2591_v40 = vpack.c.bf16 %v2583_v15, %v2583_v15 }
 0x17f   : > { %v2590_v8 = vpack.c.bf16 %v2582_v28, %v2582_v28  ;;  %v2589_v42 = vsub.f32 %v2585_v19, %v2587_v27  ;;  %v1877_v63 = vmul.f32 %v5008_v38, %v4921_v2  ;;  %v2592_v9 = vpack.c.bf16 %v2588_v55, %v2588_v55 }
 0x180   : > { %1911 = vmatpush.bf16.msra.mxu1 %v6360_v22  ;;  %6368 = vst [vmem:[#allocation31_spill] sm:$0xff] %v5286_v60  ;;  %v1876_v17 = vmul.f32 %v4986_v13, %v4946_v4  ;;  %v5302_v12 = vunpack.c.l.bf16 %v2591_v40  ;;  %v2758_v19 = vmul.f32 %v2582_v28, %v4806_v16  ;;  %v6370_v34 = vpack.c.bf16 %v4956_v51, %v4952_v7 }
 0x181   : > { %1951 = vmatpush.bf16.msra.mxu3 %v6360_v22  ;;  %1971 = vmatpush.bf16.msrb.mxu0 %v6360_v22  ;;  %6369 = vst [vmem:[#allocation32_spill] sm:$0xff] %v5290_v1  ;;  %v2593_v58 = vpack.c.bf16 %v2589_v42, %v2589_v42  ;;  %v5300_v3 = vunpack.c.l.bf16 %v2590_v8  ;;  %v5304_v27 = vunpack.c.l.bf16 %v2592_v9  ;;  %v2760_v9 = vmul.f32 %v2588_v55, %v4802_v44 }
 0x182   : > { %v1878_v41 = vpack.c.bf16 %v1877_v63, %v1876_v17  ;;  %v5319_v8 = vmul.f32 %v5302_v12, %v4901_v57  ;;  %v5329_v7 = vmul.f32 %v5302_v12, %v4910_v61  ;;  %v2759_v51 = vmul.f32 %v2583_v15, %v4838_v20 }
 0x183   : > { %v5311_v56 = vunpack.c.l.bf16 %v2593_v58  ;;  %v5315_v60 = vmul.f32 %v5300_v3, %v4899_v36  ;;  %v5325_v17 = vmul.f32 %v5300_v3, %v4908_v53  ;;  %v2761_v58 = vmul.f32 %v2589_v42, %v4836_v62 }
 0x184   : > { %6372 = vst [vmem:[#allocation34_spill] sm:$0xff] %v5329_v7  ;;  %v6373_v40 = vpack.c.bf16 %v5026_v31, %v5022_v0  ;;  %v6374_v63 = vpack.c.bf16 %v5034_v35, %v5030_v37  ;;  %v5345_v1 = vmul.f32 %v5304_v27, %v4899_v36  ;;  %v5357_v31 = vmul.f32 %v5304_v27, %v4908_v53 }
 0x185   : > { %6371 = vst [vmem:[#allocation33_spill] sm:$0xff] %v5325_v17  ;;  %v5349_v39 = vmul.f32 %v5311_v56, %v4901_v57  ;;  %v5365_v35 = vmul.f32 %v5311_v56, %v4910_v61  ;;  %v2765_v0 = vmul.f32 %v2589_v42, %v4838_v20  ;;  %v2767_v37 = vmul.f32 %v2583_v15, %v4836_v62 }
 0x186   : > { %6375 = vst [vmem:[#allocation35_spill] sm:$0xff] %v5345_v1  ;;  %v1918_v62 = vmul.f32 %v4986_v13, %v5120_v14  ;;  %v1899_v15 = vmul.f32 %v5010_v10, %v4921_v2 }
 0x187   : > { %6376 = vst [vmem:[#allocation36_spill] sm:$0xff] %v5349_v39  ;;  %v2740_v17 = vpack.c.bf16 %v5365_v35, %v5357_v31 }
 0x189   : > { %4056 = vmatmul.msk.bf16.vlgmr.msrb.gmra.mxu2 %vm674_vm0, %v6370_v34  ;;  %v2766_v34 = vmul.f32 %v2582_v28, %v4802_v44  ;;  %v1919_v44 = vmul.f32 %v5008_v38, %v5133_v11 }
 0x18a   : > { %2010 = vmatpush.bf16.msrb.mxu2 %v6360_v22 }
 0x18b   : > { %4055 = vmatmul.msk.bf16.vlgmr.msrb.gmra.mxu1 %vm674_vm0, %v6373_v40  ;;  %4057 = vmatmul.msk.bf16.vlgmr.msrb.gmra.mxu3 %vm674_vm0, %v6374_v63  ;;  %v2763_v40 = vadd.f32 %v2761_v58, %v2759_v51  ;;  %v2764_v63 = vmul.f32 %v2588_v55, %v4806_v16  ;;  %v1938_v58 = vmul.f32 %v4991_v24, %v5120_v14 }
 0x18c   : > { %4058 = vmatmul.msk.bf16.vlgmr.msra.gmra.mxu0 %vm674_vm0, %v1878_v41  ;;  %1990 = vmatpush.bf16.msrb.mxu1 %v6360_v22  ;;  %v2762_v41 = vadd.f32 %v2760_v9, %v2758_v19  ;;  %v2769_v19 = vsub.f32 %v2765_v0, %v2767_v37  ;;  %v1898_v9 = vmul.f32 %v4991_v24, %v4946_v4 }
 0x18d   : > { %2030 = vmatpush.bf16.msrb.mxu3 %v6360_v22  ;;  %2068 = vmatpush.bf16.msra.mxu0 %v6360_v22  ;;  %v2771_v1 = vpack.c.bf16 %v2763_v40, %v2763_v40  ;;  %v2768_v39 = vsub.f32 %v2764_v63, %v2766_v34 }
 0x18e   : > { %2011 = vmatpush.bf16.msrb.mxu2 %v6360_v22  ;;  %v2770_v7 = vpack.c.bf16 %v2762_v41, %v2762_v41  ;;  %v2773_v55 = vpack.c.bf16 %v2769_v19, %v2769_v19  ;;  %v1900_v63 = vpack.c.bf16 %v1899_v15, %v1898_v9 }
 0x18f   : > { %v5377_v16 = vunpack.c.l.bf16 %v2771_v1  ;;  %v2772_v20 = vpack.c.bf16 %v2768_v39, %v2768_v39  ;;  %v1939_v1 = vmul.f32 %v5010_v10, %v5133_v11  ;;  %v1920_v10 = vpack.c.bf16 %v1919_v44, %v1918_v62 }
 0x190   : > { %1991 = vmatpush.bf16.msrb.mxu1 %v6360_v22  ;;  %v5381_v28 = vunpack.c.l.bf16 %v2770_v7  ;;  %v5409_v51 = vunpack.c.l.bf16 %v2773_v55  ;;  %v6379_v44 = vpack.c.bf16 %v5062_v47, %v5058_v59  ;;  %v6380_v55 = vpack.c.bf16 %v5074_v45, %v5070_v33 }
 0x191   : > { %2031 = vmatpush.bf16.msrb.mxu3 %v6360_v22  ;;  %2069 = vmatpush.bf16.msra.mxu0 %v6360_v22  ;;  %v5389_v42 = vmul.f32 %v5377_v16, %v4901_v57  ;;  %v5403_v13 = vmul.f32 %v5377_v16, %v4910_v61  ;;  %v5407_v7 = vunpack.c.l.bf16 %v2772_v20  ;;  %v1940_v19 = vpack.c.bf16 %v1939_v1, %v1938_v58  ;;  %v6386_v58 = vld [vmem:[#allocation11_spill] sm:$0xff] }
 0x192   : > { %v5395_v39 = vmul.f32 %v5381_v28, %v4899_v36  ;;  %v5399_v38 = vmul.f32 %v5381_v28, %v4908_v53  ;;  %v5423_v41 = vmul.f32 %v5409_v51, %v4901_v57  ;;  %v5431_v24 = vmul.f32 %v5409_v51, %v4910_v61 }
 0x193   : > { %v5419_v37 = vmul.f32 %v5407_v7, %v4899_v36  ;;  %v5427_v40 = vmul.f32 %v5407_v7, %v4908_v53  ;;  %v6377_v53 = vpack.c.bf16 %v5042_v48, %v5038_v43  ;;  %v2057_v61 = vmul.f32 %v5014_v21, %v4921_v2 }
 0x194   : > { %v2860_v34 = vpack.c.bf16 %v5389_v42, %v5395_v39  ;;  %v2900_v0 = vpack.c.bf16 %v5403_v13, %v5399_v38  ;;  %v2056_v43 = vmul.f32 %v5000_v46, %v4946_v4  ;;  %v6378_v48 = vpack.c.bf16 %v5050_v18, %v5046_v32 }
 0x195   : > { %v2880_v36 = vpack.c.bf16 %v5423_v41, %v5419_v37  ;;  %v2920_v57 = vpack.c.bf16 %v5431_v24, %v5427_v40  ;;  %v2099_v32 = vmul.f32 %v5014_v21, %v5133_v11  ;;  %v2098_v18 = vmul.f32 %v5000_v46, %v5120_v14  ;;  %v6381_v46 = vld [vmem:[#allocation10_spill] sm:$0xff] }
 0x196   : > { %v2058_v20 = vpack.c.bf16 %v2057_v61, %v2056_v43  ;;  %v2079_v59 = vmul.f32 %v5078_v5, %v4921_v2  ;;  %v2119_v47 = vmul.f32 %v5078_v5, %v5133_v11  ;;  %v2078_v45 = vmul.f32 %v5002_v52, %v4946_v4  ;;  %v6389_v61 = vld [vmem:[#allocation13_spill] sm:$0xff] }
 0x197   : > { %v2100_v33 = vpack.c.bf16 %v2099_v32, %v2098_v18  ;;  %v2118_v62 = vmul.f32 %v5002_v52, %v5120_v14  ;;  %v6382_v5 = vpack.c.bf16 %v5094_v29, %v6381_v46  ;;  %v6383_v52 = vld [vmem:[#allocation18_spill] sm:$0xff]  ;;  %v6384_v29 = vld [vmem:[#allocation17_spill] sm:$0xff]  ;;  %v6394_v18 = vld [vmem:[#allocation24_spill] sm:$0xff]  ;;  %v2819_v31 = vmul.f32 %v5377_v16, %v5133_v11 }
 0x198   : > { %v2080_v15 = vpack.c.bf16 %v2079_v59, %v2078_v45  ;;  %v2237_v1 = vmul.f32 %v6383_v52, %v4921_v2  ;;  %v2236_v9 = vmul.f32 %v6384_v29, %v4946_v4  ;;  %v2278_v32 = vmul.f32 %v6384_v29, %v5120_v14  ;;  %v6395_v45 = vld [vmem:[#allocation19_spill] sm:$0xff]  ;;  %v6397_v29 = vld [vmem:[#allocation20_spill] sm:$0xff] }
 0x199   : > { %4060 = vmatmul.msk.bf16.vlgmr.msra.gmra.mxu2 %vm674_vm0, %v1920_v10  ;;  %v2120_v21 = vpack.c.bf16 %v2119_v47, %v2118_v62  ;;  %v6385_v10 = vld [vmem:[#allocation12_spill] sm:$0xff]  ;;  %v2259_v59 = vmul.f32 %v6394_v18, %v4921_v2  ;;  %v2299_v47 = vmul.f32 %v6394_v18, %v5133_v11  ;;  %v2258_v62 = vmul.f32 %v6395_v45, %v4946_v4 }
 0x19a   : > { %2110 = vmatpush.bf16.msra.mxu2 %v6360_v22  ;;  %v2818_v35 = vmul.f32 %v5381_v28, %v5120_v14 }
 0x19b   : > { %4059 = vmatmul.msk.bf16.vlgmr.msra.gmra.mxu1 %vm674_vm0, %v1900_v63  ;;  %4061 = vmatmul.msk.bf16.vlgmr.msra.gmra.mxu3 %vm674_vm0, %v1940_v19  ;;  %v6387_v63 = vpack.c.bf16 %v6385_v10, %v6386_v58  ;;  %v2238_v19 = vpack.c.bf16 %v2237_v1, %v2236_v9  ;;  %v6396_v1 = vld [vmem:[#allocation21_spill] sm:$0xff] }
 0x19c   : > { %4062 = vmatmul.msk.bf16.vlgmr.msrb.gmra.mxu0 %vm674_vm0, %v6377_v53  ;;  %2090 = vmatpush.bf16.msra.mxu1 %v6360_v22  ;;  %v6388_v53 = vld [vmem:[#allocation14_spill] sm:$0xff]  ;;  %v6398_v9 = vpack.c.bf16 %v6396_v1, %v6397_v29  ;;  %v2458_v29 = vmul.f32 %v5231_v26, %v5120_v14 }
 0x19d   : > { %2130 = vmatpush.bf16.msra.mxu3 %v6360_v22  ;;  %2150 = vmatpush.bf16.msrb.mxu0 %v6360_v22  ;;  %v6390_v43 = vpack.c.bf16 %v6388_v53, %v6389_v61 }
 0x19e   : > { %2111 = vmatpush.bf16.msra.mxu2 %v6360_v22 }
 0x1a0   : > { %2091 = vmatpush.bf16.msra.mxu1 %v6360_v22 }
 0x1a1   : > { %2131 = vmatpush.bf16.msra.mxu3 %v6360_v22  ;;  %2151 = vmatpush.bf16.msrb.mxu0 %v6360_v22 }
 0x1a9   : > { %4064 = vmatmul.msk.bf16.vlgmr.msrb.gmra.mxu2 %vm674_vm0, %v6378_v48  ;;  %v6391_v48 = vld [vmem:[#allocation16_spill] sm:$0xff] }
 0x1aa   : > { %2190 = vmatpush.bf16.msrb.mxu2 %v6360_v22 }
 0x1ab   : > { %4063 = vmatmul.msk.bf16.vlgmr.msrb.gmra.mxu1 %vm674_vm0, %v6379_v44  ;;  %4065 = vmatmul.msk.bf16.vlgmr.msrb.gmra.mxu3 %vm674_vm0, %v6380_v55  ;;  %v2279_v55 = vmul.f32 %v6383_v52, %v5133_v11 }
 0x1ac   : > { %4066 = vmatmul.msk.bf16.vlgmr.msra.gmra.mxu0 %vm674_vm0, %v2058_v20  ;;  %2170 = vmatpush.bf16.msrb.mxu1 %v6360_v22  ;;  %v6392_v20 = vld [vmem:[#allocation15_spill] sm:$0xff] }
 0x1ad   : > { %2210 = vmatpush.bf16.msrb.mxu3 %v6360_v22  ;;  %2248 = vmatpush.bf16.msra.mxu0 %v6360_v22  ;;  %v6393_v44 = vpack.c.bf16 %v6391_v48, %v6392_v20 }
 0x1ae   : > { %2191 = vmatpush.bf16.msrb.mxu2 %v6360_v22 }
 0x1b0   : > { %2171 = vmatpush.bf16.msrb.mxu1 %v6360_v22 }
 0x1b1   : > { %2211 = vmatpush.bf16.msrb.mxu3 %v6360_v22  ;;  %2249 = vmatpush.bf16.msra.mxu0 %v6360_v22 }
 0x1b9   : > { %4068 = vmatmul.msk.bf16.vlgmr.msra.gmra.mxu2 %vm674_vm0, %v2100_v33  ;;  %v2280_v33 = vpack.c.bf16 %v2279_v55, %v2278_v32  ;;  %v2417_v55 = vmul.f32 %v5225_v6, %v4921_v2 }
 0x1ba   : > { %2290 = vmatpush.bf16.msra.mxu2 %v6360_v22 }
 0x1bb   : > { %4067 = vmatmul.msk.bf16.vlgmr.msra.gmra.mxu1 %vm674_vm0, %v2080_v15  ;;  %4069 = vmatmul.msk.bf16.vlgmr.msra.gmra.mxu3 %vm674_vm0, %v2120_v21  ;;  %v2298_v15 = vmul.f32 %v6395_v45, %v5120_v14  ;;  %v6401_v45 = vld [vmem:[#allocation23_spill] sm:$0xff] }
 0x1bc   : > { %4070 = vmatmul.msk.bf16.vlgmr.msrb.gmra.mxu0 %vm674_vm0, %v6382_v5  ;;  %2270 = vmatpush.bf16.msra.mxu1 %v6360_v22  ;;  %v2260_v5 = vpack.c.bf16 %v2259_v59, %v2258_v62  ;;  %v2416_v59 = vmul.f32 %v5231_v26, %v4946_v4  ;;  %v6402_v62 = vld [vmem:[#allocation22_spill] sm:$0xff] }
 0x1bd   : > { %2310 = vmatpush.bf16.msra.mxu3 %v6360_v22  ;;  %2330 = vmatpush.bf16.msrb.mxu0 %v6360_v22  ;;  %v2300_v52 = vpack.c.bf16 %v2299_v47, %v2298_v15  ;;  %v6403_v15 = vpack.c.bf16 %v6401_v45, %v6402_v62 }
 0x1be   : > { %2291 = vmatpush.bf16.msra.mxu2 %v6360_v22 }
 0x1c0   : > { %2271 = vmatpush.bf16.msra.mxu1 %v6360_v22 }
 0x1c1   : > { %2311 = vmatpush.bf16.msra.mxu3 %v6360_v22  ;;  %2331 = vmatpush.bf16.msrb.mxu0 %v6360_v22 }
 0x1c9   : > { %4072 = vmatmul.msk.bf16.vlgmr.msrb.gmra.mxu2 %vm674_vm0, %v6387_v63 }
 0x1ca   : > { %2370 = vmatpush.bf16.msrb.mxu2 %v6360_v22 }
 0x1cb   : > { %4071 = vmatmul.msk.bf16.vlgmr.msrb.gmra.mxu1 %vm674_vm0, %v6390_v43  ;;  %4073 = vmatmul.msk.bf16.vlgmr.msrb.gmra.mxu3 %vm674_vm0, %v6393_v44 }
 0x1cc   : > { %4074 = vmatmul.msk.bf16.vlgmr.msra.gmra.mxu0 %vm674_vm0, %v2238_v19  ;;  %2350 = vmatpush.bf16.msrb.mxu1 %v6360_v22 }
 0x1cd   : > { %2390 = vmatpush.bf16.msrb.mxu3 %v6360_v22  ;;  %2428 = vmatpush.bf16.msra.mxu0 %v6360_v22 }
 0x1ce   : > { %2371 = vmatpush.bf16.msrb.mxu2 %v6360_v22 }
 0x1d0   : > { %2351 = vmatpush.bf16.msrb.mxu1 %v6360_v22 }
 0x1d1   : > { %2391 = vmatpush.bf16.msrb.mxu3 %v6360_v22  ;;  %2429 = vmatpush.bf16.msra.mxu0 %v6360_v22 }
 0x1d8   : > { %v876_v21 = vpop.f32.mrf.mxu1 }
 0x1d9   : > { %v990_v46 = vpop.f32.mrf.mxu0  ;;  %4076 = vmatmul.msk.bf16.vlgmr.msra.gmra.mxu2 %vm674_vm0, %v2280_v33 }
 0x1da   : > { %2470 = vmatpush.bf16.msra.mxu2 %v6360_v22 }
 0x1db   : > { %4075 = vmatmul.msk.bf16.vlgmr.msra.gmra.mxu1 %vm674_vm0, %v2260_v5  ;;  %4077 = vmatmul.msk.bf16.vlgmr.msra.gmra.mxu3 %vm674_vm0, %v2300_v52  ;;  %v6405_v5 = vpack.c.bf16 %v5211_v49, %v5203_v50 }
 0x1dc   : > { %4078 = vmatmul.msk.bf16.vlgmr.msrb.gmra.mxu0 %vm674_vm0, %v6398_v9  ;;  %v910_v10 = vpop.f32.mrf.mxu2  ;;  %2450 = vmatpush.bf16.msra.mxu1 %v6360_v22  ;;  %v2439_v9 = vmul.f32 %v5270_v54, %v4921_v2 }
 0x1dd   : > { %v911_v58 = vadd.f32 %v910_v10, %v876_v21  ;;  %2490 = vmatpush.bf16.msra.mxu3 %v6360_v22  ;;  %2510 = vmatpush.bf16.msrb.mxu0 %v6360_v22  ;;  %v2418_v21 = vpack.c.bf16 %v2417_v55, %v2416_v59  ;;  %v2479_v10 = vmul.f32 %v5270_v54, %v5133_v11  ;;  %v6407_v54 = vld [vmem:[#allocation25_spill] sm:$0xff] }
 0x1de   : > { %v949_v63 = vpop.f32.mrf.mxu3  ;;  %2471 = vmatpush.bf16.msra.mxu2 %v6360_v22 }
 0x1df   : > { %v954_v19 = vadd.f32 %v949_v63, %v911_v58 }
 0x1e0   : > { %v878_v53 = vpop.f32.mrf.mxu1  ;;  %2451 = vmatpush.bf16.msra.mxu1 %v6360_v22 }
 0x1e1   : > { %v5554_v61 = vadd.f32 %v990_v46, %v954_v19  ;;  %v992_v43 = vpop.f32.mrf.mxu0  ;;  %2491 = vmatpush.bf16.msra.mxu3 %v6360_v22  ;;  %2511 = vmatpush.bf16.msrb.mxu0 %v6360_v22  ;;  %v6404_v46 = vpack.c.bf16 %v5207_v25, %v5199_v23  ;;  %v2459_v25 = vmul.f32 %v5225_v6, %v5133_v11  ;;  %v6406_v19 = vld [vmem:[#allocation29_spill] sm:$0xff] }
 0x1e2   : > { %v2478_v6 = vmul.f32 %v6406_v19, %v5120_v14 }
 0x1e3   : > { %6399 = vst [vmem:[#allocation10_spill] sm:$0xff] %v5554_v61  ;;  %v2460_v63 = vpack.c.bf16 %v2459_v25, %v2458_v29  ;;  %v6413_v25 = vld [vmem:[#allocation30_spill] sm:$0xff]  ;;  %v6415_v29 = vld [vmem:[#allocation32_spill] sm:$0xff] }
 0x1e4   : > { %v912_v48 = vpop.f32.mrf.mxu2  ;;  %v2480_v26 = vpack.c.bf16 %v2479_v10, %v2478_v6 }
 0x1e5   : > { %v913_v20 = vadd.f32 %v912_v48, %v878_v53  ;;  %v2438_v53 = vmul.f32 %v6406_v19, %v4946_v4 }
 0x1e6   : > { %v951_v44 = vpop.f32.mrf.mxu3 }
 0x1e7   : > { %v955_v32 = vadd.f32 %v951_v44, %v913_v20  ;;  %v2440_v20 = vpack.c.bf16 %v2439_v9, %v2438_v53  ;;  %v6408_v44 = vld [vmem:[#allocation26_spill] sm:$0xff]  ;;  %v6416_v9 = vld [vmem:[#allocation31_spill] sm:$0xff]  ;;  %v2639_v53 = vmul.f32 %v5302_v12, %v5133_v11 }
 0x1e8   : > { %v1651_v18 = vpop.f32.mrf.mxu1  ;;  %v6409_v55 = vpack.c.bf16 %v6407_v54, %v6408_v44  ;;  %v6417_v10 = vpack.c.bf16 %v6415_v29, %v6416_v9  ;;  %v2658_v44 = vmul.f32 %v5304_v27, %v5120_v14 }
 0x1e9   : > { %v5562_v47 = vadd.f32 %v992_v43, %v955_v32  ;;  %v1707_v33 = vpop.f32.mrf.mxu0  ;;  %4080 = vmatmul.msk.bf16.vlgmr.msrb.gmra.mxu2 %vm674_vm0, %v6403_v15  ;;  %3153 = vrot.lane.b32.xlu2 %v1651_v18, %s4362_s29  ;;  %v2597_v15 = vmul.f32 %v5302_v12, %v4921_v2  ;;  %v2618_v12 = vmul.f32 %v5304_v27, %v4946_v4 }
 0x1ea   : > { %2940 = vrot.lane.b32.xlu0 %v1707_v33, %s4363_s19  ;;  %2550 = vmatpush.bf16.msrb.mxu2 %v6360_v22 }
 0x1eb   : > { %6400 = vst [vmem:[#allocation18_spill] sm:$0xff] %v5562_v47  ;;  %4079 = vmatmul.msk.bf16.vlgmr.msrb.gmra.mxu1 %vm674_vm0, %v6404_v46  ;;  %4081 = vmatmul.msk.bf16.vlgmr.msrb.gmra.mxu3 %vm674_vm0, %v6405_v5  ;;  %v2596_v46 = vmul.f32 %v5300_v3, %v4946_v4 }
 0x1ec   : > { %4082 = vmatmul.msk.bf16.vlgmr.msra.gmra.mxu0 %vm674_vm0, %v2418_v21  ;;  %v1665_v52 = vpop.f32.mrf.mxu2  ;;  %2530 = vmatpush.bf16.msrb.mxu1 %v6360_v22 }
 0x1ed   : > { %3303 = vrot.lane.b32.xlu1 %v1665_v52, %s4362_s29  ;;  %2570 = vmatpush.bf16.msrb.mxu3 %v6360_v22  ;;  %v6410_v52 = vld [vmem:[#allocation28_spill] sm:$0xff] }
 0x1ee   : > { %v1679_v1 = vpop.f32.mrf.mxu3  ;;  %2608 = vmatpush.bf16.msra.mxu0 %v6360_v22  ;;  %2551 = vmatpush.bf16.msrb.mxu2 %v6360_v22 }
 0x1f0   : > { %v1653_v23 = vpop.f32.mrf.mxu1  ;;  %2531 = vmatpush.bf16.msrb.mxu1 %v6360_v22 }
 0x1f1   : > { %v1709_v50 = vpop.f32.mrf.mxu0  ;;  %2571 = vmatpush.bf16.msrb.mxu3 %v6360_v22 }
 0x1f2   : > { %3453 = vrot.lane.b32.xlu0 %v1679_v1, %s4362_s29  ;;  %2609 = vmatpush.bf16.msra.mxu0 %v6360_v22  ;;  %v6411_v1 = vld [vmem:[#allocation27_spill] sm:$0xff] }
 0x1f4   : > { %v1667_v49 = vpop.f32.mrf.mxu2 }
 0x1f5   : > { %2942 = vrot.lane.b32.xlu1 %v1709_v50, %s4363_s19  ;;  %v2598_v50 = vpack.c.bf16 %v2597_v15, %v2596_v46  ;;  %v2776_v15 = vmul.f32 %v5381_v28, %v4946_v4  ;;  %v6419_v46 = vld [vmem:[#allocation34_spill] sm:$0xff]  ;;  %v5733_v28 = vpop.xlane.xlu2 %814 }
 0x1f6   : > { %v1681_v58 = vpop.f32.mrf.mxu3  ;;  %6425 = vst [vmem:[#allocation17_spill] sm:$0xff] %v5733_v28 }
 0x1f8   : > { %v1729_v43 = vpop.f32.mrf.mxu1 }
 0x1f9   : > { %v1793_v48 = vpop.f32.mrf.mxu0  ;;  %4084 = vmatmul.msk.bf16.vlgmr.msra.gmra.mxu2 %vm674_vm0, %v2460_v63 }
 0x1fa   : > { %3305 = vrot.lane.b32.xlu0 %v1667_v49, %s4362_s29  ;;  %3247 = vrot.lane.b32.xlu2 %v1793_v48, %s4363_s19  ;;  %v6414_v49 = vpack.c.bf16 %v5282_v30, %v6413_v25  ;;  %v2619_v48 = vmul.f32 %v5311_v56, %v4921_v2 }
 0x1fb   : > { %4083 = vmatmul.msk.bf16.vlgmr.msra.gmra.mxu1 %vm674_vm0, %v2440_v20  ;;  %4085 = vmatmul.msk.bf16.vlgmr.msra.gmra.mxu3 %vm674_vm0, %v2480_v26  ;;  %v2659_v20 = vmul.f32 %v5311_v56, %v5133_v11  ;;  %v6418_v56 = vpack.c.bf16 %v5319_v8, %v5315_v60  ;;  %v2777_v8 = vmul.f32 %v5377_v16, %v4921_v2 }
 0x1fc   : > { %4086 = vmatmul.msk.bf16.vlgmr.msrb.gmra.mxu0 %vm674_vm0, %v6409_v55  ;;  %v1751_v32 = vpop.f32.mrf.mxu2  ;;  %2650 = vmatpush.bf16.msra.mxu2 %v6360_v22  ;;  %v2838_v16 = vmul.f32 %v5407_v7, %v5120_v14 }
 0x1fd   : > { %3155 = vrot.lane.b32.xlu1 %v1653_v23, %s4362_s29  ;;  %2630 = vmatpush.bf16.msra.mxu1 %v6360_v22  ;;  %v6412_v23 = vpack.c.bf16 %v6410_v52, %v6411_v1  ;;  %v2778_v1 = vpack.c.bf16 %v2777_v8, %v2776_v15 }
 0x1fe   : > { %v1771_v18 = vpop.f32.mrf.mxu3  ;;  %2670 = vmatpush.bf16.msra.mxu3 %v6360_v22  ;;  %2690 = vmatpush.bf16.msrb.mxu0 %v6360_v22 }
 0x200   : > { %v1731_v59 = vpop.f32.mrf.mxu1  ;;  %2651 = vmatpush.bf16.msra.mxu2 %v6360_v22 }
 0x201   : > { %v1795_v33 = vpop.f32.mrf.mxu0  ;;  %2631 = vmatpush.bf16.msra.mxu1 %v6360_v22 }
 0x202   : > { %2996 = vrot.lane.b32.xlu0 %v1729_v43, %s4364_s23  ;;  %2998 = vrot.lane.b32.xlu2 %v1731_v59, %s4364_s23  ;;  %v2638_v43 = vmul.f32 %v5300_v3, %v5120_v14  ;;  %v2660_v3 = vpack.c.bf16 %v2659_v20, %v2658_v44 }
 0x203   : > { %2671 = vmatpush.bf16.msra.mxu3 %v6360_v22  ;;  %2691 = vmatpush.bf16.msrb.mxu0 %v6360_v22 }
 0x204   : > { %v1753_v45 = vpop.f32.mrf.mxu2  ;;  %v2640_v54 = vpack.c.bf16 %v2639_v53, %v2638_v43 }
 0x205   : > { %3455 = vrot.lane.b32.xlu1 %v1681_v58, %s4362_s29 }
 0x206   : > { %v1773_v62 = vpop.f32.mrf.mxu3 }
 0x208   : > { %v1813_v21 = vpop.f32.mrf.mxu1 }
 0x209   : > { %v1891_v5 = vpop.f32.mrf.mxu0  ;;  %4088 = vmatmul.msk.bf16.vlgmr.msrb.gmra.mxu2 %vm674_vm0, %v6412_v23  ;;  %v6422_v23 = vld [vmem:[#allocation36_spill] sm:$0xff] }
 0x20a   : > { %3161 = vrot.lane.b32.xlu0 %v1771_v18, %s4364_s23  ;;  %3249 = vrot.lane.b32.xlu2 %v1795_v33, %s4363_s19  ;;  %v2620_v18 = vpack.c.bf16 %v2619_v48, %v2618_v12 }
 0x20b   : > { %4087 = vmatmul.msk.bf16.vlgmr.msrb.gmra.mxu1 %vm674_vm0, %v6414_v49  ;;  %4089 = vmatmul.msk.bf16.vlgmr.msrb.gmra.mxu3 %vm674_vm0, %v6417_v10  ;;  %v2799_v10 = vmul.f32 %v5409_v51, %v4921_v2 }
 0x20c   : > { %4090 = vmatmul.msk.bf16.vlgmr.msra.gmra.mxu0 %vm674_vm0, %v2598_v50  ;;  %v1835_v58 = vpop.f32.mrf.mxu2  ;;  %2730 = vmatpush.bf16.msrb.mxu2 %v6360_v22  ;;  %v6423_v50 = vld [vmem:[#allocation35_spill] sm:$0xff] }
 0x20d   : > { %3097 = vrot.lane.b32.xlu1 %v1751_v32, %s4363_s19  ;;  %2710 = vmatpush.bf16.msrb.mxu1 %v6360_v22  ;;  %v6424_v25 = vpack.c.bf16 %v6422_v23, %v6423_v50 }
 0x20e   : > { %v1855_v63 = vpop.f32.mrf.mxu3  ;;  %2750 = vmatpush.bf16.msrb.mxu3 %v6360_v22  ;;  %2788 = vmatpush.bf16.msra.mxu0 %v6360_v22 }
 0x210   : > { %v1815_v30 = vpop.f32.mrf.mxu1  ;;  %2731 = vmatpush.bf16.msrb.mxu2 %v6360_v22 }
 0x211   : > { %v1893_v19 = vpop.f32.mrf.mxu0  ;;  %2711 = vmatpush.bf16.msrb.mxu1 %v6360_v22 }
 0x212   : > { %3099 = vrot.lane.b32.xlu0 %v1753_v45, %s4363_s19  ;;  %2948 = vrot.lane.b32.xlu2 %v1891_v5, %s4365_s15  ;;  %v6420_v5 = vld [vmem:[#allocation33_spill] sm:$0xff] }
 0x213   : > { %2751 = vmatpush.bf16.msrb.mxu3 %v6360_v22  ;;  %2789 = vmatpush.bf16.msra.mxu0 %v6360_v22  ;;  %v6421_v52 = vpack.c.bf16 %v6419_v46, %v6420_v5 }
 0x214   : > { %v1837_v6 = vpop.f32.mrf.mxu2 }
 0x215   : > { %3163 = vrot.lane.b32.xlu1 %v1773_v62, %s4364_s23 }
 0x216   : > { %v1857_v26 = vpop.f32.mrf.mxu3 }
 0x218   : > { %v1913_v55 = vpop.f32.mrf.mxu1 }
 0x219   : > { %v1973_v32 = vpop.f32.mrf.mxu0  ;;  %4092 = vmatmul.msk.bf16.vlgmr.msra.gmra.mxu2 %vm674_vm0, %v2640_v54 }
 0x21a   : > { %3397 = vrot.lane.b32.xlu0 %v1835_v58, %s4363_s19  ;;  %3461 = vrot.lane.b32.xlu2 %v1855_v63, %s4364_s23  ;;  %v2839_v58 = vmul.f32 %v5409_v51, %v5133_v11 }
 0x21b   : > { %4091 = vmatmul.msk.bf16.vlgmr.msra.gmra.mxu1 %vm674_vm0, %v2620_v18  ;;  %4093 = vmatmul.msk.bf16.vlgmr.msra.gmra.mxu3 %vm674_vm0, %v2660_v3 }
 0x21c   : > { %4094 = vmatmul.msk.bf16.vlgmr.msrb.gmra.mxu0 %vm674_vm0, %v6418_v56  ;;  %2830 = vmatpush.bf16.msra.mxu2 %v6360_v22  ;;  %v1933_v59 = vpop.f32.mrf.mxu2 }
 0x21d   : > { %3311 = vrot.lane.b32.xlu1 %v1813_v21, %s4364_s23  ;;  %2810 = vmatpush.bf16.msra.mxu1 %v6360_v22 }
 0x21e   : > { %v1953_v27 = vpop.f32.mrf.mxu3  ;;  %2850 = vmatpush.bf16.msra.mxu3 %v6360_v22  ;;  %2870 = vmatpush.bf16.msrb.mxu0 %v6360_v22 }
 0x220   : > { %v1915_v33 = vpop.f32.mrf.mxu1  ;;  %2831 = vmatpush.bf16.msra.mxu2 %v6360_v22 }
 0x221   : > { %2811 = vmatpush.bf16.msra.mxu1 %v6360_v22  ;;  %v1975_v60 = vpop.f32.mrf.mxu0 }
 0x222   : > { %2950 = vrot.lane.b32.xlu0 %v1893_v19, %s4365_s15  ;;  %3313 = vrot.lane.b32.xlu2 %v1815_v30, %s4364_s23  ;;  %v2820_v30 = vpack.c.bf16 %v2819_v31, %v2818_v35  ;;  %v2798_v19 = vmul.f32 %v5407_v7, %v4946_v4  ;;  %v5750_v7 = vpop.xlane.xlu2 %817 }
 0x223   : > { %2851 = vmatpush.bf16.msra.mxu3 %v6360_v22  ;;  %2871 = vmatpush.bf16.msrb.mxu0 %v6360_v22  ;;  %4258 = vrcp.f32 %v5750_v7 }
 0x224   : > { %v1935_v21 = vpop.f32.mrf.mxu2  ;;  %v2800_v53 = vpack.c.bf16 %v2799_v10, %v2798_v19 }
 0x225   : > { %3463 = vrot.lane.b32.xlu1 %v1857_v26, %s4364_s23 }
 0x226   : > { %v1955_v45 = vpop.f32.mrf.mxu3 }
 0x228   : > { %v5689_v62 = vpop.f32.mrf.mxu1 }
 0x229   : > { %4096 = vmatmul.msk.bf16.vlgmr.msrb.gmra.mxu2 %vm674_vm0, %v6421_v52  ;;  %v2071_v49 = vpop.f32.mrf.mxu0 }
 0x22a   : > { %3399 = vrot.lane.b32.xlu0 %v1837_v6, %s4363_s19  ;;  %3105 = vrot.lane.b32.xlu2 %v1933_v59, %s4365_s15  ;;  %v2840_v6 = vpack.c.bf16 %v2839_v58, %v2838_v16  ;;  %s4116_s19 = sshll.u32 %s4541_s30, 4 }
 0x22b   : > { %4095 = vmatmul.msk.bf16.vlgmr.msrb.gmra.mxu1 %vm674_vm0, %v6424_v25  ;;  %4097 = vmatmul.msk.bf16.vlgmr.msrb.gmra.mxu3 %vm674_vm0, %v2740_v17 }
 0x22c   : > { %4098 = vmatmul.msk.bf16.vlgmr.msra.gmra.mxu0 %vm674_vm0, %v2778_v1  ;;  %2910 = vmatpush.bf16.msrb.mxu2 %v6360_v22  ;;  %v2013_v17 = vpop.f32.mrf.mxu2 }
 0x22d   : > { %3004 = vrot.lane.b32.xlu1 %v1913_v55, %s4366_s12  ;;  %2890 = vmatpush.bf16.msrb.mxu1 %v6360_v22 }
 0x22e   : > { %2930 = vmatpush.bf16.msrb.mxu3 %v6360_v22  ;;  %v5713_v9 = vpop.f32.mrf.mxu3 }
 0x230   : > { %v1995_v29 = vpop.f32.mrf.mxu1  ;;  %2911 = vmatpush.bf16.msrb.mxu2 %v6360_v22 }
 0x231   : > { %2891 = vmatpush.bf16.msrb.mxu1 %v6360_v22  ;;  %v2073_v63 = vpop.f32.mrf.mxu0 }
 0x232   : > { %3169 = vrot.lane.b32.xlu0 %v1953_v27, %s4366_s12  ;;  %3257 = vrot.lane.b32.xlu2 %v1975_v60, %s4365_s15 }
 0x233   : > { %2931 = vmatpush.bf16.msrb.mxu3 %v6360_v22 }
 0x234   : > { %v2015_v4 = vpop.f32.mrf.mxu2 }
 0x235   : > { %3255 = vrot.lane.b32.xlu1 %v1973_v32, %s4365_s15 }
 0x236   : > { %v5737_v2 = vpop.f32.mrf.mxu3 }
 0x238   : > { %v2093_v22 = vpop.f32.mrf.mxu1 }
 0x239   : > { %4100 = vmatmul.msk.bf16.vlgmr.msra.gmra.mxu2 %vm674_vm0, %v2820_v30  ;;  %v2153_v11 = vpop.f32.mrf.mxu0 }
 0x23a   : > { %3006 = vrot.lane.b32.xlu0 %v1915_v33, %s4366_s12  ;;  %3321 = vrot.lane.b32.xlu2 %v1995_v29, %s4366_s12 }
 0x23b   : > { %4099 = vmatmul.msk.bf16.vlgmr.msra.gmra.mxu1 %vm674_vm0, %v2800_v53  ;;  %4101 = vmatmul.msk.bf16.vlgmr.msra.gmra.mxu3 %vm674_vm0, %v2840_v6 }
 0x23c   : > { %4102 = vmatmul.msk.bf16.vlgmr.msrb.gmra.mxu0 %vm674_vm0, %v2860_v34  ;;  %v2113_v43 = vpop.f32.mrf.mxu2 }
 0x23d   : > { %3107 = vrot.lane.b32.xlu1 %v1935_v21, %s4365_s15 }
 0x23e   : > { %v2133_v51 = vpop.f32.mrf.mxu3 }
 0x240   : > { %v5748_v14 = vpop.f32.mrf.mxu1 }
 0x241   : > { %v5759_v42 = vpop.f32.mrf.mxu0 }
 0x242   : > { %2958 = vrot.lane.b32.xlu0 %v2073_v63, %s4367_s22  ;;  %3407 = vrot.lane.b32.xlu2 %v2015_v4, %s4365_s15 }
 0x243   : > { %v5769_v39 = vpop.permute.xlu2 %3153 }
 0x244   : > { %v2115_v34 = vpop.f32.mrf.mxu2 }
 0x245   : > { %3171 = vrot.lane.b32.xlu1 %v1955_v45, %s4366_s12 }
 0x246   : > { %v5772_v13 = vpop.f32.mrf.mxu3 }
 0x248   : > { %v2173_v38 = vpop.f32.mrf.mxu1 }
 0x249   : > { %4104 = vmatmul.msk.bf16.vlgmr.msrb.gmra.mxu2 %vm674_vm0, %v2900_v0  ;;  %v2251_v37 = vpop.f32.mrf.mxu0 }
 0x24a   : > { %3113 = vrot.lane.b32.xlu0 %v2113_v43, %s4367_s22  ;;  %3012 = vrot.lane.b32.xlu2 %v2093_v22, %s4368_s0 }
 0x24b   : > { %4103 = vmatmul.msk.bf16.vlgmr.msrb.gmra.mxu1 %vm674_vm0, %v2880_v36  ;;  %4105 = vmatmul.msk.bf16.vlgmr.msrb.gmra.mxu3 %vm674_vm0, %v2920_v57  ;;  %vm3053_vm0 = vcmask 15360  }
 0x24c   : > { %v2193_v24 = vpop.f32.mrf.mxu2 }
 0x24d   : > { %2956 = vrot.lane.b32.xlu1 %v2071_v49, %s4367_s22 }
 0x24e   : > { %v2213_v40 = vpop.f32.mrf.mxu3 }
 0x250   : > { %v2175_v41 = vpop.f32.mrf.mxu1 }
 0x251   : > { %v5785_v48 = vpop.f32.mrf.mxu0 }
 0x252   : > { %3327 = vrot.lane.b32.xlu0 %v2173_v38, %s4368_s0  ;;  %3263 = vrot.lane.b32.xlu2 %v2153_v11, %s4367_s22 }
 0x254   : > { %v5776_v0 = vpop.permute.xlu2 %3247  ;;  %v5795_v44 = vpop.f32.mrf.mxu2 }
 0x255   : > { %3319 = vrot.lane.b32.xlu1 %v5689_v62, %s4366_s12 }
 0x256   : > { %v5797_v55 = vpop.f32.mrf.mxu3 }
 0x258   : > { %v2273_v26 = vpop.f32.mrf.mxu1 }
 0x259   : > { %v2333_v18 = vpop.f32.mrf.mxu0 }
 0x25a   : > { %3477 = vrot.lane.b32.xlu0 %v2213_v40, %s4368_s0  ;;  %3115 = vrot.lane.b32.xlu2 %v2115_v34, %s4367_s22 }
 0x25c   : > { %v2941_v36 = vpop.permute.xlu0 %2940  ;;  %v5782_v57 = vpop.permute.xlu2 %2998 }
 0x25d   : > { %3405 = vrot.lane.b32.xlu1 %v2013_v17, %s4365_s15  ;;  %v3051_v3 = vsel %vm3050_vm8, 0.0, %v2941_v36  ;;  %v5811_v60 = vpop.f32.mrf.mxu2 }
 0x25e   : > { %v2313_v8 = vpop.f32.mrf.mxu3 }
 0x25f   : > { %v5787_v20 = vpop.permute.xlu1 %3303 }
 0x260   : > { %v2275_v45 = vpop.f32.mrf.mxu1 }
 0x261   : > { %v2335_v21 = vpop.f32.mrf.mxu0 }
 0x262   : > { %3020 = vrot.lane.b32.xlu0 %v2273_v26, %s4369_s13  ;;  %2964 = vrot.lane.b32.xlu2 %v2251_v37, %s4370_s11 }
 0x264   : > { %v5791_v54 = vpop.permute.xlu0 %3453  ;;  %v3250_v12 = vpop.permute.xlu2 %3249 }
 0x265   : > { %3469 = vrot.lane.b32.xlu1 %v5713_v9, %s4366_s12  ;;  %v2295_v5 = vpop.f32.mrf.mxu2  ;;  %v3366_v19 = vsel %vm3050_vm8, 0.0, %v3250_v12 }
 0x266   : > { %v5830_v50 = vpop.f32.mrf.mxu3 }
 0x267   : > { %v2943_v32 = vpop.permute.xlu1 %2942 }
 0x268   : > { %v2353_v23 = vpop.f32.mrf.mxu1 }
 0x269   : > { %v2431_v25 = vpop.f32.mrf.mxu0 }
 0x26a   : > { %3271 = vrot.lane.b32.xlu0 %v2333_v18, %s4370_s11  ;;  %3413 = vrot.lane.b32.xlu2 %v2193_v24, %s4367_s22 }
 0x26c   : > { %v5802_v56 = vpop.permute.xlu0 %3305  ;;  %v2949_v27 = vpop.permute.xlu2 %2948 }
 0x26d   : > { %v5805_v59 = vsel %vm3053_vm0, %v3051_v3, %v2949_v27  ;;  %3471 = vrot.lane.b32.xlu1 %v5737_v2, %s4366_s12  ;;  %v2373_v31 = vpop.f32.mrf.mxu2  ;;  %v3365_v27 = vsel %vm3050_vm8, 0.0, %v5776_v0  ;;  %s637_s12 = scalar_lea.vmem %s6290_s7, %s4116_s19 }
 0x26e   : > { %v2393_v63 = vpop.f32.mrf.mxu3 }
 0x26f   : > { %v5809_v33 = vpop.permute.xlu1 %3155 }
 0x270   : > { %6426 = vst [vmem:[#allocation12_spill] sm:$0xff] %v5809_v33  ;;  %v2355_v10 = vpop.f32.mrf.mxu1 }
 0x271   : > { %v2433_v30 = vpop.f32.mrf.mxu0 }
 0x272   : > { %3185 = vrot.lane.b32.xlu0 %v2313_v8, %s4369_s13  ;;  %3329 = vrot.lane.b32.xlu2 %v2175_v41, %s4368_s0 }
 0x274   : > { %v5815_v62 = vpop.permute.xlu0 %2996  ;;  %v5817_v15 = vpop.permute.xlu2 %3461 }
 0x275   : > { %3177 = vrot.lane.b32.xlu1 %v2133_v51, %s4368_s0  ;;  %v2375_v6 = vpop.f32.mrf.mxu2 }
 0x276   : > { %v2395_v38 = vpop.f32.mrf.mxu3 }
 0x277   : > { %v5820_v46 = vpop.permute.xlu1 %3455 }
 0x278   : > { %v2453_v4 = vpop.f32.mrf.mxu1 }
 0x279   : > { %v2513_v11 = vpop.f32.mrf.mxu0 }
 0x27a   : > { %3273 = vrot.lane.b32.xlu0 %v2335_v21, %s4370_s11  ;;  %3022 = vrot.lane.b32.xlu2 %v2275_v45, %s4369_s13 }
 0x27c   : > { %v5824_v52 = vpop.permute.xlu0 %3161  ;;  %v5826_v1 = vpop.permute.xlu2 %3313 }
 0x27d   : > { %3014 = vrot.lane.b32.xlu1 %v5748_v14, %s4368_s0  ;;  %v3052_v14 = vsel %vm3050_vm8, 0.0, %v2943_v32  ;;  %v2473_v37 = vpop.f32.mrf.mxu2 }
 0x27f   : > { %v3098_v49 = vpop.permute.xlu1 %3097 }
 0x280   : > { %v3215_v29 = vsel %vm3050_vm8, 0.0, %v3098_v49  ;;  %v2455_v41 = vpop.f32.mrf.mxu1 }
 0x281   : > { %v2515_v36 = vpop.f32.mrf.mxu0 }
 0x282   : > { %3123 = vrot.lane.b32.xlu0 %v2295_v5, %s4370_s11  ;;  %3335 = vrot.lane.b32.xlu2 %v2353_v23, %s4369_s13 }
 0x284   : > { %v5835_v9 = vpop.permute.xlu0 %3099  ;;  %v3106_v17 = vpop.permute.xlu2 %3105 }
 0x285   : > { %v5838_v35 = vsel %vm3053_vm0, %v3215_v29, %v3106_v17  ;;  %3265 = vrot.lane.b32.xlu1 %v5759_v42, %s4367_s22  ;;  %v2475_v32 = vpop.f32.mrf.mxu2  ;;  %v3216_v0 = vsel %vm3050_vm8, 0.0, %v5835_v9 }
 0x287   : > { %v5842_v58 = vpop.permute.xlu1 %3163 }
 0x288   : > { %6427 = vst [vmem:[#allocation11_spill] sm:$0xff] %v5842_v58 }
 0x289   : > { %v2611_v8 = vpop.f32.mrf.mxu0 }
 0x28a   : > { %2972 = vrot.lane.b32.xlu0 %v2431_v25, %s4371_s27  ;;  %3485 = vrot.lane.b32.xlu2 %v2393_v63, %s4369_s13 }
 0x28c   : > { %v5847_v16 = vpop.permute.xlu0 %3397  ;;  %v3258_v22 = vpop.permute.xlu2 %3257 }
 0x28d   : > { %v5850_v53 = vsel %vm3053_vm0, %v3366_v19, %v3258_v22  ;;  %2966 = vrot.lane.b32.xlu1 %v5785_v48, %s4370_s11  ;;  %v2553_v49 = vpop.f32.mrf.mxu2 }
 0x28f   : > { %v5854_v2 = vpop.permute.xlu1 %3311 }
 0x292   : > { %3421 = vrot.lane.b32.xlu0 %v2373_v31, %s4370_s11  ;;  %2974 = vrot.lane.b32.xlu2 %v2433_v30, %s4371_s27 }
 0x294   : > { %v2951_v51 = vpop.permute.xlu0 %2950  ;;  %v5859_v43 = vpop.permute.xlu2 %3321 }
 0x295   : > { %v3055_v42 = vsel %vm3053_vm0, %v3052_v14, %v2951_v51  ;;  %3415 = vrot.lane.b32.xlu1 %v5795_v44, %s4367_s22  ;;  %v2493_v44 = vpop.f32.mrf.mxu3  ;;  %v2555_v9 = vpop.f32.mrf.mxu2 }
 0x297   : > { %v5864_v34 = vpop.permute.xlu1 %3463 }
 0x29a   : > { %3423 = vrot.lane.b32.xlu0 %v2375_v6, %s4370_s11  ;;  %3337 = vrot.lane.b32.xlu2 %v2355_v10, %s4369_s13  ;;  %v2613_v10 = vpop.f32.mrf.mxu0 }
 0x29c   : > { %v3400_v40 = vpop.permute.xlu0 %3399  ;;  %v3408_v24 = vpop.permute.xlu2 %3407 }
 0x29d   : > { %v3516_v48 = vsel %vm3050_vm8, 0.0, %v3400_v40  ;;  %3479 = vrot.lane.b32.xlu1 %v5797_v55, %s4368_s0  ;;  %v2533_v55 = vpop.f32.mrf.mxu1  ;;  %v5889_v5 = vpop.f32.mrf.mxu3 }
 0x29e   : > { %v5872_v26 = vsel %vm3053_vm0, %v3516_v48, %v3408_v24  ;;  %v2653_v40 = vpop.f32.mrf.mxu2 }
 0x29f   : > { %v5874_v12 = vpop.permute.xlu1 %3004 }
 0x2a2   : > { %3193 = vrot.lane.b32.xlu0 %v2493_v44, %s4372_s28  ;;  %3487 = vrot.lane.b32.xlu2 %v2395_v38, %s4369_s13  ;;  %v2693_v44 = vpop.f32.mrf.mxu0 }
 0x2a4   : > { %v5878_v18 = vpop.permute.xlu0 %3169  ;;  %v5880_v3 = vpop.permute.xlu2 %3012 }
 0x2a5   : > { %3121 = vrot.lane.b32.xlu1 %v5811_v60, %s4370_s11  ;;  %v2535_v31 = vpop.f32.mrf.mxu1  ;;  %v2573_v19 = vpop.f32.mrf.mxu3 }
 0x2a7   : > { %v3256_v45 = vpop.permute.xlu1 %3255 }
 0x2a8   : > { %v3367_v21 = vsel %vm3053_vm0, %v3365_v27, %v3256_v45  ;;  %v2655_v45 = vpop.f32.mrf.mxu2 }
 0x2aa   : > { %3030 = vrot.lane.b32.xlu0 %v2455_v41, %s4372_s28  ;;  %3129 = vrot.lane.b32.xlu2 %v2473_v37, %s4371_s27 }
 0x2ac   : > { %v5891_v23 = vpop.permute.xlu0 %3006  ;;  %v3264_v25 = vpop.permute.xlu2 %3263 }
 0x2ad   : > { %v5894_v60 = vsel %vm3056_vm9, %v3367_v21, %v3264_v25  ;;  %3028 = vrot.lane.b32.xlu1 %v2453_v4, %s4372_s28  ;;  %v2633_v14 = vpop.f32.mrf.mxu1  ;;  %v3515_v21 = vsel %vm3050_vm8, 0.0, %v5847_v16 }
 0x2af   : > { %v3108_v29 = vpop.permute.xlu1 %3107 }
 0x2b0   : > { %v3218_v17 = vsel %vm3053_vm0, %v3216_v0, %v3108_v29  ;;  %v2695_v29 = vpop.f32.mrf.mxu0 }
 0x2b2   : > { %2982 = vrot.lane.b32.xlu0 %v2613_v10, %s4373_s24  ;;  %3281 = vrot.lane.b32.xlu2 %v2515_v36, %s4371_s27  ;;  %v2733_v10 = vpop.f32.mrf.mxu2 }
 0x2b4   : > { %v2959_v63 = vpop.permute.xlu0 %2958  ;;  %v3116_v30 = vpop.permute.xlu2 %3115 }
 0x2b5   : > { %v5903_v22 = vsel %vm3056_vm9, %v3055_v42, %v2959_v63  ;;  %v5906_v6 = vsel %vm3056_vm9, %v3218_v17, %v3116_v30  ;;  %3279 = vrot.lane.b32.xlu1 %v2513_v11, %s4371_s27  ;;  %v2575_v42 = vpop.f32.mrf.mxu3  ;;  %v2635_v48 = vpop.f32.mrf.mxu1 }
 0x2b7   : > { %v5909_v4 = vpop.permute.xlu1 %3171 }
 0x2b8   : > { %6428 = vst [vmem:[#allocation14_spill] sm:$0xff] %v5909_v4 }
 0x2ba   : > { %3345 = vrot.lane.b32.xlu0 %v2535_v31, %s4372_s28  ;;  %3431 = vrot.lane.b32.xlu2 %v2555_v9, %s4371_s27 }
 0x2bc   : > { %v3114_v51 = vpop.permute.xlu0 %3113  ;;  %v2965_v38 = vpop.permute.xlu2 %2964 }
 0x2bd   : > { %v5915_v37 = vsel %vm3056_vm9, %v5838_v35, %v3114_v51  ;;  %3131 = vrot.lane.b32.xlu1 %v2475_v32, %s4371_s27  ;;  %v2673_v32 = vpop.f32.mrf.mxu3  ;;  %v2791_v51 = vpop.f32.mrf.mxu0 }
 0x2bf   : > { %v2957_v41 = vpop.permute.xlu1 %2956 }
 0x2c0   : > { %v3057_v11 = vsel %vm3056_vm9, %v5805_v59, %v2957_v41  ;;  %v2735_v41 = vpop.f32.mrf.mxu2 }
 0x2c2   : > { %3137 = vrot.lane.b32.xlu0 %v2653_v40, %s4373_s24  ;;  %3495 = vrot.lane.b32.xlu2 %v2575_v42, %s4372_s28 }
 0x2c4   : > { %v5922_v24 = vpop.permute.xlu0 %3327  ;;  %v3414_v36 = vpop.permute.xlu2 %3413 }
 0x2c5   : > { %2980 = vrot.lane.b32.xlu1 %v2611_v8, %s4373_s24  ;;  %v2713_v8 = vpop.f32.mrf.mxu1  ;;  %v5946_v63 = vpop.f32.mrf.mxu3 }
 0x2c7   : > { %v5925_v35 = vpop.permute.xlu1 %3319 }
 0x2ca   : > { %3201 = vrot.lane.b32.xlu0 %v2673_v32, %s4374_s25  ;;  %3036 = vrot.lane.b32.xlu2 %v2633_v14, %s4374_s25  ;;  %v3060_v14 = vsel %vm3059_vm10, %v3057_v11, %v2965_v38 }
 0x2cc   : > { %v5929_v59 = vpop.permute.xlu0 %3477  ;;  %v5931_v27 = vpop.permute.xlu2 %3329 }
 0x2cd   : > { %3343 = vrot.lane.b32.xlu1 %v2533_v55, %s4372_s28  ;;  %v2715_v16 = vpop.f32.mrf.mxu1  ;;  %v2753_v40 = vpop.f32.mrf.mxu3 }
 0x2cf   : > { %v3406_v25 = vpop.permute.xlu1 %3405 }
 0x2d0   : > { %v3517_v0 = vsel %vm3053_vm0, %v3515_v21, %v3406_v25 }
 0x2d1   : > { %v3519_v38 = vsel %vm3056_vm9, %v3517_v0, %v3414_v36  ;;  %v2833_v36 = vpop.f32.mrf.mxu2 }
 0x2d2   : > { %3351 = vrot.lane.b32.xlu0 %v2713_v8, %s4374_s25  ;;  %3287 = vrot.lane.b32.xlu2 %v2693_v44, %s4373_s24 }
 0x2d4   : > { %v5939_v17 = vpop.permute.xlu0 %3020  ;;  %v5941_v31 = vpop.permute.xlu2 %3022 }
 0x2d5   : > { %3429 = vrot.lane.b32.xlu1 %v2553_v49, %s4371_s27  ;;  %v2755_v8 = vpop.f32.mrf.mxu3  ;;  %s642_s27 = scalar_lea.vmem %s6291_s8, %s4116_s19 }
 0x2d7   : > { %v5944_v55 = vpop.permute.xlu1 %3469 }
 0x2da   : > { %3353 = vrot.lane.b32.xlu0 %v2715_v16, %s4374_s25  ;;  %3139 = vrot.lane.b32.xlu2 %v2655_v45, %s4373_s24 }
 0x2dc   : > { %v3272_v30 = vpop.permute.xlu0 %3271  ;;  %v5950_v9 = vpop.permute.xlu2 %3335 }
 0x2dd   : > { %v5955_v49 = vsel %vm3059_vm10, %v5894_v60, %v3272_v30  ;;  %3493 = vrot.lane.b32.xlu1 %v2573_v19, %s4372_s28  ;;  %v2793_v60 = vpop.f32.mrf.mxu0  ;;  %v2813_v19 = vpop.f32.mrf.mxu1 }
 0x2df   : > { %v5958_v42 = vpop.permute.xlu1 %3471 }
 0x2e2   : > { %3439 = vrot.lane.b32.xlu0 %v2735_v41, %s4373_s24  ;;  %2988 = vrot.lane.b32.xlu2 %v2791_v51, %s4375_s26 }
 0x2e4   : > { %v5962_v44 = vpop.permute.xlu0 %3185  ;;  %v5964_v32 = vpop.permute.xlu2 %3485 }
 0x2e5   : > { %3038 = vrot.lane.b32.xlu1 %v2635_v48, %s4374_s25  ;;  %v2873_v16 = vpop.f32.mrf.mxu0  ;;  %v2815_v41 = vpop.f32.mrf.mxu1 }
 0x2e7   : > { %v5968_v11 = vpop.permute.xlu1 %3177 }
 0x2ea   : > { %3044 = vrot.lane.b32.xlu0 %v2813_v19, %s4376_s20  ;;  %3437 = vrot.lane.b32.xlu2 %v2733_v10, %s4373_s24  ;;  %v2853_v10 = vpop.f32.mrf.mxu3 }
 0x2ec   : > { %v3274_v45 = vpop.permute.xlu0 %3273  ;;  %v2975_v21 = vpop.permute.xlu2 %2974 }
 0x2ed   : > { %3289 = vrot.lane.b32.xlu1 %v2695_v29, %s4373_s24 }
 0x2ef   : > { %v5973_v25 = vpop.permute.xlu1 %3014 }
 0x2f2   : > { %3295 = vrot.lane.b32.xlu0 %v2873_v16, %s4375_s26  ;;  %3501 = vrot.lane.b32.xlu2 %v2753_v40, %s4374_s25 }
 0x2f4   : > { %v3124_v48 = vpop.permute.xlu0 %3123  ;;  %v5977_v0 = vpop.permute.xlu2 %3337 }
 0x2f5   : > { %v5981_v30 = vsel %vm3059_vm10, %v5906_v6, %v3124_v48  ;;  %2990 = vrot.lane.b32.xlu1 %v2793_v60, %s4375_s26  ;;  %v2835_v6 = vpop.f32.mrf.mxu2 }
 0x2f7   : > { %v3266_v51 = vpop.permute.xlu1 %3265 }
 0x2f8   : > { %v3370_v29 = vsel %vm3056_vm9, %v5850_v53, %v3266_v51  ;;  %v2855_v51 = vpop.f32.mrf.mxu3 }
 0x2f9   : > { %v3372_v19 = vsel %vm3059_vm10, %v3370_v29, %v3274_v45  ;;  %v2893_v45 = vpop.f32.mrf.mxu1 }
 0x2fa   : > { %3209 = vrot.lane.b32.xlu0 %v2853_v10, %s4376_s20  ;;  %3503 = vrot.lane.b32.xlu2 %v2755_v8, %s4374_s25 }
 0x2fc   : > { %v2973_v40 = vpop.permute.xlu0 %2972  ;;  %v5989_v16 = vpop.permute.xlu2 %3487 }
 0x2fd   : > { %6429 = vst [vmem:[#allocation13_spill] sm:$0xff] %v5989_v16  ;;  %v5992_v48 = vsel %vm3062_vm11, %v3060_v14, %v2973_v40  ;;  %3145 = vrot.lane.b32.xlu1 %v2833_v36, %s4375_s26  ;;  %v2913_v14 = vpop.f32.mrf.mxu2  ;;  %v2875_v40 = vpop.f32.mrf.mxu0 }
 0x2ff   : > { %v2967_v60 = vpop.permute.xlu1 %2966 }
 0x300   : > { %v3061_v53 = vsel %vm3059_vm10, %v5903_v22, %v2967_v60 }
 0x301   : > { %v3064_v29 = vsel %vm3062_vm11, %v3061_v53, %v2975_v21 }
 0x302   : > { %3147 = vrot.lane.b32.xlu0 %v2835_v6, %s4375_s26  ;;  %3046 = vrot.lane.b32.xlu2 %v2815_v41, %s4376_s20  ;;  %v2933_v41 = vpop.f32.mrf.mxu3 }
 0x304   : > { %v3422_v8 = vpop.permute.xlu0 %3421  ;;  %v3130_v10 = vpop.permute.xlu2 %3129 }
 0x305   : > { %v6001_v61 = vsel %vm3059_vm10, %v3519_v38, %v3422_v8  ;;  %3359 = vrot.lane.b32.xlu1 %v2893_v45, %s4376_s20  ;;  %v2895_v45 = vpop.f32.mrf.mxu1  ;;  %v2915_v8 = vpop.f32.mrf.mxu2 }
 0x307   : > { %v3416_v36 = vpop.permute.xlu1 %3415 }
 0x308   : > { %v3520_v22 = vsel %vm3056_vm9, %v5872_v26, %v3416_v36 }
 0x30a   : > { %3445 = vrot.lane.b32.xlu0 %v2913_v14, %s4375_s26  ;;  %3297 = vrot.lane.b32.xlu2 %v2875_v40, %s4375_s26  ;;  %v2935_v40 = vpop.f32.mrf.mxu3 }
 0x30c   : > { %v3424_v6 = vpop.permute.xlu0 %3423  ;;  %v3282_v60 = vpop.permute.xlu2 %3281 }
 0x30d   : > { %v3522_v21 = vsel %vm3059_vm10, %v3520_v22, %v3424_v6  ;;  %v6010_v38 = vsel %vm3062_vm11, %v3372_v19, %v3282_v60  ;;  %3509 = vrot.lane.b32.xlu1 %v2933_v41, %s4376_s20 }
 0x30f   : > { %v6013_v53 = vpop.permute.xlu1 %3479 }
 0x312   : > { %3361 = vrot.lane.b32.xlu0 %v2895_v45, %s4376_s20  ;;  %3447 = vrot.lane.b32.xlu2 %v2915_v8, %s4375_s26 }
 0x314   : > { %v6017_v26 = vpop.permute.xlu0 %3193  ;;  %v3432_v14 = vpop.permute.xlu2 %3431 }
 0x315   : > { %v6020_v36 = vsel %vm3062_vm11, %v3522_v21, %v3432_v14  ;;  %3179 = vrot.lane.b32.xlu1 %v5772_v13, %s4368_s0 }
 0x317   : > { %v3122_v19 = vpop.permute.xlu1 %3121 }
 0x318   : > { %v3221_v22 = vsel %vm3059_vm10, %v5915_v37, %v3122_v19 }
 0x319   : > { %v6027_v41 = vsel %vm3062_vm11, %v3221_v22, %v3130_v10  ;;  %v3546_v22 = vld [vmem:[%s637_s12 + $0x8] sm:$0xff] }
 0x31a   : > { %3511 = vrot.lane.b32.xlu0 %v2935_v40, %s4376_s20  ;;  %3187 = vrot.lane.b32.xlu2 %v5830_v50, %s4369_s13 }
 0x31b   : > { %3568 = vmatpush.msra.mxu0 %v3546_v22 }
 0x31c   : > { %v6032_v6 = vpop.permute.xlu0 %3030  ;;  %v6034_v60 = vpop.permute.xlu2 %3495 }
 0x31d   : > { %6430 = vst [vmem:[#allocation16_spill] sm:$0xff] %v6034_v60  ;;  %3195 = vrot.lane.b32.xlu1 %v5889_v5, %s4372_s28 }
 0x31f   : > { %v3029_v13 = vpop.permute.xlu1 %3028 }
 0x322   : > { %3203 = vrot.lane.b32.xlu0 %v5946_v63, %s4374_s25  ;;  %3211 = vrot.lane.b32.xlu2 %v2855_v51, %s4376_s20 }
 0x324   : > { %v2983_v37 = vpop.permute.xlu0 %2982  ;;  %v3037_v10 = vpop.permute.xlu2 %3036 }
 0x325   : > { %v6042_v50 = vsel %vm3065_vm12, %v3064_v29, %v2983_v37 }
 0x327   : > { %v3280_v21 = vpop.permute.xlu1 %3279 }
 0x328   : > { %v3373_v45 = vsel %vm3062_vm11, %v5955_v49, %v3280_v21  ;;  %v3545_v21 = vld [vmem:[%s637_s12] sm:$0xff] }
 0x329   : > { %3569 = vmatpush.msra.mxu0 %v3545_v21 }
 0x32c   : > { %v6046_v8 = vpop.permute.xlu0 %3345  ;;  %v3288_v5 = vpop.permute.xlu2 %3287 }
 0x32f   : > { %v3132_v14 = vpop.permute.xlu1 %3131 }
 0x330   : > { %v3224_v19 = vsel %vm3062_vm11, %v5981_v30, %v3132_v14 }
 0x334   : > { %v6051_v63 = vpop.permute.xlu0 %3137  ;;  %v3140_v51 = vpop.permute.xlu2 %3139 }
 0x335   : > { %v6059_v29 = vsel %vm3065_vm12, %v3224_v19, %v3140_v51 }
 0x337   : > { %v2981_v49 = vpop.permute.xlu1 %2980 }
 0x338   : > { %v3066_v19 = vsel %vm3065_vm12, %v5992_v48, %v2981_v49 }
 0x33c   : > { %v6061_v40 = vpop.permute.xlu0 %3201  ;;  %v2989_v37 = vpop.permute.xlu2 %2988 }
 0x33d   : > { %v3069_v51 = vsel %vm3068_vm13, %v3066_v19, %v2989_v37 }
 0x33e   : > { %v3072_v21 = vsel %vm3071_vm14, %v3069_v51, %v5733_v28  ;;  %v3578_v51 = vld [vmem:[%s642_s27 + $0x8] sm:$0xff] }
 0x33f   : > { %v6063_v30 = vpop.permute.xlu1 %3343  ;;  %v3075_v60 = vsel %vm3074_vm15, %v3072_v21, %v5815_v62  ;;  %3599 = vmatpush.msra.mxu1 %v3578_v51  ;;  %3628 = vmatpush.msra.mxu2 %v3578_v51 }
 0x340   : > { %v3078_v48 = vsel %vm3077_vm1, %v3075_v60, %v5874_v12  ;;  %v3577_v60 = vld [vmem:[%s642_s27] sm:$0xff]  ;;  %3657 = vmatpush.msra.mxu3 %v3578_v51 }
 0x341   : > { %v3081_v49 = vsel %vm3080_vm2, %v3078_v48, %v5880_v3  ;;  %3600 = vmatpush.msra.mxu1 %v3577_v60  ;;  %3629 = vmatpush.msra.mxu2 %v3577_v60 }
 0x342   : > { %v3084_v62 = vsel %vm3083_vm3, %v3081_v49, %v5939_v17  ;;  %3658 = vmatpush.msra.mxu3 %v3577_v60 }
 0x343   : > { %v3087_v3 = vsel %vm3086_vm4, %v3084_v62, %v3029_v13 }
 0x344   : > { %v6065_v14 = vpop.permute.xlu0 %3351  ;;  %v6067_v47 = vpop.permute.xlu2 %3437  ;;  %v3090_v48 = vsel %vm3089_vm5, %v3087_v3, %v3037_v10 }
 0x347   : > { %v6072_v22 = vpop.permute.xlu1 %3429 }
 0x34c   : > { %v6076_v4 = vpop.permute.xlu0 %3353  ;;  %v6078_v58 = vpop.permute.xlu2 %3501 }
 0x34f   : > { %v6082_v33 = vpop.permute.xlu1 %3493 }
 0x354   : > { %v6093_v37 = vpop.permute.xlu0 %3439  ;;  %v6095_v19 = vpop.permute.xlu2 %3503 }
 0x355   : > { %6431 = vst [vmem:[#allocation15_spill] sm:$0xff] %v6095_v19  ;;  %v3375_v19 = vsel %vm3065_vm12, %v3373_v45, %v3288_v5 }
 0x357   : > { %v3039_v12 = vpop.permute.xlu1 %3038 }
 0x35c   : > { %v3045_v21 = vpop.permute.xlu0 %3044  ;;  %v3047_v28 = vpop.permute.xlu2 %3046 }
 0x35d   : > { %v3093_v17 = vsel %vm3092_vm6, %v3090_v48, %v3045_v21 }
 0x35e   : > { %4106 = vmatmul.msk.f32.vlgmr.msra.gmra.mxu0 %vm3547_vm7, %v3093_v17 }
 0x35f   : > { %v3290_v49 = vpop.permute.xlu1 %3289 }
 0x360   : > { %v3376_v51 = vsel %vm3065_vm12, %v6010_v38, %v3290_v49 }
 0x364   : > { %v3296_v13 = vpop.permute.xlu0 %3295  ;;  %v3298_v62 = vpop.permute.xlu2 %3297 }
 0x365   : > { %v3377_v16 = vsel %vm3068_vm13, %v3375_v19, %v3296_v13  ;;  %v3378_v60 = vsel %vm3068_vm13, %v3376_v51, %v3298_v62 }
 0x366   : > { %v3379_v10 = vsel %vm3071_vm14, %v3377_v16, %v5787_v20  ;;  %v3380_v3 = vsel %vm3071_vm14, %v3378_v60, %v5802_v56 }
 0x367   : > { %v3382_v21 = vsel %vm3074_vm15, %v3380_v3, %v5826_v1  ;;  %v2991_v48 = vpop.permute.xlu1 %2990  ;;  %v3381_v45 = vsel %vm3074_vm15, %v3379_v10, %v5854_v2 }
 0x368   : > { %v3384_v38 = vsel %vm3077_vm1, %v3382_v21, %v5859_v43  ;;  %v3070_v5 = vsel %vm3068_vm13, %v6042_v50, %v2991_v48  ;;  %v3383_v2 = vsel %vm3077_vm1, %v3381_v45, %v5925_v35 }
 0x369   : > { %v3073_v19 = vsel %vm3071_vm14, %v3070_v5, %v5750_v7  ;;  %v3386_v20 = vsel %vm3080_vm2, %v3384_v38, %v5931_v27  ;;  %v6434_v5 = vld [vmem:[#allocation16_spill] sm:$0xff] }
 0x36a   : > { %v3076_v56 = vsel %vm3074_vm15, %v3073_v19, %v5782_v57  ;;  %v3388_v1 = vsel %vm3083_vm3, %v3386_v20, %v5977_v0  ;;  %v3385_v0 = vsel %vm3080_vm2, %v3383_v2, %v5922_v24  ;;  %v6435_v20 = vld [vmem:[#allocation11_spill] sm:$0xff] }
 0x36b   : > { %v3079_v43 = vsel %vm3077_vm1, %v3076_v56, %v5891_v23  ;;  %v3390_v16 = vsel %vm3086_vm4, %v3388_v1, %v6046_v8  ;;  %v3225_v23 = vsel %vm3065_vm12, %v6027_v41, %v6051_v63 }
 0x36c   : > { %v3082_v50 = vsel %vm3080_vm2, %v3079_v43, %v5973_v25  ;;  %v3210_v17 = vpop.permute.xlu0 %3209  ;;  %v3448_v63 = vpop.permute.xlu2 %3447 }
 0x36d   : > { %v3085_v27 = vsel %vm3083_vm3, %v3082_v50, %v5941_v31 }
 0x36e   : > { %v3088_v57 = vsel %vm3086_vm4, %v3085_v27, %v6032_v6  ;;  %v3387_v6 = vsel %vm3083_vm3, %v3385_v0, %v5950_v9  ;;  %v3526_v9 = vsel %vm3065_vm12, %v6020_v36, %v6093_v37  ;;  %v3523_v36 = vsel %vm3062_vm11, %v6001_v61, %v6072_v22 }
 0x36f   : > { %v3146_v35 = vpop.permute.xlu1 %3145  ;;  %v3091_v8 = vsel %vm3089_vm5, %v3088_v57, %v3039_v12 }
 0x370   : > { %v3227_v49 = vsel %vm3068_vm13, %v3225_v23, %v3146_v35  ;;  %v3094_v25 = vsel %vm3092_vm6, %v3091_v8, %v3047_v28  ;;  %v3389_v28 = vsel %vm3086_vm4, %v3387_v6, %v6063_v30 }
 0x371   : > { %v3229_v31 = vsel %vm3071_vm14, %v3227_v49, %v5769_v39  ;;  %4107 = vmatmul.msk.f32.gmra.mxu0 %vm3547_vm7, %v3094_v25 }
 0x372   : > { %v3231_v24 = vsel %vm3074_vm15, %v3229_v31, %v5824_v52 }
 0x373   : > { %v3233_v41 = vsel %vm3077_vm1, %v3231_v24, %v5878_v18  ;;  %v3528_v18 = vsel %vm3068_vm13, %v3526_v9, %v3448_v63 }
 0x374   : > { %v3235_v12 = vsel %vm3080_vm2, %v3233_v41, %v5968_v11  ;;  %v3148_v51 = vpop.permute.xlu0 %3147  ;;  %v3391_v11 = vsel %vm3089_vm5, %v3389_v28, %v6065_v14  ;;  %v3525_v14 = vsel %vm3065_vm12, %v3523_v36, %v6067_v47  ;;  %v3188_v19 = vpop.permute.xlu2 %3187 }
 0x375   : > { %v3237_v39 = vsel %vm3083_vm3, %v3235_v12, %v5962_v44  ;;  %v4259_v36 = vpop.eup %4258 }
 0x376   : > { %v3239_v52 = vsel %vm3086_vm4, %v3237_v39, %v6017_v26  ;;  %v3530_v26 = vsel %vm3071_vm14, %v3528_v18, %v5820_v46 }
 0x377   : > { %v3360_v13 = vpop.permute.xlu1 %3359  ;;  %v3241_v62 = vsel %vm3089_vm5, %v3239_v52, %v6061_v40  ;;  %v3532_v40 = vsel %vm3074_vm15, %v3530_v26, %v5864_v34  ;;  %v6440_v26 = vld [vmem:[#allocation17_spill] sm:$0xff] }
 0x378   : > { %v3393_v30 = vsel %vm3092_vm6, %v3391_v11, %v3360_v13  ;;  %v3243_v44 = vsel %vm3092_vm6, %v3241_v62, %v3210_v17  ;;  %v3534_v3 = vsel %vm3077_vm1, %v3532_v40, %v5958_v42  ;;  %v3392_v42 = vsel %vm3089_vm5, %v3390_v16, %v6076_v4  ;;  %v6437_v16 = vld [vmem:[#allocation14_spill] sm:$0xff] }
 0x379   : > { %4108 = vmatmul.msk.f32.vlgmr.msra.gmra.mxu1 %vm3547_vm7, %v3243_v44  ;;  %4110 = vmatmul.msk.f32.vlgmr.msra.gmra.mxu2 %vm3547_vm7, %v3393_v30  ;;  %v6438_v30 = vld [vmem:[#allocation18_spill] sm:$0xff]  ;;  %4260 = vrcp.f32 %v6440_v26 }
 0x37c   : > { %v3446_v37 = vpop.permute.xlu0 %3445  ;;  %v3212_v35 = vpop.permute.xlu2 %3211 }
 0x37d   : > { %v3527_v60 = vsel %vm3068_vm13, %v3525_v14, %v3446_v37 }
 0x37e   : > { %v3529_v10 = vsel %vm3071_vm14, %v3527_v60, %v5791_v54  ;;  %v3536_v54 = vsel %vm3080_vm2, %v3534_v3, %v6013_v53 }
 0x37f   : > { %v3531_v61 = vsel %vm3074_vm15, %v3529_v10, %v5817_v15  ;;  %v3510_v22 = vpop.permute.xlu1 %3509  ;;  %v6441_v10 = vld [vmem:[#allocation10_spill] sm:$0xff] }
 0x380   : > { %v3533_v46 = vsel %vm3077_vm1, %v3531_v61, %v5944_v55 }
 0x381   : > { %v3535_v47 = vsel %vm3080_vm2, %v3533_v46, %v5929_v59 }
 0x382   : > { %v3537_v34 = vsel %vm3083_vm3, %v3535_v47, %v5964_v32  ;;  %v3228_v32 = vsel %vm3068_vm13, %v6059_v29, %v3148_v51  ;;  %v6436_v29 = vld [vmem:[#allocation15_spill] sm:$0xff] }
 0x383   : > { %v3539_v21 = vsel %vm3086_vm4, %v3537_v34, %v6082_v33  ;;  %v6432_v33 = vld [vmem:[#allocation13_spill] sm:$0xff] }
 0x384   : > { %v3541_v15 = vsel %vm3089_vm5, %v3539_v21, %v6078_v58  ;;  %v3362_v48 = vpop.permute.xlu0 %3361  ;;  %v3538_v53 = vsel %vm3083_vm3, %v3536_v54, %v6432_v33  ;;  %v6433_v58 = vld [vmem:[#allocation12_spill] sm:$0xff] }
 0x385   : > { %v3543_v55 = vsel %vm3092_vm6, %v3541_v15, %v3510_v22  ;;  %v3394_v59 = vsel %vm3092_vm6, %v3392_v42, %v3362_v48  ;;  %v3230_v38 = vsel %vm3071_vm14, %v3228_v32, %v6433_v58  ;;  %v3540_v4 = vsel %vm3086_vm4, %v3538_v53, %v6434_v5  ;;  %v4261_v22 = vpop.eup %4260 }
 0x386   : > { %4111 = vmatmul.msk.f32.gmra.mxu2 %vm3547_vm7, %v3394_v59  ;;  %4112 = vmatmul.msk.f32.vlgmr.msra.gmra.mxu3 %vm3547_vm7, %v3543_v55  ;;  %v3232_v56 = vsel %vm3074_vm15, %v3230_v38, %v6435_v20  ;;  %v3542_v2 = vsel %vm3089_vm5, %v3540_v4, %v6436_v29 }
 0x387   : > { %v3180_v45 = vpop.permute.xlu1 %3179  ;;  %v3234_v50 = vsel %vm3077_vm1, %v3232_v56, %v6437_v16 }
 0x388   : > { %v3236_v17 = vsel %vm3080_vm2, %v3234_v50, %v3180_v45 }
 0x389   : > { %v3238_v57 = vsel %vm3083_vm3, %v3236_v17, %v3188_v19 }
 0x38c   : > { %v3512_v1 = vpop.permute.xlu0 %3511 }
 0x38d   : > { %v3544_v43 = vsel %vm3092_vm6, %v3542_v2, %v3512_v1 }
 0x38e   : > { %4113 = vmatmul.msk.f32.gmra.mxu3 %vm3547_vm7, %v3544_v43 }
 0x38f   : > { %v3196_v27 = vpop.permute.xlu1 %3195 }
 0x390   : > { %v3240_v0 = vsel %vm3086_vm4, %v3238_v57, %v3196_v27 }
 0x394   : > { %v3204_v23 = vpop.permute.xlu0 %3203 }
 0x395   : > { %v3242_v8 = vsel %vm3089_vm5, %v3240_v0, %v3204_v23 }
 0x396   : > { %v3244_v49 = vsel %vm3092_vm6, %v3242_v8, %v3212_v35 }
 0x397   : > { %4109 = vmatmul.msk.f32.gmra.mxu1 %vm3547_vm7, %v3244_v49 }
 0x3db   : > { %v3571_v12 = vpop.f32.mrf.mxu0 }
 0x3ee   : > { %v3574_v39 = vpop.f32.mrf.mxu0 }
 0x3f6   : > { %v3602_v25 = vpop.f32.mrf.mxu1 }
 0x3f7   : > { %3668 = vrot.lane.b32.xlu1 %v3602_v25, %s4370_s11 }
 0x3fc   : > { %v3631_v31 = vpop.f32.mrf.mxu2 }
 0x3fd   : > { %3676 = vrot.lane.b32.xlu2 %v3631_v31, %s4362_s29 }
 0x409   : > { %v3634_v6 = vpop.f32.mrf.mxu2  ;;  %v3660_v24 = vpop.f32.mrf.mxu3 }
 0x40a   : > { %3678 = vrot.lane.b32.xlu1 %v3634_v6, %s4362_s29 }
 0x411   : > { %v3663_v41 = vpop.f32.mrf.mxu3 }
 0x412   : > { %3686 = vrot.lane.b32.xlu2 %v3663_v41, %s4369_s13 }
 0x414   : > { %v3605_v63 = vpop.f32.mrf.mxu1 }
 0x415   : > { %3670 = vrot.lane.b32.xlu0 %v3605_v63, %s4370_s11 }
 0x41d   : > { %3684 = vrot.lane.b32.xlu0 %v3660_v24, %s4369_s13  ;;  %s6439_s13 = sld [smem:[#allocation38_spill]] }
 0x423   : > { %s655_s11 = scalar_lea.vmem %s6439_s13, %s3966_s21 }
 0x457   : > { %v3677_v28 = vpop.permute.xlu2 %3676 }
 0x469   : > { %v3669_v51 = vpop.permute.xlu1 %3668 }
 0x46a   : > { %v3690_v7 = vsel %vm3059_vm10, %v3571_v12, %v3669_v51 }
 0x46b   : > { %v3692_v40 = vsel %vm3071_vm14, %v3690_v7, %v3677_v28 }
 0x46c   : > { %v3687_v13 = vpop.permute.xlu2 %3686 }
 0x47c   : > { %v3679_v52 = vpop.permute.xlu1 %3678 }
 0x487   : > { %v3671_v9 = vpop.permute.xlu0 %3670 }
 0x488   : > { %v3691_v18 = vsel %vm3059_vm10, %v3574_v39, %v3671_v9 }
 0x489   : > { %v3693_v11 = vsel %vm3071_vm14, %v3691_v18, %v3679_v52 }
 0x48a   : > { %v3695_v62 = vsel %vm3083_vm3, %v3693_v11, %v3687_v13 }
 0x48b   : > { %v3699_v44 = vadd.f32 %v3695_v62, %v6438_v30 }
 0x48d   : > { %v3701_v37 = vmul.f32 %v4259_v36, %v3699_v44 }
 0x48f   : > { %3703 = vst.msk [vmem:[%s655_s11 + $0x8] sm:$0xff] %vm3547_vm7, %v3701_v37  ;;  %v3685_v14 = vpop.permute.xlu0 %3684 }
 0x490   : > { %v3694_v60 = vsel %vm3083_vm3, %v3692_v40, %v3685_v14 }
 0x491   : > { %v3698_v61 = vadd.f32 %v3694_v60, %v6441_v10 }
 0x493   : > { %v3700_v3 = vmul.f32 %v4261_v22, %v3698_v61 }
 0x495   : > { %3702 = vst.msk [vmem:[%s655_s11] sm:$0xff] %vm3547_vm7, %v3700_v3 }
 0x496 PF: > { %s20_s17 = sadd.s32 1, %s4351_s17   ;;  %s6442_s12 = sld [smem:[#allocation6_spill]] }
 0x497   : > { %p17_p3 = scmp.ge.s32.totalorder %s20_s17, 10   ;;  %s6443_s9 = sld [smem:[#allocation7_spill]] }
 0x498   : > { %s6444_s15 = sld [smem:[#allocation8_spill]]  ;;  %s6446_s30 = smov %s4323_s10 }
 0x499   : > { %s6445_s21 = sld [smem:[#allocation9_spill]]  ;;  %s6447_s10 = smov %s4514_s18 }
 0x49a   : > { %s6448_s11 = smov %s4339_s14  ;;  %s6449_s13 = smov %s4347_s16 }
 0x49b   :  { %19 = sbr.rel (!%p17_p3) target bundleno = 8 (0x8), region = 161 }
 0x49d   : > { %s6450_s14 = smov %s6443_s9 }
 0x49f   : > { %s6451_s16 = smov %s6445_s21 }
 0x4a0   :  { %3742 = vsyncpa [#allocation3], 1 }
 0x4a1   :  { %3744 = vsyncpa [#allocation3 + $0x1], 1 }

</bundles_post_ra>
